<compile_context>
chip_gen: v7x
topology: tpu7x:2x2x1
jax: 0.10.0
libtpu: 0.0.40
codegen_flags: <defaults>
</compile_context>

<pallas_src>
import functools
import numpy as np
import jax
import jax.numpy as jnp
from jax import lax
from jax.experimental import pallas as pl
from jax.experimental.pallas import tpu as pltpu


# 3x3 tap offsets, dh-major, matching the host-side weight / mask packing.
_TAPS = tuple((dh, dw) for dh in (-1, 0, 1) for dw in (-1, 0, 1))


# ----------------------------------------------------------------------------
# In-kernel helper: 3x3 same-padding conv (bias=False) + SiLU, channel-major.
#   x     : (Cin, P)  spatial flattened row-major on the lane axis
#           (columns >= H*W are zero lane-padding and stay zero).
#   w_ref : (9, Cout, Cin) per-tap weights (out-channel major).
#   m_ref : (9, 1, P) per-tap masks: 0 where the tap reads out of bounds or
#           into the lane-padding region, 1 otherwise.
# ----------------------------------------------------------------------------
def _conv3x3_silu(x, w_ref, m_ref, W):
    P = x.shape[1]
    Cout = w_ref.shape[1]
    acc = jnp.zeros((Cout, P), jnp.float32)
    for tap, (dh, dw) in enumerate(_TAPS):
        s = dh * W + dw                                  # flattened read-ahead
        if s == 0:
            shifted = x
        else:
            # lane rotate (XLU): shifted[:, p] == x[:, p + s] (mod P, masked)
            shifted = pltpu.roll(x, shift=(-s) % P, axis=1)
        masked = shifted * m_ref[tap]                    # zero border taps (VPU)
        acc = acc + jnp.dot(w_ref[tap], masked,
                            preferred_element_type=jnp.float32)
    return acc * jax.nn.sigmoid(acc)                     # SiLU


# ----------------------------------------------------------------------------
# Fused encoder kernel: one batch element per grid step.
# ----------------------------------------------------------------------------
def _encoder_kernel(x_ref, w0_ref, w1_ref, w2_ref, w3_ref,
                    m0_ref, m1_ref, a0_ref, a1_ref, o_ref, *, W0, W1):
    x = x_ref[0].astype(jnp.float32)                     # (Cin, P)

    # conv0 (3x3, bias=False) + SiLU                     -> (C, P)
    y0 = _conv3x3_silu(x, w0_ref, m0_ref, W0)
    # bilinear interp (align_corners=True) + SiLU        -> (C, P)
    z = jnp.dot(y0, a0_ref[...], preferred_element_type=jnp.float32)
    z = z * jax.nn.sigmoid(z)
    # conv1 / conv2 / conv3: weights are zero-padded so each conv writes its
    # own channel slice of the full C rows -> channel concat is a plain add.
    y1 = _conv3x3_silu(z, w1_ref, m1_ref, W1)
    y2 = _conv3x3_silu(y1, w2_ref, m1_ref, W1)
    y3 = _conv3x3_silu(y2, w3_ref, m1_ref, W1)
    cat = y1 + y2 + y3                                   # == concat([x1,x2,x3])
    # final bilinear interp (no activation)              -> (C, P_out)
    out = jnp.dot(cat, a1_ref[...], preferred_element_type=jnp.float32)
    o_ref[...] = out[None].astype(o_ref.dtype)


# ----------------------------------------------------------------------------
# Host-side parameter preparation (one-time, numpy).
# ----------------------------------------------------------------------------
def _bilinear_matrix(n_out, n_in):
    """1-D bilinear interpolation matrix, align_corners=True."""
    A = np.zeros((n_out, n_in), dtype=np.float32)
    for i in range(n_out):
        s = 0.0 if n_out == 1 else i * (n_in - 1) / (n_out - 1)
        p0 = min(int(np.floor(s)), n_in - 1)
        p1 = min(p0 + 1, n_in - 1)
        w1 = s - p0
        A[i, p0] += 1.0 - w1
        A[i, p1] += w1
    return A


def _conv_masks(H, W, P):
    """(9, 1, P) border masks for a HxW grid flattened into P lanes (P >= H*W)."""
    m = np.zeros((9, 1, P), np.float32)
    hh, ww = np.divmod(np.arange(H * W), W)
    for tap in range(9):
        dh, dw = divmod(tap, 3)
        dh -= 1
        dw -= 1
        ok = ((hh + dh >= 0) & (hh + dh < H) & (ww + dw >= 0) & (ww + dw < W))
        m[tap, 0, :H * W] = ok.astype(np.float32)
    return m


def _pack_conv_weights(w_hwio, cin_off, cout_off, cin_full, cout_full):
    """(3,3,cin,cout) HWIO -> (9, cout_full, cin_full) per-tap, out-major,
    placed at channel offsets (cout_off, cin_off); remaining entries are 0."""
    w = np.asarray(w_hwio, dtype=np.float32)
    kh, kw, cin, cout = w.shape
    wt = np.zeros((kh * kw, cout_full, cin_full), np.float32)
    for tap in range(kh * kw):
        dh, dw = divmod(tap, kw)
        wt[tap, cout_off:cout_off + cout, cin_off:cin_off + cin] = w[dh, dw].T
    return wt


def prepare_encoder_params(w0, w1, w2, w3, in_hw, interp_sizes):
    H, W = in_hw
    (H1, W1), (H2, W2) = interp_sizes
    P = H * W                                    # lane-padded spatial width
    assert H1 * W1 <= P and H2 * W2 <= P
    in_dim, feat = w0.shape[2], w0.shape[3]
    c0, c1, c2 = w1.shape[3], w2.shape[3], w3.shape[3]
    assert c0 + c1 + c2 == feat

    w0t = _pack_conv_weights(w0, 0, 0, in_dim, feat)
    w1t = _pack_conv_weights(w1, 0, 0, feat, feat)          # rows [0, c0)
    w2t = _pack_conv_weights(w2, 0, c0, feat, feat)          # rows [c0, c0+c1)
    w3t = _pack_conv_weights(w3, c0, c0 + c1, feat, feat)    # rows [c0+c1, feat)

    m0 = _conv_masks(H, W, P)
    m1 = _conv_masks(H1, W1, P)

    Ah0, Aw0 = _bilinear_matrix(H1, H), _bilinear_matrix(W1, W)
    Ah1, Aw1 = _bilinear_matrix(H2, H1), _bilinear_matrix(W2, W1)
    A0 = np.kron(Ah0, Aw0)                       # (H1*W1, H*W)
    A1 = np.kron(Ah1, Aw1)                       # (H2*W2, H1*W1)
    A0T = np.zeros((P, P), np.float32)
    A0T[:H * W, :H1 * W1] = A0.T
    A1T = np.zeros((P, H2 * W2), np.float32)
    A1T[:H1 * W1, :] = A1.T

    to = jnp.asarray
    return dict(w0t=to(w0t), w1t=to(w1t), w2t=to(w2t), w3t=to(w3t),
                m0=to(m0), m1=to(m1), A0T=to(A0T), A1T=to(A1T))


# ----------------------------------------------------------------------------
# Public forward: NCHW in -> NCHW out (no transposes needed anywhere).
# ----------------------------------------------------------------------------
def interp2d_encoder(x_nchw, params, interp_sizes):
    N, Cin, H, W = x_nchw.shape
    (H1, W1), (H2, W2) = interp_sizes
    P = H * W
    P_out = H2 * W2
    feat = params["w0t"].shape[1]

    x2 = x_nchw.reshape(N, Cin, P).astype(jnp.float32)   # contiguous, free

    kernel = functools.partial(_encoder_kernel, W0=W, W1=W1)
    const3 = lambda n: (0, 0, 0)
    const2 = lambda n: (0, 0)
    out = pl.pallas_call(
        kernel,
        out_shape=jax.ShapeDtypeStruct((N, feat, P_out), jnp.float32),
        grid=(N,),
        in_specs=[
            pl.BlockSpec((1, Cin, P), lambda n: (n, 0, 0)),
            pl.BlockSpec(params["w0t"].shape, const3),
            pl.BlockSpec(params["w1t"].shape, const3),
            pl.BlockSpec(params["w2t"].shape, const3),
            pl.BlockSpec(params["w3t"].shape, const3),
            pl.BlockSpec(params["m0"].shape, const3),
            pl.BlockSpec(params["m1"].shape, const3),
            pl.BlockSpec(params["A0T"].shape, const2),
            pl.BlockSpec(params["A1T"].shape, const2),
        ],
        out_specs=pl.BlockSpec((1, feat, P_out), lambda n: (n, 0, 0)),
        compiler_params=pltpu.CompilerParams(dimension_semantics=("parallel",)),
    )(x2, params["w0t"], params["w1t"], params["w2t"], params["w3t"],
      params["m0"], params["m1"], params["A0T"], params["A1T"])

    return out.reshape(N, feat, H2, W2)                   # NCHW


# ----------------------------------------------------------------------------
# Pure-JAX reference for verification.
# ----------------------------------------------------------------------------
def reference_forward(x_nchw, ws, interp_mats):
    (Ah0, Aw0), (Ah1, Aw1) = interp_mats

    def conv(x, w):
        y = lax.conv_general_dilated(
            x, w, window_strides=(1, 1), padding="SAME",
            dimension_numbers=("NHWC", "HWIO", "NHWC"))
        return jax.nn.silu(y)

    def interp(x, Ah, Aw):
        return jnp.einsum("hp,wq,npqc->nhwc", Ah, Aw, x)

    x = jnp.transpose(x_nchw, (0, 2, 3, 1)).astype(jnp.float32)
    x = conv(x, ws[0])
    x = jax.nn.silu(interp(x, Ah0, Aw0))
    x1 = conv(x, ws[1])
    x2 = conv(x1, ws[2])
    x3 = conv(x2, ws[3])
    out = jnp.concatenate([x1, x2, x3], axis=-1)
    out = interp(out, Ah1, Aw1)
    return jnp.transpose(out, (0, 3, 1, 2))


if __name__ == "__main__":
    # in_dim=3, feature_dim=32, kernel=3, padding=1, stride=dilation=1,
    # residual=False, interp_size=((12,12),(8,8)), input (N,C,H,W)=(2,3,16,16).
    N, in_dim, H, W = 2, 3, 16, 16
    feature_dim = 32
    conv_dim0 = feature_dim // 3                 # 10
    conv_dim1 = feature_dim // 3                 # 10
    conv_dim2 = feature_dim - conv_dim0 - conv_dim1   # 12
    interp_sizes = ((12, 12), (8, 8))

    key = jax.random.PRNGKey(0)
    kx, k0, k1, k2, k3 = jax.random.split(key, 5)
    x = jax.random.normal(kx, (N, in_dim, H, W), dtype=jnp.float32)

    # Conv weights in HWIO layout (3, 3, Cin, Cout); PyTorch would be OIHW.
    w0 = 0.2 * jax.random.normal(k0, (3, 3, in_dim, feature_dim), jnp.float32)
    w1 = 0.2 * jax.random.normal(k1, (3, 3, feature_dim, conv_dim0), jnp.float32)
    w2 = 0.2 * jax.random.normal(k2, (3, 3, conv_dim0, conv_dim1), jnp.float32)
    w3 = 0.2 * jax.random.normal(k3, (3, 3, conv_dim1, conv_dim2), jnp.float32)

    params = prepare_encoder_params(w0, w1, w2, w3, (H, W), interp_sizes)

    fwd = jax.jit(interp2d_encoder, static_argnums=2)
    out = jax.block_until_ready(fwd(x, params, interp_sizes))

    # Reference check (f32 everywhere).
    Ah0 = jnp.asarray(_bilinear_matrix(interp_sizes[0][0], H))
    Aw0 = jnp.asarray(_bilinear_matrix(interp_sizes[0][1], W))
    Ah1 = jnp.asarray(_bilinear_matrix(interp_sizes[1][0], interp_sizes[0][0]))
    Aw1 = jnp.asarray(_bilinear_matrix(interp_sizes[1][1], interp_sizes[0][1]))
    ref = jax.block_until_ready(
        reference_forward(x, (w0, w1, w2, w3), ((Ah0, Aw0), (Ah1, Aw1))))

    assert out.shape == (N, feature_dim, interp_sizes[1][0], interp_sizes[1][1])
    np.testing.assert_allclose(np.asarray(out), np.asarray(ref),
                               rtol=1e-4, atol=1e-4)
    print("KERNEL_OK")
</pallas_src>

<mosaic_0001>
module attributes {stable_mosaic.version = 11 : i64} {
  func.func @_encoder_kernel(%arg0: i32, %arg1: memref<1x3x256xf32, #tpu.memory_space<vmem>>, %arg2: memref<9x32x3xf32, #tpu.memory_space<vmem>>, %arg3: memref<9x32x32xf32, #tpu.memory_space<vmem>>, %arg4: memref<9x32x32xf32, #tpu.memory_space<vmem>>, %arg5: memref<9x32x32xf32, #tpu.memory_space<vmem>>, %arg6: memref<9x1x256xf32, #tpu.memory_space<vmem>>, %arg7: memref<9x1x256xf32, #tpu.memory_space<vmem>>, %arg8: memref<256x256xf32, #tpu.memory_space<vmem>>, %arg9: memref<256x64xf32, #tpu.memory_space<vmem>>, %arg10: memref<1x32x64xf32, #tpu.memory_space<vmem>>) attributes {dimension_semantics = [#tpu.dimension_semantics<parallel>], iteration_bounds = array<i64: 2>, scalar_prefetch = 0 : i64, scratch_operands = 0 : i64, tpu.core_type = #tpu.core_type<tc>, window_params = [{transform_indices = @transform_0, window_bounds = array<i64: 1, 3, 256>}, {pipeline_mode = #tpu.pipeline_mode<synchronous>, transform_indices = @transform_1, window_bounds = array<i64: 9, 32, 3>}, {pipeline_mode = #tpu.pipeline_mode<synchronous>, transform_indices = @transform_2, window_bounds = array<i64: 9, 32, 32>}, {pipeline_mode = #tpu.pipeline_mode<synchronous>, transform_indices = @transform_3, window_bounds = array<i64: 9, 32, 32>}, {pipeline_mode = #tpu.pipeline_mode<synchronous>, transform_indices = @transform_4, window_bounds = array<i64: 9, 32, 32>}, {pipeline_mode = #tpu.pipeline_mode<synchronous>, transform_indices = @transform_5, window_bounds = array<i64: 9, 1, 256>}, {pipeline_mode = #tpu.pipeline_mode<synchronous>, transform_indices = @transform_6, window_bounds = array<i64: 9, 1, 256>}, {pipeline_mode = #tpu.pipeline_mode<synchronous>, transform_indices = @transform_7, window_bounds = array<i64: 256, 256>}, {pipeline_mode = #tpu.pipeline_mode<synchronous>, transform_indices = @transform_8, window_bounds = array<i64: 256, 64>}, {transform_indices = @transform_9, window_bounds = array<i64: 1, 32, 64>}]} {
    %c0 = arith.constant 0 : index
    %c0_0 = arith.constant 0 : index
    %c0_1 = arith.constant 0 : index
    %0 = vector.load %arg1[%c0, %c0_0, %c0_1] : memref<1x3x256xf32, #tpu.memory_space<vmem>>, vector<1x3x256xf32>
    %1 = vector.shape_cast %0 : vector<1x3x256xf32> to vector<3x256xf32>
    %cst = arith.constant 0.000000e+00 : f32
    %2 = vector.broadcast %cst : f32 to vector<32x256xf32>
    %c17_i32 = arith.constant 17 : i32
    %3 = tpu.dynamic_rotate %1 by %c17_i32 dim 1 : vector<3x256xf32>, i32 -> vector<3x256xf32>
    %c0_2 = arith.constant 0 : index
    %c0_3 = arith.constant 0 : index
    %c0_4 = arith.constant 0 : index
    %4 = vector.load %arg6[%c0_2, %c0_3, %c0_4] : memref<9x1x256xf32, #tpu.memory_space<vmem>>, vector<1x1x256xf32>
    %5 = vector.shape_cast %4 : vector<1x1x256xf32> to vector<1x256xf32>
    %6 = vector.broadcast %5 : vector<1x256xf32> to vector<3x256xf32>
    %7 = arith.mulf %3, %6 : vector<3x256xf32>
    %c0_5 = arith.constant 0 : index
    %c0_6 = arith.constant 0 : index
    %c0_7 = arith.constant 0 : index
    %8 = vector.load %arg2[%c0_5, %c0_6, %c0_7] : memref<9x32x3xf32, #tpu.memory_space<vmem>>, vector<1x32x3xf32>
    %9 = vector.shape_cast %8 : vector<1x32x3xf32> to vector<32x3xf32>
    %cst_8 = arith.constant dense<0.000000e+00> : vector<32x256xf32>
    %10 = tpu.matmul %9, %7, %cst_8 {dimension_numbers = #tpu.dot_dimension_numbers<[1], [0], [0], [1], [0, 0, 1, 1], [], []>} : vector<32x3xf32>, vector<3x256xf32>, vector<32x256xf32> -> vector<32x256xf32>
    %11 = arith.addf %2, %10 : vector<32x256xf32>
    %c16_i32 = arith.constant 16 : i32
    %12 = tpu.dynamic_rotate %1 by %c16_i32 dim 1 : vector<3x256xf32>, i32 -> vector<3x256xf32>
    %c1 = arith.constant 1 : index
    %c0_9 = arith.constant 0 : index
    %c0_10 = arith.constant 0 : index
    %13 = vector.load %arg6[%c1, %c0_9, %c0_10] : memref<9x1x256xf32, #tpu.memory_space<vmem>>, vector<1x1x256xf32>
    %14 = vector.shape_cast %13 : vector<1x1x256xf32> to vector<1x256xf32>
    %15 = vector.broadcast %14 : vector<1x256xf32> to vector<3x256xf32>
    %16 = arith.mulf %12, %15 : vector<3x256xf32>
    %c1_11 = arith.constant 1 : index
    %c0_12 = arith.constant 0 : index
    %c0_13 = arith.constant 0 : index
    %17 = vector.load %arg2[%c1_11, %c0_12, %c0_13] : memref<9x32x3xf32, #tpu.memory_space<vmem>>, vector<1x32x3xf32>
    %18 = vector.shape_cast %17 : vector<1x32x3xf32> to vector<32x3xf32>
    %cst_14 = arith.constant dense<0.000000e+00> : vector<32x256xf32>
    %19 = tpu.matmul %18, %16, %cst_14 {dimension_numbers = #tpu.dot_dimension_numbers<[1], [0], [0], [1], [0, 0, 1, 1], [], []>} : vector<32x3xf32>, vector<3x256xf32>, vector<32x256xf32> -> vector<32x256xf32>
    %20 = arith.addf %11, %19 : vector<32x256xf32>
    %c15_i32 = arith.constant 15 : i32
    %21 = tpu.dynamic_rotate %1 by %c15_i32 dim 1 : vector<3x256xf32>, i32 -> vector<3x256xf32>
    %c2 = arith.constant 2 : index
    %c0_15 = arith.constant 0 : index
    %c0_16 = arith.constant 0 : index
    %22 = vector.load %arg6[%c2, %c0_15, %c0_16] : memref<9x1x256xf32, #tpu.memory_space<vmem>>, vector<1x1x256xf32>
    %23 = vector.shape_cast %22 : vector<1x1x256xf32> to vector<1x256xf32>
    %24 = vector.broadcast %23 : vector<1x256xf32> to vector<3x256xf32>
    %25 = arith.mulf %21, %24 : vector<3x256xf32>
    %c2_17 = arith.constant 2 : index
    %c0_18 = arith.constant 0 : index
    %c0_19 = arith.constant 0 : index
    %26 = vector.load %arg2[%c2_17, %c0_18, %c0_19] : memref<9x32x3xf32, #tpu.memory_space<vmem>>, vector<1x32x3xf32>
    %27 = vector.shape_cast %26 : vector<1x32x3xf32> to vector<32x3xf32>
    %cst_20 = arith.constant dense<0.000000e+00> : vector<32x256xf32>
    %28 = tpu.matmul %27, %25, %cst_20 {dimension_numbers = #tpu.dot_dimension_numbers<[1], [0], [0], [1], [0, 0, 1, 1], [], []>} : vector<32x3xf32>, vector<3x256xf32>, vector<32x256xf32> -> vector<32x256xf32>
    %29 = arith.addf %20, %28 : vector<32x256xf32>
    %c1_i32 = arith.constant 1 : i32
    %30 = tpu.dynamic_rotate %1 by %c1_i32 dim 1 : vector<3x256xf32>, i32 -> vector<3x256xf32>
    %c3 = arith.constant 3 : index
    %c0_21 = arith.constant 0 : index
    %c0_22 = arith.constant 0 : index
    %31 = vector.load %arg6[%c3, %c0_21, %c0_22] : memref<9x1x256xf32, #tpu.memory_space<vmem>>, vector<1x1x256xf32>
    %32 = vector.shape_cast %31 : vector<1x1x256xf32> to vector<1x256xf32>
    %33 = vector.broadcast %32 : vector<1x256xf32> to vector<3x256xf32>
    %34 = arith.mulf %30, %33 : vector<3x256xf32>
    %c3_23 = arith.constant 3 : index
    %c0_24 = arith.constant 0 : index
    %c0_25 = arith.constant 0 : index
    %35 = vector.load %arg2[%c3_23, %c0_24, %c0_25] : memref<9x32x3xf32, #tpu.memory_space<vmem>>, vector<1x32x3xf32>
    %36 = vector.shape_cast %35 : vector<1x32x3xf32> to vector<32x3xf32>
    %cst_26 = arith.constant dense<0.000000e+00> : vector<32x256xf32>
    %37 = tpu.matmul %36, %34, %cst_26 {dimension_numbers = #tpu.dot_dimension_numbers<[1], [0], [0], [1], [0, 0, 1, 1], [], []>} : vector<32x3xf32>, vector<3x256xf32>, vector<32x256xf32> -> vector<32x256xf32>
    %38 = arith.addf %29, %37 : vector<32x256xf32>
    %c4 = arith.constant 4 : index
    %c0_27 = arith.constant 0 : index
    %c0_28 = arith.constant 0 : index
    %39 = vector.load %arg6[%c4, %c0_27, %c0_28] : memref<9x1x256xf32, #tpu.memory_space<vmem>>, vector<1x1x256xf32>
    %40 = vector.shape_cast %39 : vector<1x1x256xf32> to vector<1x256xf32>
    %41 = vector.broadcast %40 : vector<1x256xf32> to vector<3x256xf32>
    %42 = arith.mulf %1, %41 : vector<3x256xf32>
    %c4_29 = arith.constant 4 : index
    %c0_30 = arith.constant 0 : index
    %c0_31 = arith.constant 0 : index
    %43 = vector.load %arg2[%c4_29, %c0_30, %c0_31] : memref<9x32x3xf32, #tpu.memory_space<vmem>>, vector<1x32x3xf32>
    %44 = vector.shape_cast %43 : vector<1x32x3xf32> to vector<32x3xf32>
    %cst_32 = arith.constant dense<0.000000e+00> : vector<32x256xf32>
    %45 = tpu.matmul %44, %42, %cst_32 {dimension_numbers = #tpu.dot_dimension_numbers<[1], [0], [0], [1], [0, 0, 1, 1], [], []>} : vector<32x3xf32>, vector<3x256xf32>, vector<32x256xf32> -> vector<32x256xf32>
    %46 = arith.addf %38, %45 : vector<32x256xf32>
    %c255_i32 = arith.constant 255 : i32
    %47 = tpu.dynamic_rotate %1 by %c255_i32 dim 1 : vector<3x256xf32>, i32 -> vector<3x256xf32>
    %c5 = arith.constant 5 : index
    %c0_33 = arith.constant 0 : index
    %c0_34 = arith.constant 0 : index
    %48 = vector.load %arg6[%c5, %c0_33, %c0_34] : memref<9x1x256xf32, #tpu.memory_space<vmem>>, vector<1x1x256xf32>
    %49 = vector.shape_cast %48 : vector<1x1x256xf32> to vector<1x256xf32>
    %50 = vector.broadcast %49 : vector<1x256xf32> to vector<3x256xf32>
    %51 = arith.mulf %47, %50 : vector<3x256xf32>
    %c5_35 = arith.constant 5 : index
    %c0_36 = arith.constant 0 : index
    %c0_37 = arith.constant 0 : index
    %52 = vector.load %arg2[%c5_35, %c0_36, %c0_37] : memref<9x32x3xf32, #tpu.memory_space<vmem>>, vector<1x32x3xf32>
    %53 = vector.shape_cast %52 : vector<1x32x3xf32> to vector<32x3xf32>
    %cst_38 = arith.constant dense<0.000000e+00> : vector<32x256xf32>
    %54 = tpu.matmul %53, %51, %cst_38 {dimension_numbers = #tpu.dot_dimension_numbers<[1], [0], [0], [1], [0, 0, 1, 1], [], []>} : vector<32x3xf32>, vector<3x256xf32>, vector<32x256xf32> -> vector<32x256xf32>
    %55 = arith.addf %46, %54 : vector<32x256xf32>
    %c241_i32 = arith.constant 241 : i32
    %56 = tpu.dynamic_rotate %1 by %c241_i32 dim 1 : vector<3x256xf32>, i32 -> vector<3x256xf32>
    %c6 = arith.constant 6 : index
    %c0_39 = arith.constant 0 : index
    %c0_40 = arith.constant 0 : index
    %57 = vector.load %arg6[%c6, %c0_39, %c0_40] : memref<9x1x256xf32, #tpu.memory_space<vmem>>, vector<1x1x256xf32>
    %58 = vector.shape_cast %57 : vector<1x1x256xf32> to vector<1x256xf32>
    %59 = vector.broadcast %58 : vector<1x256xf32> to vector<3x256xf32>
    %60 = arith.mulf %56, %59 : vector<3x256xf32>
    %c6_41 = arith.constant 6 : index
    %c0_42 = arith.constant 0 : index
    %c0_43 = arith.constant 0 : index
    %61 = vector.load %arg2[%c6_41, %c0_42, %c0_43] : memref<9x32x3xf32, #tpu.memory_space<vmem>>, vector<1x32x3xf32>
    %62 = vector.shape_cast %61 : vector<1x32x3xf32> to vector<32x3xf32>
    %cst_44 = arith.constant dense<0.000000e+00> : vector<32x256xf32>
    %63 = tpu.matmul %62, %60, %cst_44 {dimension_numbers = #tpu.dot_dimension_numbers<[1], [0], [0], [1], [0, 0, 1, 1], [], []>} : vector<32x3xf32>, vector<3x256xf32>, vector<32x256xf32> -> vector<32x256xf32>
    %64 = arith.addf %55, %63 : vector<32x256xf32>
    %c240_i32 = arith.constant 240 : i32
    %65 = tpu.dynamic_rotate %1 by %c240_i32 dim 1 : vector<3x256xf32>, i32 -> vector<3x256xf32>
    %c7 = arith.constant 7 : index
    %c0_45 = arith.constant 0 : index
    %c0_46 = arith.constant 0 : index
    %66 = vector.load %arg6[%c7, %c0_45, %c0_46] : memref<9x1x256xf32, #tpu.memory_space<vmem>>, vector<1x1x256xf32>
    %67 = vector.shape_cast %66 : vector<1x1x256xf32> to vector<1x256xf32>
    %68 = vector.broadcast %67 : vector<1x256xf32> to vector<3x256xf32>
    %69 = arith.mulf %65, %68 : vector<3x256xf32>
    %c7_47 = arith.constant 7 : index
    %c0_48 = arith.constant 0 : index
    %c0_49 = arith.constant 0 : index
    %70 = vector.load %arg2[%c7_47, %c0_48, %c0_49] : memref<9x32x3xf32, #tpu.memory_space<vmem>>, vector<1x32x3xf32>
    %71 = vector.shape_cast %70 : vector<1x32x3xf32> to vector<32x3xf32>
    %cst_50 = arith.constant dense<0.000000e+00> : vector<32x256xf32>
    %72 = tpu.matmul %71, %69, %cst_50 {dimension_numbers = #tpu.dot_dimension_numbers<[1], [0], [0], [1], [0, 0, 1, 1], [], []>} : vector<32x3xf32>, vector<3x256xf32>, vector<32x256xf32> -> vector<32x256xf32>
    %73 = arith.addf %64, %72 : vector<32x256xf32>
    %c239_i32 = arith.constant 239 : i32
    %74 = tpu.dynamic_rotate %1 by %c239_i32 dim 1 : vector<3x256xf32>, i32 -> vector<3x256xf32>
    %c8 = arith.constant 8 : index
    %c0_51 = arith.constant 0 : index
    %c0_52 = arith.constant 0 : index
    %75 = vector.load %arg6[%c8, %c0_51, %c0_52] : memref<9x1x256xf32, #tpu.memory_space<vmem>>, vector<1x1x256xf32>
    %76 = vector.shape_cast %75 : vector<1x1x256xf32> to vector<1x256xf32>
    %77 = vector.broadcast %76 : vector<1x256xf32> to vector<3x256xf32>
    %78 = arith.mulf %74, %77 : vector<3x256xf32>
    %c8_53 = arith.constant 8 : index
    %c0_54 = arith.constant 0 : index
    %c0_55 = arith.constant 0 : index
    %79 = vector.load %arg2[%c8_53, %c0_54, %c0_55] : memref<9x32x3xf32, #tpu.memory_space<vmem>>, vector<1x32x3xf32>
    %80 = vector.shape_cast %79 : vector<1x32x3xf32> to vector<32x3xf32>
    %cst_56 = arith.constant dense<0.000000e+00> : vector<32x256xf32>
    %81 = tpu.matmul %80, %78, %cst_56 {dimension_numbers = #tpu.dot_dimension_numbers<[1], [0], [0], [1], [0, 0, 1, 1], [], []>} : vector<32x3xf32>, vector<3x256xf32>, vector<32x256xf32> -> vector<32x256xf32>
    %82 = arith.addf %73, %81 : vector<32x256xf32>
    %83 = arith.negf %82 : vector<32x256xf32>
    %84 = math.exp %83 : vector<32x256xf32>
    %cst_57 = arith.constant 1.000000e+00 : f32
    %85 = vector.broadcast %cst_57 : f32 to vector<32x256xf32>
    %86 = arith.addf %85, %84 : vector<32x256xf32>
    %87 = arith.divf %85, %86 : vector<32x256xf32>
    %88 = arith.mulf %82, %87 : vector<32x256xf32>
    %c0_58 = arith.constant 0 : index
    %c0_59 = arith.constant 0 : index
    %89 = vector.load %arg8[%c0_58, %c0_59] : memref<256x256xf32, #tpu.memory_space<vmem>>, vector<256x256xf32>
    %cst_60 = arith.constant dense<0.000000e+00> : vector<32x256xf32>
    %90 = tpu.matmul %88, %89, %cst_60 {dimension_numbers = #tpu.dot_dimension_numbers<[1], [0], [0], [1], [0, 0, 1, 1], [], []>} : vector<32x256xf32>, vector<256x256xf32>, vector<32x256xf32> -> vector<32x256xf32>
    %91 = arith.negf %90 : vector<32x256xf32>
    %92 = math.exp %91 : vector<32x256xf32>
    %cst_61 = arith.constant 1.000000e+00 : f32
    %93 = vector.broadcast %cst_61 : f32 to vector<32x256xf32>
    %94 = arith.addf %93, %92 : vector<32x256xf32>
    %95 = arith.divf %93, %94 : vector<32x256xf32>
    %96 = arith.mulf %90, %95 : vector<32x256xf32>
    %cst_62 = arith.constant 0.000000e+00 : f32
    %97 = vector.broadcast %cst_62 : f32 to vector<32x256xf32>
    %c13_i32 = arith.constant 13 : i32
    %98 = tpu.dynamic_rotate %96 by %c13_i32 dim 1 : vector<32x256xf32>, i32 -> vector<32x256xf32>
    %c0_63 = arith.constant 0 : index
    %c0_64 = arith.constant 0 : index
    %c0_65 = arith.constant 0 : index
    %99 = vector.load %arg7[%c0_63, %c0_64, %c0_65] : memref<9x1x256xf32, #tpu.memory_space<vmem>>, vector<1x1x256xf32>
    %100 = vector.shape_cast %99 : vector<1x1x256xf32> to vector<1x256xf32>
    %101 = vector.broadcast %100 : vector<1x256xf32> to vector<32x256xf32>
    %102 = arith.mulf %98, %101 : vector<32x256xf32>
    %c0_66 = arith.constant 0 : index
    %c0_67 = arith.constant 0 : index
    %c0_68 = arith.constant 0 : index
    %103 = vector.load %arg3[%c0_66, %c0_67, %c0_68] : memref<9x32x32xf32, #tpu.memory_space<vmem>>, vector<1x32x32xf32>
    %104 = vector.shape_cast %103 : vector<1x32x32xf32> to vector<32x32xf32>
    %cst_69 = arith.constant dense<0.000000e+00> : vector<32x256xf32>
    %105 = tpu.matmul %104, %102, %cst_69 {dimension_numbers = #tpu.dot_dimension_numbers<[1], [0], [0], [1], [0, 0, 1, 1], [], []>} : vector<32x32xf32>, vector<32x256xf32>, vector<32x256xf32> -> vector<32x256xf32>
    %106 = arith.addf %97, %105 : vector<32x256xf32>
    %c12_i32 = arith.constant 12 : i32
    %107 = tpu.dynamic_rotate %96 by %c12_i32 dim 1 : vector<32x256xf32>, i32 -> vector<32x256xf32>
    %c1_70 = arith.constant 1 : index
    %c0_71 = arith.constant 0 : index
    %c0_72 = arith.constant 0 : index
    %108 = vector.load %arg7[%c1_70, %c0_71, %c0_72] : memref<9x1x256xf32, #tpu.memory_space<vmem>>, vector<1x1x256xf32>
    %109 = vector.shape_cast %108 : vector<1x1x256xf32> to vector<1x256xf32>
    %110 = vector.broadcast %109 : vector<1x256xf32> to vector<32x256xf32>
    %111 = arith.mulf %107, %110 : vector<32x256xf32>
    %c1_73 = arith.constant 1 : index
    %c0_74 = arith.constant 0 : index
    %c0_75 = arith.constant 0 : index
    %112 = vector.load %arg3[%c1_73, %c0_74, %c0_75] : memref<9x32x32xf32, #tpu.memory_space<vmem>>, vector<1x32x32xf32>
    %113 = vector.shape_cast %112 : vector<1x32x32xf32> to vector<32x32xf32>
    %cst_76 = arith.constant dense<0.000000e+00> : vector<32x256xf32>
    %114 = tpu.matmul %113, %111, %cst_76 {dimension_numbers = #tpu.dot_dimension_numbers<[1], [0], [0], [1], [0, 0, 1, 1], [], []>} : vector<32x32xf32>, vector<32x256xf32>, vector<32x256xf32> -> vector<32x256xf32>
    %115 = arith.addf %106, %114 : vector<32x256xf32>
    %c11_i32 = arith.constant 11 : i32
    %116 = tpu.dynamic_rotate %96 by %c11_i32 dim 1 : vector<32x256xf32>, i32 -> vector<32x256xf32>
    %c2_77 = arith.constant 2 : index
    %c0_78 = arith.constant 0 : index
    %c0_79 = arith.constant 0 : index
    %117 = vector.load %arg7[%c2_77, %c0_78, %c0_79] : memref<9x1x256xf32, #tpu.memory_space<vmem>>, vector<1x1x256xf32>
    %118 = vector.shape_cast %117 : vector<1x1x256xf32> to vector<1x256xf32>
    %119 = vector.broadcast %118 : vector<1x256xf32> to vector<32x256xf32>
    %120 = arith.mulf %116, %119 : vector<32x256xf32>
    %c2_80 = arith.constant 2 : index
    %c0_81 = arith.constant 0 : index
    %c0_82 = arith.constant 0 : index
    %121 = vector.load %arg3[%c2_80, %c0_81, %c0_82] : memref<9x32x32xf32, #tpu.memory_space<vmem>>, vector<1x32x32xf32>
    %122 = vector.shape_cast %121 : vector<1x32x32xf32> to vector<32x32xf32>
    %cst_83 = arith.constant dense<0.000000e+00> : vector<32x256xf32>
    %123 = tpu.matmul %122, %120, %cst_83 {dimension_numbers = #tpu.dot_dimension_numbers<[1], [0], [0], [1], [0, 0, 1, 1], [], []>} : vector<32x32xf32>, vector<32x256xf32>, vector<32x256xf32> -> vector<32x256xf32>
    %124 = arith.addf %115, %123 : vector<32x256xf32>
    %c1_i32_84 = arith.constant 1 : i32
    %125 = tpu.dynamic_rotate %96 by %c1_i32_84 dim 1 : vector<32x256xf32>, i32 -> vector<32x256xf32>
    %c3_85 = arith.constant 3 : index
    %c0_86 = arith.constant 0 : index
    %c0_87 = arith.constant 0 : index
    %126 = vector.load %arg7[%c3_85, %c0_86, %c0_87] : memref<9x1x256xf32, #tpu.memory_space<vmem>>, vector<1x1x256xf32>
    %127 = vector.shape_cast %126 : vector<1x1x256xf32> to vector<1x256xf32>
    %128 = vector.broadcast %127 : vector<1x256xf32> to vector<32x256xf32>
    %129 = arith.mulf %125, %128 : vector<32x256xf32>
    %c3_88 = arith.constant 3 : index
    %c0_89 = arith.constant 0 : index
    %c0_90 = arith.constant 0 : index
    %130 = vector.load %arg3[%c3_88, %c0_89, %c0_90] : memref<9x32x32xf32, #tpu.memory_space<vmem>>, vector<1x32x32xf32>
    %131 = vector.shape_cast %130 : vector<1x32x32xf32> to vector<32x32xf32>
    %cst_91 = arith.constant dense<0.000000e+00> : vector<32x256xf32>
    %132 = tpu.matmul %131, %129, %cst_91 {dimension_numbers = #tpu.dot_dimension_numbers<[1], [0], [0], [1], [0, 0, 1, 1], [], []>} : vector<32x32xf32>, vector<32x256xf32>, vector<32x256xf32> -> vector<32x256xf32>
    %133 = arith.addf %124, %132 : vector<32x256xf32>
    %c4_92 = arith.constant 4 : index
    %c0_93 = arith.constant 0 : index
    %c0_94 = arith.constant 0 : index
    %134 = vector.load %arg7[%c4_92, %c0_93, %c0_94] : memref<9x1x256xf32, #tpu.memory_space<vmem>>, vector<1x1x256xf32>
    %135 = vector.shape_cast %134 : vector<1x1x256xf32> to vector<1x256xf32>
    %136 = vector.broadcast %135 : vector<1x256xf32> to vector<32x256xf32>
    %137 = arith.mulf %96, %136 : vector<32x256xf32>
    %c4_95 = arith.constant 4 : index
    %c0_96 = arith.constant 0 : index
    %c0_97 = arith.constant 0 : index
    %138 = vector.load %arg3[%c4_95, %c0_96, %c0_97] : memref<9x32x32xf32, #tpu.memory_space<vmem>>, vector<1x32x32xf32>
    %139 = vector.shape_cast %138 : vector<1x32x32xf32> to vector<32x32xf32>
    %cst_98 = arith.constant dense<0.000000e+00> : vector<32x256xf32>
    %140 = tpu.matmul %139, %137, %cst_98 {dimension_numbers = #tpu.dot_dimension_numbers<[1], [0], [0], [1], [0, 0, 1, 1], [], []>} : vector<32x32xf32>, vector<32x256xf32>, vector<32x256xf32> -> vector<32x256xf32>
    %141 = arith.addf %133, %140 : vector<32x256xf32>
    %c255_i32_99 = arith.constant 255 : i32
    %142 = tpu.dynamic_rotate %96 by %c255_i32_99 dim 1 : vector<32x256xf32>, i32 -> vector<32x256xf32>
    %c5_100 = arith.constant 5 : index
    %c0_101 = arith.constant 0 : index
    %c0_102 = arith.constant 0 : index
    %143 = vector.load %arg7[%c5_100, %c0_101, %c0_102] : memref<9x1x256xf32, #tpu.memory_space<vmem>>, vector<1x1x256xf32>
    %144 = vector.shape_cast %143 : vector<1x1x256xf32> to vector<1x256xf32>
    %145 = vector.broadcast %144 : vector<1x256xf32> to vector<32x256xf32>
    %146 = arith.mulf %142, %145 : vector<32x256xf32>
    %c5_103 = arith.constant 5 : index
    %c0_104 = arith.constant 0 : index
    %c0_105 = arith.constant 0 : index
    %147 = vector.load %arg3[%c5_103, %c0_104, %c0_105] : memref<9x32x32xf32, #tpu.memory_space<vmem>>, vector<1x32x32xf32>
    %148 = vector.shape_cast %147 : vector<1x32x32xf32> to vector<32x32xf32>
    %cst_106 = arith.constant dense<0.000000e+00> : vector<32x256xf32>
    %149 = tpu.matmul %148, %146, %cst_106 {dimension_numbers = #tpu.dot_dimension_numbers<[1], [0], [0], [1], [0, 0, 1, 1], [], []>} : vector<32x32xf32>, vector<32x256xf32>, vector<32x256xf32> -> vector<32x256xf32>
    %150 = arith.addf %141, %149 : vector<32x256xf32>
    %c245_i32 = arith.constant 245 : i32
    %151 = tpu.dynamic_rotate %96 by %c245_i32 dim 1 : vector<32x256xf32>, i32 -> vector<32x256xf32>
    %c6_107 = arith.constant 6 : index
    %c0_108 = arith.constant 0 : index
    %c0_109 = arith.constant 0 : index
    %152 = vector.load %arg7[%c6_107, %c0_108, %c0_109] : memref<9x1x256xf32, #tpu.memory_space<vmem>>, vector<1x1x256xf32>
    %153 = vector.shape_cast %152 : vector<1x1x256xf32> to vector<1x256xf32>
    %154 = vector.broadcast %153 : vector<1x256xf32> to vector<32x256xf32>
    %155 = arith.mulf %151, %154 : vector<32x256xf32>
    %c6_110 = arith.constant 6 : index
    %c0_111 = arith.constant 0 : index
    %c0_112 = arith.constant 0 : index
    %156 = vector.load %arg3[%c6_110, %c0_111, %c0_112] : memref<9x32x32xf32, #tpu.memory_space<vmem>>, vector<1x32x32xf32>
    %157 = vector.shape_cast %156 : vector<1x32x32xf32> to vector<32x32xf32>
    %cst_113 = arith.constant dense<0.000000e+00> : vector<32x256xf32>
    %158 = tpu.matmul %157, %155, %cst_113 {dimension_numbers = #tpu.dot_dimension_numbers<[1], [0], [0], [1], [0, 0, 1, 1], [], []>} : vector<32x32xf32>, vector<32x256xf32>, vector<32x256xf32> -> vector<32x256xf32>
    %159 = arith.addf %150, %158 : vector<32x256xf32>
    %c244_i32 = arith.constant 244 : i32
    %160 = tpu.dynamic_rotate %96 by %c244_i32 dim 1 : vector<32x256xf32>, i32 -> vector<32x256xf32>
    %c7_114 = arith.constant 7 : index
    %c0_115 = arith.constant 0 : index
    %c0_116 = arith.constant 0 : index
    %161 = vector.load %arg7[%c7_114, %c0_115, %c0_116] : memref<9x1x256xf32, #tpu.memory_space<vmem>>, vector<1x1x256xf32>
    %162 = vector.shape_cast %161 : vector<1x1x256xf32> to vector<1x256xf32>
    %163 = vector.broadcast %162 : vector<1x256xf32> to vector<32x256xf32>
    %164 = arith.mulf %160, %163 : vector<32x256xf32>
    %c7_117 = arith.constant 7 : index
    %c0_118 = arith.constant 0 : index
    %c0_119 = arith.constant 0 : index
    %165 = vector.load %arg3[%c7_117, %c0_118, %c0_119] : memref<9x32x32xf32, #tpu.memory_space<vmem>>, vector<1x32x32xf32>
    %166 = vector.shape_cast %165 : vector<1x32x32xf32> to vector<32x32xf32>
    %cst_120 = arith.constant dense<0.000000e+00> : vector<32x256xf32>
    %167 = tpu.matmul %166, %164, %cst_120 {dimension_numbers = #tpu.dot_dimension_numbers<[1], [0], [0], [1], [0, 0, 1, 1], [], []>} : vector<32x32xf32>, vector<32x256xf32>, vector<32x256xf32> -> vector<32x256xf32>
    %168 = arith.addf %159, %167 : vector<32x256xf32>
    %c243_i32 = arith.constant 243 : i32
    %169 = tpu.dynamic_rotate %96 by %c243_i32 dim 1 : vector<32x256xf32>, i32 -> vector<32x256xf32>
    %c8_121 = arith.constant 8 : index
    %c0_122 = arith.constant 0 : index
    %c0_123 = arith.constant 0 : index
    %170 = vector.load %arg7[%c8_121, %c0_122, %c0_123] : memref<9x1x256xf32, #tpu.memory_space<vmem>>, vector<1x1x256xf32>
    %171 = vector.shape_cast %170 : vector<1x1x256xf32> to vector<1x256xf32>
    %172 = vector.broadcast %171 : vector<1x256xf32> to vector<32x256xf32>
    %173 = arith.mulf %169, %172 : vector<32x256xf32>
    %c8_124 = arith.constant 8 : index
    %c0_125 = arith.constant 0 : index
    %c0_126 = arith.constant 0 : index
    %174 = vector.load %arg3[%c8_124, %c0_125, %c0_126] : memref<9x32x32xf32, #tpu.memory_space<vmem>>, vector<1x32x32xf32>
    %175 = vector.shape_cast %174 : vector<1x32x32xf32> to vector<32x32xf32>
    %cst_127 = arith.constant dense<0.000000e+00> : vector<32x256xf32>
    %176 = tpu.matmul %175, %173, %cst_127 {dimension_numbers = #tpu.dot_dimension_numbers<[1], [0], [0], [1], [0, 0, 1, 1], [], []>} : vector<32x32xf32>, vector<32x256xf32>, vector<32x256xf32> -> vector<32x256xf32>
    %177 = arith.addf %168, %176 : vector<32x256xf32>
    %178 = arith.negf %177 : vector<32x256xf32>
    %179 = math.exp %178 : vector<32x256xf32>
    %cst_128 = arith.constant 1.000000e+00 : f32
    %180 = vector.broadcast %cst_128 : f32 to vector<32x256xf32>
    %181 = arith.addf %180, %179 : vector<32x256xf32>
    %182 = arith.divf %180, %181 : vector<32x256xf32>
    %183 = arith.mulf %177, %182 : vector<32x256xf32>
    %cst_129 = arith.constant 0.000000e+00 : f32
    %184 = vector.broadcast %cst_129 : f32 to vector<32x256xf32>
    %c13_i32_130 = arith.constant 13 : i32
    %185 = tpu.dynamic_rotate %183 by %c13_i32_130 dim 1 : vector<32x256xf32>, i32 -> vector<32x256xf32>
    %c0_131 = arith.constant 0 : index
    %c0_132 = arith.constant 0 : index
    %c0_133 = arith.constant 0 : index
    %186 = vector.load %arg7[%c0_131, %c0_132, %c0_133] : memref<9x1x256xf32, #tpu.memory_space<vmem>>, vector<1x1x256xf32>
    %187 = vector.shape_cast %186 : vector<1x1x256xf32> to vector<1x256xf32>
    %188 = vector.broadcast %187 : vector<1x256xf32> to vector<32x256xf32>
    %189 = arith.mulf %185, %188 : vector<32x256xf32>
    %c0_134 = arith.constant 0 : index
    %c0_135 = arith.constant 0 : index
    %c0_136 = arith.constant 0 : index
    %190 = vector.load %arg4[%c0_134, %c0_135, %c0_136] : memref<9x32x32xf32, #tpu.memory_space<vmem>>, vector<1x32x32xf32>
    %191 = vector.shape_cast %190 : vector<1x32x32xf32> to vector<32x32xf32>
    %cst_137 = arith.constant dense<0.000000e+00> : vector<32x256xf32>
    %192 = tpu.matmul %191, %189, %cst_137 {dimension_numbers = #tpu.dot_dimension_numbers<[1], [0], [0], [1], [0, 0, 1, 1], [], []>} : vector<32x32xf32>, vector<32x256xf32>, vector<32x256xf32> -> vector<32x256xf32>
    %193 = arith.addf %184, %192 : vector<32x256xf32>
    %c12_i32_138 = arith.constant 12 : i32
    %194 = tpu.dynamic_rotate %183 by %c12_i32_138 dim 1 : vector<32x256xf32>, i32 -> vector<32x256xf32>
    %c1_139 = arith.constant 1 : index
    %c0_140 = arith.constant 0 : index
    %c0_141 = arith.constant 0 : index
    %195 = vector.load %arg7[%c1_139, %c0_140, %c0_141] : memref<9x1x256xf32, #tpu.memory_space<vmem>>, vector<1x1x256xf32>
    %196 = vector.shape_cast %195 : vector<1x1x256xf32> to vector<1x256xf32>
    %197 = vector.broadcast %196 : vector<1x256xf32> to vector<32x256xf32>
    %198 = arith.mulf %194, %197 : vector<32x256xf32>
    %c1_142 = arith.constant 1 : index
    %c0_143 = arith.constant 0 : index
    %c0_144 = arith.constant 0 : index
    %199 = vector.load %arg4[%c1_142, %c0_143, %c0_144] : memref<9x32x32xf32, #tpu.memory_space<vmem>>, vector<1x32x32xf32>
    %200 = vector.shape_cast %199 : vector<1x32x32xf32> to vector<32x32xf32>
    %cst_145 = arith.constant dense<0.000000e+00> : vector<32x256xf32>
    %201 = tpu.matmul %200, %198, %cst_145 {dimension_numbers = #tpu.dot_dimension_numbers<[1], [0], [0], [1], [0, 0, 1, 1], [], []>} : vector<32x32xf32>, vector<32x256xf32>, vector<32x256xf32> -> vector<32x256xf32>
    %202 = arith.addf %193, %201 : vector<32x256xf32>
    %c11_i32_146 = arith.constant 11 : i32
    %203 = tpu.dynamic_rotate %183 by %c11_i32_146 dim 1 : vector<32x256xf32>, i32 -> vector<32x256xf32>
    %c2_147 = arith.constant 2 : index
    %c0_148 = arith.constant 0 : index
    %c0_149 = arith.constant 0 : index
    %204 = vector.load %arg7[%c2_147, %c0_148, %c0_149] : memref<9x1x256xf32, #tpu.memory_space<vmem>>, vector<1x1x256xf32>
    %205 = vector.shape_cast %204 : vector<1x1x256xf32> to vector<1x256xf32>
    %206 = vector.broadcast %205 : vector<1x256xf32> to vector<32x256xf32>
    %207 = arith.mulf %203, %206 : vector<32x256xf32>
    %c2_150 = arith.constant 2 : index
    %c0_151 = arith.constant 0 : index
    %c0_152 = arith.constant 0 : index
    %208 = vector.load %arg4[%c2_150, %c0_151, %c0_152] : memref<9x32x32xf32, #tpu.memory_space<vmem>>, vector<1x32x32xf32>
    %209 = vector.shape_cast %208 : vector<1x32x32xf32> to vector<32x32xf32>
    %cst_153 = arith.constant dense<0.000000e+00> : vector<32x256xf32>
    %210 = tpu.matmul %209, %207, %cst_153 {dimension_numbers = #tpu.dot_dimension_numbers<[1], [0], [0], [1], [0, 0, 1, 1], [], []>} : vector<32x32xf32>, vector<32x256xf32>, vector<32x256xf32> -> vector<32x256xf32>
    %211 = arith.addf %202, %210 : vector<32x256xf32>
    %c1_i32_154 = arith.constant 1 : i32
    %212 = tpu.dynamic_rotate %183 by %c1_i32_154 dim 1 : vector<32x256xf32>, i32 -> vector<32x256xf32>
    %c3_155 = arith.constant 3 : index
    %c0_156 = arith.constant 0 : index
    %c0_157 = arith.constant 0 : index
    %213 = vector.load %arg7[%c3_155, %c0_156, %c0_157] : memref<9x1x256xf32, #tpu.memory_space<vmem>>, vector<1x1x256xf32>
    %214 = vector.shape_cast %213 : vector<1x1x256xf32> to vector<1x256xf32>
    %215 = vector.broadcast %214 : vector<1x256xf32> to vector<32x256xf32>
    %216 = arith.mulf %212, %215 : vector<32x256xf32>
    %c3_158 = arith.constant 3 : index
    %c0_159 = arith.constant 0 : index
    %c0_160 = arith.constant 0 : index
    %217 = vector.load %arg4[%c3_158, %c0_159, %c0_160] : memref<9x32x32xf32, #tpu.memory_space<vmem>>, vector<1x32x32xf32>
    %218 = vector.shape_cast %217 : vector<1x32x32xf32> to vector<32x32xf32>
    %cst_161 = arith.constant dense<0.000000e+00> : vector<32x256xf32>
    %219 = tpu.matmul %218, %216, %cst_161 {dimension_numbers = #tpu.dot_dimension_numbers<[1], [0], [0], [1], [0, 0, 1, 1], [], []>} : vector<32x32xf32>, vector<32x256xf32>, vector<32x256xf32> -> vector<32x256xf32>
    %220 = arith.addf %211, %219 : vector<32x256xf32>
    %c4_162 = arith.constant 4 : index
    %c0_163 = arith.constant 0 : index
    %c0_164 = arith.constant 0 : index
    %221 = vector.load %arg7[%c4_162, %c0_163, %c0_164] : memref<9x1x256xf32, #tpu.memory_space<vmem>>, vector<1x1x256xf32>
    %222 = vector.shape_cast %221 : vector<1x1x256xf32> to vector<1x256xf32>
    %223 = vector.broadcast %222 : vector<1x256xf32> to vector<32x256xf32>
    %224 = arith.mulf %183, %223 : vector<32x256xf32>
    %c4_165 = arith.constant 4 : index
    %c0_166 = arith.constant 0 : index
    %c0_167 = arith.constant 0 : index
    %225 = vector.load %arg4[%c4_165, %c0_166, %c0_167] : memref<9x32x32xf32, #tpu.memory_space<vmem>>, vector<1x32x32xf32>
    %226 = vector.shape_cast %225 : vector<1x32x32xf32> to vector<32x32xf32>
    %cst_168 = arith.constant dense<0.000000e+00> : vector<32x256xf32>
    %227 = tpu.matmul %226, %224, %cst_168 {dimension_numbers = #tpu.dot_dimension_numbers<[1], [0], [0], [1], [0, 0, 1, 1], [], []>} : vector<32x32xf32>, vector<32x256xf32>, vector<32x256xf32> -> vector<32x256xf32>
    %228 = arith.addf %220, %227 : vector<32x256xf32>
    %c255_i32_169 = arith.constant 255 : i32
    %229 = tpu.dynamic_rotate %183 by %c255_i32_169 dim 1 : vector<32x256xf32>, i32 -> vector<32x256xf32>
    %c5_170 = arith.constant 5 : index
    %c0_171 = arith.constant 0 : index
    %c0_172 = arith.constant 0 : index
    %230 = vector.load %arg7[%c5_170, %c0_171, %c0_172] : memref<9x1x256xf32, #tpu.memory_space<vmem>>, vector<1x1x256xf32>
    %231 = vector.shape_cast %230 : vector<1x1x256xf32> to vector<1x256xf32>
    %232 = vector.broadcast %231 : vector<1x256xf32> to vector<32x256xf32>
    %233 = arith.mulf %229, %232 : vector<32x256xf32>
    %c5_173 = arith.constant 5 : index
    %c0_174 = arith.constant 0 : index
    %c0_175 = arith.constant 0 : index
    %234 = vector.load %arg4[%c5_173, %c0_174, %c0_175] : memref<9x32x32xf32, #tpu.memory_space<vmem>>, vector<1x32x32xf32>
    %235 = vector.shape_cast %234 : vector<1x32x32xf32> to vector<32x32xf32>
    %cst_176 = arith.constant dense<0.000000e+00> : vector<32x256xf32>
    %236 = tpu.matmul %235, %233, %cst_176 {dimension_numbers = #tpu.dot_dimension_numbers<[1], [0], [0], [1], [0, 0, 1, 1], [], []>} : vector<32x32xf32>, vector<32x256xf32>, vector<32x256xf32> -> vector<32x256xf32>
    %237 = arith.addf %228, %236 : vector<32x256xf32>
    %c245_i32_177 = arith.constant 245 : i32
    %238 = tpu.dynamic_rotate %183 by %c245_i32_177 dim 1 : vector<32x256xf32>, i32 -> vector<32x256xf32>
    %c6_178 = arith.constant 6 : index
    %c0_179 = arith.constant 0 : index
    %c0_180 = arith.constant 0 : index
    %239 = vector.load %arg7[%c6_178, %c0_179, %c0_180] : memref<9x1x256xf32, #tpu.memory_space<vmem>>, vector<1x1x256xf32>
    %240 = vector.shape_cast %239 : vector<1x1x256xf32> to vector<1x256xf32>
    %241 = vector.broadcast %240 : vector<1x256xf32> to vector<32x256xf32>
    %242 = arith.mulf %238, %241 : vector<32x256xf32>
    %c6_181 = arith.constant 6 : index
    %c0_182 = arith.constant 0 : index
    %c0_183 = arith.constant 0 : index
    %243 = vector.load %arg4[%c6_181, %c0_182, %c0_183] : memref<9x32x32xf32, #tpu.memory_space<vmem>>, vector<1x32x32xf32>
    %244 = vector.shape_cast %243 : vector<1x32x32xf32> to vector<32x32xf32>
    %cst_184 = arith.constant dense<0.000000e+00> : vector<32x256xf32>
    %245 = tpu.matmul %244, %242, %cst_184 {dimension_numbers = #tpu.dot_dimension_numbers<[1], [0], [0], [1], [0, 0, 1, 1], [], []>} : vector<32x32xf32>, vector<32x256xf32>, vector<32x256xf32> -> vector<32x256xf32>
    %246 = arith.addf %237, %245 : vector<32x256xf32>
    %c244_i32_185 = arith.constant 244 : i32
    %247 = tpu.dynamic_rotate %183 by %c244_i32_185 dim 1 : vector<32x256xf32>, i32 -> vector<32x256xf32>
    %c7_186 = arith.constant 7 : index
    %c0_187 = arith.constant 0 : index
    %c0_188 = arith.constant 0 : index
    %248 = vector.load %arg7[%c7_186, %c0_187, %c0_188] : memref<9x1x256xf32, #tpu.memory_space<vmem>>, vector<1x1x256xf32>
    %249 = vector.shape_cast %248 : vector<1x1x256xf32> to vector<1x256xf32>
    %250 = vector.broadcast %249 : vector<1x256xf32> to vector<32x256xf32>
    %251 = arith.mulf %247, %250 : vector<32x256xf32>
    %c7_189 = arith.constant 7 : index
    %c0_190 = arith.constant 0 : index
    %c0_191 = arith.constant 0 : index
    %252 = vector.load %arg4[%c7_189, %c0_190, %c0_191] : memref<9x32x32xf32, #tpu.memory_space<vmem>>, vector<1x32x32xf32>
    %253 = vector.shape_cast %252 : vector<1x32x32xf32> to vector<32x32xf32>
    %cst_192 = arith.constant dense<0.000000e+00> : vector<32x256xf32>
    %254 = tpu.matmul %253, %251, %cst_192 {dimension_numbers = #tpu.dot_dimension_numbers<[1], [0], [0], [1], [0, 0, 1, 1], [], []>} : vector<32x32xf32>, vector<32x256xf32>, vector<32x256xf32> -> vector<32x256xf32>
    %255 = arith.addf %246, %254 : vector<32x256xf32>
    %c243_i32_193 = arith.constant 243 : i32
    %256 = tpu.dynamic_rotate %183 by %c243_i32_193 dim 1 : vector<32x256xf32>, i32 -> vector<32x256xf32>
    %c8_194 = arith.constant 8 : index
    %c0_195 = arith.constant 0 : index
    %c0_196 = arith.constant 0 : index
    %257 = vector.load %arg7[%c8_194, %c0_195, %c0_196] : memref<9x1x256xf32, #tpu.memory_space<vmem>>, vector<1x1x256xf32>
    %258 = vector.shape_cast %257 : vector<1x1x256xf32> to vector<1x256xf32>
    %259 = vector.broadcast %258 : vector<1x256xf32> to vector<32x256xf32>
    %260 = arith.mulf %256, %259 : vector<32x256xf32>
    %c8_197 = arith.constant 8 : index
    %c0_198 = arith.constant 0 : index
    %c0_199 = arith.constant 0 : index
    %261 = vector.load %arg4[%c8_197, %c0_198, %c0_199] : memref<9x32x32xf32, #tpu.memory_space<vmem>>, vector<1x32x32xf32>
    %262 = vector.shape_cast %261 : vector<1x32x32xf32> to vector<32x32xf32>
    %cst_200 = arith.constant dense<0.000000e+00> : vector<32x256xf32>
    %263 = tpu.matmul %262, %260, %cst_200 {dimension_numbers = #tpu.dot_dimension_numbers<[1], [0], [0], [1], [0, 0, 1, 1], [], []>} : vector<32x32xf32>, vector<32x256xf32>, vector<32x256xf32> -> vector<32x256xf32>
    %264 = arith.addf %255, %263 : vector<32x256xf32>
    %265 = arith.negf %264 : vector<32x256xf32>
    %266 = math.exp %265 : vector<32x256xf32>
    %cst_201 = arith.constant 1.000000e+00 : f32
    %267 = vector.broadcast %cst_201 : f32 to vector<32x256xf32>
    %268 = arith.addf %267, %266 : vector<32x256xf32>
    %269 = arith.divf %267, %268 : vector<32x256xf32>
    %270 = arith.mulf %264, %269 : vector<32x256xf32>
    %cst_202 = arith.constant 0.000000e+00 : f32
    %271 = vector.broadcast %cst_202 : f32 to vector<32x256xf32>
    %c13_i32_203 = arith.constant 13 : i32
    %272 = tpu.dynamic_rotate %270 by %c13_i32_203 dim 1 : vector<32x256xf32>, i32 -> vector<32x256xf32>
    %c0_204 = arith.constant 0 : index
    %c0_205 = arith.constant 0 : index
    %c0_206 = arith.constant 0 : index
    %273 = vector.load %arg7[%c0_204, %c0_205, %c0_206] : memref<9x1x256xf32, #tpu.memory_space<vmem>>, vector<1x1x256xf32>
    %274 = vector.shape_cast %273 : vector<1x1x256xf32> to vector<1x256xf32>
    %275 = vector.broadcast %274 : vector<1x256xf32> to vector<32x256xf32>
    %276 = arith.mulf %272, %275 : vector<32x256xf32>
    %c0_207 = arith.constant 0 : index
    %c0_208 = arith.constant 0 : index
    %c0_209 = arith.constant 0 : index
    %277 = vector.load %arg5[%c0_207, %c0_208, %c0_209] : memref<9x32x32xf32, #tpu.memory_space<vmem>>, vector<1x32x32xf32>
    %278 = vector.shape_cast %277 : vector<1x32x32xf32> to vector<32x32xf32>
    %cst_210 = arith.constant dense<0.000000e+00> : vector<32x256xf32>
    %279 = tpu.matmul %278, %276, %cst_210 {dimension_numbers = #tpu.dot_dimension_numbers<[1], [0], [0], [1], [0, 0, 1, 1], [], []>} : vector<32x32xf32>, vector<32x256xf32>, vector<32x256xf32> -> vector<32x256xf32>
    %280 = arith.addf %271, %279 : vector<32x256xf32>
    %c12_i32_211 = arith.constant 12 : i32
    %281 = tpu.dynamic_rotate %270 by %c12_i32_211 dim 1 : vector<32x256xf32>, i32 -> vector<32x256xf32>
    %c1_212 = arith.constant 1 : index
    %c0_213 = arith.constant 0 : index
    %c0_214 = arith.constant 0 : index
    %282 = vector.load %arg7[%c1_212, %c0_213, %c0_214] : memref<9x1x256xf32, #tpu.memory_space<vmem>>, vector<1x1x256xf32>
    %283 = vector.shape_cast %282 : vector<1x1x256xf32> to vector<1x256xf32>
    %284 = vector.broadcast %283 : vector<1x256xf32> to vector<32x256xf32>
    %285 = arith.mulf %281, %284 : vector<32x256xf32>
    %c1_215 = arith.constant 1 : index
    %c0_216 = arith.constant 0 : index
    %c0_217 = arith.constant 0 : index
    %286 = vector.load %arg5[%c1_215, %c0_216, %c0_217] : memref<9x32x32xf32, #tpu.memory_space<vmem>>, vector<1x32x32xf32>
    %287 = vector.shape_cast %286 : vector<1x32x32xf32> to vector<32x32xf32>
    %cst_218 = arith.constant dense<0.000000e+00> : vector<32x256xf32>
    %288 = tpu.matmul %287, %285, %cst_218 {dimension_numbers = #tpu.dot_dimension_numbers<[1], [0], [0], [1], [0, 0, 1, 1], [], []>} : vector<32x32xf32>, vector<32x256xf32>, vector<32x256xf32> -> vector<32x256xf32>
    %289 = arith.addf %280, %288 : vector<32x256xf32>
    %c11_i32_219 = arith.constant 11 : i32
    %290 = tpu.dynamic_rotate %270 by %c11_i32_219 dim 1 : vector<32x256xf32>, i32 -> vector<32x256xf32>
    %c2_220 = arith.constant 2 : index
    %c0_221 = arith.constant 0 : index
    %c0_222 = arith.constant 0 : index
    %291 = vector.load %arg7[%c2_220, %c0_221, %c0_222] : memref<9x1x256xf32, #tpu.memory_space<vmem>>, vector<1x1x256xf32>
    %292 = vector.shape_cast %291 : vector<1x1x256xf32> to vector<1x256xf32>
    %293 = vector.broadcast %292 : vector<1x256xf32> to vector<32x256xf32>
    %294 = arith.mulf %290, %293 : vector<32x256xf32>
    %c2_223 = arith.constant 2 : index
    %c0_224 = arith.constant 0 : index
    %c0_225 = arith.constant 0 : index
    %295 = vector.load %arg5[%c2_223, %c0_224, %c0_225] : memref<9x32x32xf32, #tpu.memory_space<vmem>>, vector<1x32x32xf32>
    %296 = vector.shape_cast %295 : vector<1x32x32xf32> to vector<32x32xf32>
    %cst_226 = arith.constant dense<0.000000e+00> : vector<32x256xf32>
    %297 = tpu.matmul %296, %294, %cst_226 {dimension_numbers = #tpu.dot_dimension_numbers<[1], [0], [0], [1], [0, 0, 1, 1], [], []>} : vector<32x32xf32>, vector<32x256xf32>, vector<32x256xf32> -> vector<32x256xf32>
    %298 = arith.addf %289, %297 : vector<32x256xf32>
    %c1_i32_227 = arith.constant 1 : i32
    %299 = tpu.dynamic_rotate %270 by %c1_i32_227 dim 1 : vector<32x256xf32>, i32 -> vector<32x256xf32>
    %c3_228 = arith.constant 3 : index
    %c0_229 = arith.constant 0 : index
    %c0_230 = arith.constant 0 : index
    %300 = vector.load %arg7[%c3_228, %c0_229, %c0_230] : memref<9x1x256xf32, #tpu.memory_space<vmem>>, vector<1x1x256xf32>
    %301 = vector.shape_cast %300 : vector<1x1x256xf32> to vector<1x256xf32>
    %302 = vector.broadcast %301 : vector<1x256xf32> to vector<32x256xf32>
    %303 = arith.mulf %299, %302 : vector<32x256xf32>
    %c3_231 = arith.constant 3 : index
    %c0_232 = arith.constant 0 : index
    %c0_233 = arith.constant 0 : index
    %304 = vector.load %arg5[%c3_231, %c0_232, %c0_233] : memref<9x32x32xf32, #tpu.memory_space<vmem>>, vector<1x32x32xf32>
    %305 = vector.shape_cast %304 : vector<1x32x32xf32> to vector<32x32xf32>
    %cst_234 = arith.constant dense<0.000000e+00> : vector<32x256xf32>
    %306 = tpu.matmul %305, %303, %cst_234 {dimension_numbers = #tpu.dot_dimension_numbers<[1], [0], [0], [1], [0, 0, 1, 1], [], []>} : vector<32x32xf32>, vector<32x256xf32>, vector<32x256xf32> -> vector<32x256xf32>
    %307 = arith.addf %298, %306 : vector<32x256xf32>
    %c4_235 = arith.constant 4 : index
    %c0_236 = arith.constant 0 : index
    %c0_237 = arith.constant 0 : index
    %308 = vector.load %arg7[%c4_235, %c0_236, %c0_237] : memref<9x1x256xf32, #tpu.memory_space<vmem>>, vector<1x1x256xf32>
    %309 = vector.shape_cast %308 : vector<1x1x256xf32> to vector<1x256xf32>
    %310 = vector.broadcast %309 : vector<1x256xf32> to vector<32x256xf32>
    %311 = arith.mulf %270, %310 : vector<32x256xf32>
    %c4_238 = arith.constant 4 : index
    %c0_239 = arith.constant 0 : index
    %c0_240 = arith.constant 0 : index
    %312 = vector.load %arg5[%c4_238, %c0_239, %c0_240] : memref<9x32x32xf32, #tpu.memory_space<vmem>>, vector<1x32x32xf32>
    %313 = vector.shape_cast %312 : vector<1x32x32xf32> to vector<32x32xf32>
    %cst_241 = arith.constant dense<0.000000e+00> : vector<32x256xf32>
    %314 = tpu.matmul %313, %311, %cst_241 {dimension_numbers = #tpu.dot_dimension_numbers<[1], [0], [0], [1], [0, 0, 1, 1], [], []>} : vector<32x32xf32>, vector<32x256xf32>, vector<32x256xf32> -> vector<32x256xf32>
    %315 = arith.addf %307, %314 : vector<32x256xf32>
    %c255_i32_242 = arith.constant 255 : i32
    %316 = tpu.dynamic_rotate %270 by %c255_i32_242 dim 1 : vector<32x256xf32>, i32 -> vector<32x256xf32>
    %c5_243 = arith.constant 5 : index
    %c0_244 = arith.constant 0 : index
    %c0_245 = arith.constant 0 : index
    %317 = vector.load %arg7[%c5_243, %c0_244, %c0_245] : memref<9x1x256xf32, #tpu.memory_space<vmem>>, vector<1x1x256xf32>
    %318 = vector.shape_cast %317 : vector<1x1x256xf32> to vector<1x256xf32>
    %319 = vector.broadcast %318 : vector<1x256xf32> to vector<32x256xf32>
    %320 = arith.mulf %316, %319 : vector<32x256xf32>
    %c5_246 = arith.constant 5 : index
    %c0_247 = arith.constant 0 : index
    %c0_248 = arith.constant 0 : index
    %321 = vector.load %arg5[%c5_246, %c0_247, %c0_248] : memref<9x32x32xf32, #tpu.memory_space<vmem>>, vector<1x32x32xf32>
    %322 = vector.shape_cast %321 : vector<1x32x32xf32> to vector<32x32xf32>
    %cst_249 = arith.constant dense<0.000000e+00> : vector<32x256xf32>
    %323 = tpu.matmul %322, %320, %cst_249 {dimension_numbers = #tpu.dot_dimension_numbers<[1], [0], [0], [1], [0, 0, 1, 1], [], []>} : vector<32x32xf32>, vector<32x256xf32>, vector<32x256xf32> -> vector<32x256xf32>
    %324 = arith.addf %315, %323 : vector<32x256xf32>
    %c245_i32_250 = arith.constant 245 : i32
    %325 = tpu.dynamic_rotate %270 by %c245_i32_250 dim 1 : vector<32x256xf32>, i32 -> vector<32x256xf32>
    %c6_251 = arith.constant 6 : index
    %c0_252 = arith.constant 0 : index
    %c0_253 = arith.constant 0 : index
    %326 = vector.load %arg7[%c6_251, %c0_252, %c0_253] : memref<9x1x256xf32, #tpu.memory_space<vmem>>, vector<1x1x256xf32>
    %327 = vector.shape_cast %326 : vector<1x1x256xf32> to vector<1x256xf32>
    %328 = vector.broadcast %327 : vector<1x256xf32> to vector<32x256xf32>
    %329 = arith.mulf %325, %328 : vector<32x256xf32>
    %c6_254 = arith.constant 6 : index
    %c0_255 = arith.constant 0 : index
    %c0_256 = arith.constant 0 : index
    %330 = vector.load %arg5[%c6_254, %c0_255, %c0_256] : memref<9x32x32xf32, #tpu.memory_space<vmem>>, vector<1x32x32xf32>
    %331 = vector.shape_cast %330 : vector<1x32x32xf32> to vector<32x32xf32>
    %cst_257 = arith.constant dense<0.000000e+00> : vector<32x256xf32>
    %332 = tpu.matmul %331, %329, %cst_257 {dimension_numbers = #tpu.dot_dimension_numbers<[1], [0], [0], [1], [0, 0, 1, 1], [], []>} : vector<32x32xf32>, vector<32x256xf32>, vector<32x256xf32> -> vector<32x256xf32>
    %333 = arith.addf %324, %332 : vector<32x256xf32>
    %c244_i32_258 = arith.constant 244 : i32
    %334 = tpu.dynamic_rotate %270 by %c244_i32_258 dim 1 : vector<32x256xf32>, i32 -> vector<32x256xf32>
    %c7_259 = arith.constant 7 : index
    %c0_260 = arith.constant 0 : index
    %c0_261 = arith.constant 0 : index
    %335 = vector.load %arg7[%c7_259, %c0_260, %c0_261] : memref<9x1x256xf32, #tpu.memory_space<vmem>>, vector<1x1x256xf32>
    %336 = vector.shape_cast %335 : vector<1x1x256xf32> to vector<1x256xf32>
    %337 = vector.broadcast %336 : vector<1x256xf32> to vector<32x256xf32>
    %338 = arith.mulf %334, %337 : vector<32x256xf32>
    %c7_262 = arith.constant 7 : index
    %c0_263 = arith.constant 0 : index
    %c0_264 = arith.constant 0 : index
    %339 = vector.load %arg5[%c7_262, %c0_263, %c0_264] : memref<9x32x32xf32, #tpu.memory_space<vmem>>, vector<1x32x32xf32>
    %340 = vector.shape_cast %339 : vector<1x32x32xf32> to vector<32x32xf32>
    %cst_265 = arith.constant dense<0.000000e+00> : vector<32x256xf32>
    %341 = tpu.matmul %340, %338, %cst_265 {dimension_numbers = #tpu.dot_dimension_numbers<[1], [0], [0], [1], [0, 0, 1, 1], [], []>} : vector<32x32xf32>, vector<32x256xf32>, vector<32x256xf32> -> vector<32x256xf32>
    %342 = arith.addf %333, %341 : vector<32x256xf32>
    %c243_i32_266 = arith.constant 243 : i32
    %343 = tpu.dynamic_rotate %270 by %c243_i32_266 dim 1 : vector<32x256xf32>, i32 -> vector<32x256xf32>
    %c8_267 = arith.constant 8 : index
    %c0_268 = arith.constant 0 : index
    %c0_269 = arith.constant 0 : index
    %344 = vector.load %arg7[%c8_267, %c0_268, %c0_269] : memref<9x1x256xf32, #tpu.memory_space<vmem>>, vector<1x1x256xf32>
    %345 = vector.shape_cast %344 : vector<1x1x256xf32> to vector<1x256xf32>
    %346 = vector.broadcast %345 : vector<1x256xf32> to vector<32x256xf32>
    %347 = arith.mulf %343, %346 : vector<32x256xf32>
    %c8_270 = arith.constant 8 : index
    %c0_271 = arith.constant 0 : index
    %c0_272 = arith.constant 0 : index
    %348 = vector.load %arg5[%c8_270, %c0_271, %c0_272] : memref<9x32x32xf32, #tpu.memory_space<vmem>>, vector<1x32x32xf32>
    %349 = vector.shape_cast %348 : vector<1x32x32xf32> to vector<32x32xf32>
    %cst_273 = arith.constant dense<0.000000e+00> : vector<32x256xf32>
    %350 = tpu.matmul %349, %347, %cst_273 {dimension_numbers = #tpu.dot_dimension_numbers<[1], [0], [0], [1], [0, 0, 1, 1], [], []>} : vector<32x32xf32>, vector<32x256xf32>, vector<32x256xf32> -> vector<32x256xf32>
    %351 = arith.addf %342, %350 : vector<32x256xf32>
    %352 = arith.negf %351 : vector<32x256xf32>
    %353 = math.exp %352 : vector<32x256xf32>
    %cst_274 = arith.constant 1.000000e+00 : f32
    %354 = vector.broadcast %cst_274 : f32 to vector<32x256xf32>
    %355 = arith.addf %354, %353 : vector<32x256xf32>
    %356 = arith.divf %354, %355 : vector<32x256xf32>
    %357 = arith.mulf %351, %356 : vector<32x256xf32>
    %358 = arith.addf %183, %270 : vector<32x256xf32>
    %359 = arith.addf %358, %357 : vector<32x256xf32>
    %c0_275 = arith.constant 0 : index
    %c0_276 = arith.constant 0 : index
    %360 = vector.load %arg9[%c0_275, %c0_276] : memref<256x64xf32, #tpu.memory_space<vmem>>, vector<256x64xf32>
    %cst_277 = arith.constant dense<0.000000e+00> : vector<32x64xf32>
    %361 = tpu.matmul %359, %360, %cst_277 {dimension_numbers = #tpu.dot_dimension_numbers<[1], [0], [0], [1], [0, 0, 1, 1], [], []>} : vector<32x256xf32>, vector<256x64xf32>, vector<32x64xf32> -> vector<32x64xf32>
    %362 = vector.shape_cast %361 : vector<32x64xf32> to vector<1x32x64xf32>
    %c0_278 = arith.constant 0 : index
    %c0_279 = arith.constant 0 : index
    %c0_280 = arith.constant 0 : index
    %363 = vector.load %arg10[%c0_278, %c0_279, %c0_280] : memref<1x32x64xf32, #tpu.memory_space<vmem>>, vector<1x32x64xf32>
    tpu.vector_store %arg10[%c0_278, %c0_279, %c0_280], %362 {strides = array<i32>} : memref<1x32x64xf32, #tpu.memory_space<vmem>>, vector<1x32x64xf32>,
    return
  }
  func.func @transform_0(%arg0: i32) -> (i32, i32, i32) {
    %c0_i32 = arith.constant 0 : i32
    %c0_i32_0 = arith.constant 0 : i32
    %c0_i32_1 = arith.constant 0 : i32
    return %arg0, %c0_i32, %c0_i32_0 : i32, i32, i32
  }
  func.func @transform_1(%arg0: i32) -> (i32, i32, i32) {
    %c0_i32 = arith.constant 0 : i32
    %c0_i32_0 = arith.constant 0 : i32
    %c0_i32_1 = arith.constant 0 : i32
    %c0_i32_2 = arith.constant 0 : i32
    return %c0_i32, %c0_i32_0, %c0_i32_1 : i32, i32, i32
  }
  func.func @transform_2(%arg0: i32) -> (i32, i32, i32) {
    %c0_i32 = arith.constant 0 : i32
    %c0_i32_0 = arith.constant 0 : i32
    %c0_i32_1 = arith.constant 0 : i32
    %c0_i32_2 = arith.constant 0 : i32
    return %c0_i32, %c0_i32_0, %c0_i32_1 : i32, i32, i32
  }
  func.func @transform_3(%arg0: i32) -> (i32, i32, i32) {
    %c0_i32 = arith.constant 0 : i32
    %c0_i32_0 = arith.constant 0 : i32
    %c0_i32_1 = arith.constant 0 : i32
    %c0_i32_2 = arith.constant 0 : i32
    return %c0_i32, %c0_i32_0, %c0_i32_1 : i32, i32, i32
  }
  func.func @transform_4(%arg0: i32) -> (i32, i32, i32) {
    %c0_i32 = arith.constant 0 : i32
    %c0_i32_0 = arith.constant 0 : i32
    %c0_i32_1 = arith.constant 0 : i32
    %c0_i32_2 = arith.constant 0 : i32
    return %c0_i32, %c0_i32_0, %c0_i32_1 : i32, i32, i32
  }
  func.func @transform_5(%arg0: i32) -> (i32, i32, i32) {
    %c0_i32 = arith.constant 0 : i32
    %c0_i32_0 = arith.constant 0 : i32
    %c0_i32_1 = arith.constant 0 : i32
    %c0_i32_2 = arith.constant 0 : i32
    return %c0_i32, %c0_i32_0, %c0_i32_1 : i32, i32, i32
  }
  func.func @transform_6(%arg0: i32) -> (i32, i32, i32) {
    %c0_i32 = arith.constant 0 : i32
    %c0_i32_0 = arith.constant 0 : i32
    %c0_i32_1 = arith.constant 0 : i32
    %c0_i32_2 = arith.constant 0 : i32
    return %c0_i32, %c0_i32_0, %c0_i32_1 : i32, i32, i32
  }
  func.func @transform_7(%arg0: i32) -> (i32, i32) {
    %c0_i32 = arith.constant 0 : i32
    %c0_i32_0 = arith.constant 0 : i32
    %c0_i32_1 = arith.constant 0 : i32
    return %c0_i32, %c0_i32_0 : i32, i32
  }
  func.func @transform_8(%arg0: i32) -> (i32, i32) {
    %c0_i32 = arith.constant 0 : i32
    %c0_i32_0 = arith.constant 0 : i32
    %c0_i32_1 = arith.constant 0 : i32
    return %c0_i32, %c0_i32_0 : i32, i32
  }
  func.func @transform_9(%arg0: i32) -> (i32, i32, i32) {
    %c0_i32 = arith.constant 0 : i32
    %c0_i32_0 = arith.constant 0 : i32
    %c0_i32_1 = arith.constant 0 : i32
    return %arg0, %c0_i32, %c0_i32_0 : i32, i32, i32
  }
}

</mosaic_0001>

<bundles_post_ra>
// kernel: interp2d_encoder.1
= control target key start
LH: loop header
LB: loop body
LE: loop exit
PB: predicated region body
PF: predicated region fallthrough
CT: control target
= control target key end

     0   :  { %14 = vsyncpa [#allocation3], 0  ;;  %s9759_s0 = inlined_call_operand.vmem [shape: f32[2,3,256], index: 0, kind: input, shape index: {}]   ;;  %s9760_s1 = inlined_call_operand.vmem [shape: f32[9,32,3], index: 1, kind: input, shape index: {}]   ;;  %s9761_s2 = inlined_call_operand.vmem [shape: f32[9,32,32], index: 2, kind: input, shape index: {}]   ;;  %s9762_s3 = inlined_call_operand.hbm [shape: f32[9,32,32], index: 3, kind: input, shape index: {}]   ;;  %s9763_s4 = inlined_call_operand.hbm [shape: f32[9,32,32], index: 4, kind: input, shape index: {}]   ;;  %s9764_s5 = inlined_call_operand.vmem [shape: f32[9,1,256], index: 5, kind: input, shape index: {}]   ;;  %s9765_s6 = inlined_call_operand.hbm [shape: f32[9,1,256], index: 6, kind: input, shape index: {}]   ;;  %s9766_s7 = inlined_call_operand.vmem [shape: f32[256,256], index: 7, kind: input, shape index: {}]   ;;  %s9767_s8 = inlined_call_operand.vmem [shape: f32[256,64], index: 8, kind: input, shape index: {}]   ;;  %s9768_s9 = inlined_call_operand.vmem [shape: f32[2,32,64], index: 9, kind: output, shape index: {}]  }
   0x1   :  { %15 = vsyncpa [#allocation5], 0  ;;  %s7536_s30 = smov 0  }
   0x2 LB: > { %s7542_s10 = sadd.s32 4294967295, %s7462_s30   ;;  %p6238_p0 = scmp.ge.s32.totalorder %s7462_s30, 1  ;;  %s7462_s30 = sphi %s7536_s30, %s21_s30  }
   0x3   : > { %p246_p1 = scmp.lt.s32.totalorder %s7462_s30, 3  ;;  %p7167_p2 = scmp.eq.s32.totalorder %s7542_s10, 0 }
   0x4   : > { %s7464_s12 = smov [#allocation4]   ;;  %s7465_s14 = smov [#allocation2]  }
   0x5   : > { %p7547_p3 = pnand %p6238_p0, %p246_p1  ;;  %s277_s13 = sshll.u32 %s7464_s12, 4  ;;  %s7551_s13 = int_to_ptr.vmem [resolvable:$true] %s277_s13 }
   0x6   : > { %s264_s15 = sshll.u32 %s7465_s14, 4  ;;  %s7466_s17 = smov [#allocation6]   ;;  %s7555_s15 = int_to_ptr.vmem [resolvable:$true] %s264_s15 }
   0x7   : > { %p7157_p4 = pneg %p7547_p3  ;;  %s293_s18 = sshll.u32 %s7466_s17, 4  ;;  %s7563_s18 = int_to_ptr.vmem [resolvable:$true] %s293_s18 }
   0x8   : > { %s7364_s21 = scalar_lea.hbm %s9763_s4, 4608 }
   0x9   : > { %p7559_p5 = pnand %p7167_p2, %p7157_p4  ;;  %p7365_p6 = scmp.ne.s32.totalorder %s9763_s4, %s7364_s21 }
   0xa   : > { %p7371_p10 = scmp.lt.u32.totalorder %s7364_s21, %s9763_s4 }
   0xb   : > { %p7573_p7 = pneg %p7559_p5 }
   0xd   : > { %p7367_p8 = pnand %p7573_p7, %p7365_p6 }
   0xf   : > { %p7368_p9 = pneg %p7367_p8 }
  0x11   : > { %p7373_p11 = pnand %p7371_p10, %p7368_p9 }
  0x13   : > { %7376 = shalt.err (!%p7373_p11)
}
  0x14   : > { %s7377_s27 = scalar_lea.vmem %s7551_s13, 4608  ;;  %p7385_p1 = scmp.lt.s32.totalorder %s7551_s13, %s7551_s13 }
  0x15   : > { %p7378_p12 = scmp.ne.s32.totalorder %s7551_s13, %s7377_s27  ;;  %p7386_p4 = scmp.lt.s32.totalorder %s7377_s27, %s7377_s27 }
  0x17   : > { %p7380_p13 = pnand %p7378_p12, %p7573_p7  ;;  %p7387_p6 = por %p7386_p4, %p7385_p1 }
  0x19   : > { %p7381_p0 = pneg %p7380_p13 }
  0x1b   : > { %p7388_p8 = pnand %p7387_p6, %p7381_p0 }
  0x1d   : > { %7391 = shalt.err (!%p7388_p8)
}
  0x1e   : > { %s7467_s28 = smov 128   ;;  %s7468_s29 = smov 8  }
  0x1f   : > { %7163 = dma.hbm_to_vmem [thread:$0]  (!%p7559_p5), %s9763_s4, 4608, %s7551_s13, [#allocation5], %s7467_s28, %s7467_s28, %s7468_s29  }
  0x20   : > { %s7392_s20 = scalar_lea.hbm %s9762_s3, 4608 }
  0x21   : > { %p7393_p9 = scmp.ne.s32.totalorder %s9762_s3, %s7392_s20  ;;  %p7399_p12 = scmp.lt.u32.totalorder %s7392_s20, %s9762_s3 }
  0x23   : > { %p7395_p10 = pnand %p7393_p9, %p7573_p7 }
  0x25   : > { %p7396_p11 = pneg %p7395_p10 }
  0x27   : > { %p7401_p13 = pnand %p7399_p12, %p7396_p11 }
  0x29   : > { %7404 = shalt.err (!%p7401_p13)
}
  0x2a   : > { %s7405_s13 = scalar_lea.vmem %s7555_s15, 4608  ;;  %p7413_p6 = scmp.lt.s32.totalorder %s7555_s15, %s7555_s15 }
  0x2b   : > { %p7406_p0 = scmp.ne.s32.totalorder %s7555_s15, %s7405_s13  ;;  %p7414_p8 = scmp.lt.s32.totalorder %s7405_s13, %s7405_s13 }
  0x2d   : > { %p7408_p1 = pnand %p7406_p0, %p7573_p7  ;;  %p7415_p9 = por %p7414_p8, %p7413_p6 }
  0x2f   : > { %p7409_p4 = pneg %p7408_p1 }
  0x31   : > { %p7416_p10 = pnand %p7415_p9, %p7409_p4 }
  0x33   : > { %7419 = shalt.err (!%p7416_p10)
}
  0x34   : > { %7160 = dma.hbm_to_vmem [thread:$0]  (!%p7559_p5), %s9762_s3, 4608, %s7555_s15, [#allocation3], %s7467_s28, %s7467_s28, %s7468_s29  }
  0x35   : > { %s7420_s17 = scalar_lea.hbm %s9765_s6, 288 }
  0x36   : > { %p7421_p11 = scmp.ne.s32.totalorder %s9765_s6, %s7420_s17  ;;  %p7427_p0 = scmp.lt.u32.totalorder %s7420_s17, %s9765_s6 }
  0x38   : > { %p7423_p12 = pnand %p7421_p11, %p7573_p7 }
  0x3a   : > { %p7424_p13 = pneg %p7423_p12 }
  0x3c   : > { %p7429_p1 = pnand %p7427_p0, %p7424_p13 }
  0x3e   : > { %7432 = shalt.err (!%p7429_p1)
}
  0x3f   : > { %s7433_s15 = scalar_lea.vmem %s7563_s18, 288  ;;  %p7441_p9 = scmp.lt.s32.totalorder %s7563_s18, %s7563_s18 }
  0x40   : > { %p7434_p4 = scmp.ne.s32.totalorder %s7563_s18, %s7433_s15  ;;  %p7442_p10 = scmp.lt.s32.totalorder %s7433_s15, %s7433_s15 }
  0x42   : > { %p7436_p6 = pnand %p7434_p4, %p7573_p7  ;;  %p7443_p11 = por %p7442_p10, %p7441_p9 }
  0x44   : > { %p7437_p8 = pneg %p7436_p6 }
  0x46   : > { %p7444_p12 = pnand %p7443_p11, %p7437_p8 }
  0x48   : > { %7447 = shalt.err (!%p7444_p12)
}
  0x49   : > { %s7469_s28 = smov 32   ;;  %s7470_s29 = smov 2  }
  0x4a   : > { %7166 = dma.hbm_to_vmem [thread:$0]  (!%p7559_p5), %s9765_s6, 288, %s7563_s18, [#allocation5], %s7469_s28, %s7469_s28, %s7470_s29  }
  0x4b   : > { %323 = sbr.rel (%p7547_p3) target bundleno = 2573 (0xa0d), region = 56 }
  0x52   : > { %7453 = dma.done.wait (%p7167_p2), [#allocation3], 4608  }
  0x53   : > { %7455 = vsyncadd (%p7167_p2), [#allocation3], 4294962688 }
  0x54   : > { %7457 = dma.done.wait (%p7167_p2), [#allocation5], 4896  }
  0x55   : > { %7459 = vsyncadd (%p7167_p2), [#allocation5], 4294962400  ;;  %p367_p7 = scmp.lt.s32.totalorder %s7542_s10, 1  ;;  %v7471_v0 = vmov 0.0   ;;  %s7472_s13 = smov 16   ;;  %v385_v3 = vlaneseq  ;;  %vm448_vm2 = vcmask 1042432  }
  0x56   : > { %519 = vmatprep.mubr.f32.mxu0 %v7471_v0  ;;  %s7473_s26 = smov 17   ;;  %s7474_s27 = smov 15   ;;  %v390_v8 = vld [vmem:[%s9764_s5] sm:$0x3]  ;;  %v6251_v9 = vld [vmem:[%s9764_s5 + $0x2] sm:$0x3] }
  0x57   : > { %s9773_s10 = smov (!%p367_p7, %s7542_s10), 1  ;;  %s7475_s12 = smov 1   ;;  %v393_v4 = vshrl.u32 %v385_v3, 7  ;;  %v7675_v5 = vand.u32 127, %v385_v3  ;;  %v6268_v16 = vld [vmem:[%s9764_s5 + $0x4] sm:$0x3] }
  0x58   : > { %s6527_s11 = sshll.u32 %s9773_s10, 3  ;;  %s7476_s14 = smov 127   ;;  %v6252_v28 = vld [vmem:[%s9760_s1 + $0x20] sm:$0xff]  ;;  %vm435_vm4 = vcmask 23552   ;;  %v6253_v33 = vld [vmem:[%s9760_s1 + $0x28] sm:$0xff]  ;;  %v6254_v34 = vld [vmem:[%s9760_s1 + $0x30] sm:$0xff] }
  0x59   : > { %s371_s24 = scalar_lea.vmem %s9759_s0, %s6527_s11  ;;  %s7477_s17 = smov 113   ;;  %v7677_v6 = vsub.s32 0, %v393_v4  ;;  %v7679_v7 = vsub.s32 1, %v393_v4  ;;  %vm412_vm0 = vcmp.lt.s32.totalorder %v7675_v5, 16  ;;  %vm387_vm1 = vcmp.lt.s32.totalorder %v7675_v5, 17  ;;  %v6255_v38 = vld [vmem:[%s9760_s1 + $0x38] sm:$0xff] }
  0x5a   : > { %v7659_v1 = vld [vmem:[%s371_s24] sm:$0x77]  ;;  %s7478_s19 = smov 112   ;;  %s7479_s20 = smov 111   ;;  %vm655_vm3 = vcmp.lt.s32.totalorder %v7675_v5, 15  ;;  %vm797_vm5 = vcmp.lt.s32.totalorder %v7675_v5, 1 }
  0x5b   : > { %408 = vrot.lane.b32.xlu0 %v7659_v1, %s7472_s13  ;;  %381 = vrot.lane.b32.xlu1 %v7659_v1, %s7473_s26  ;;  %v379_v2 = vcombine.high %v7659_v1, %v7659_v1  ;;  %v399_v12 = vrot.slane %v390_v8, %v7679_v7  ;;  %v421_v13 = vrot.slane %v6251_v9, %v7677_v6  ;;  %v7721_v35 = vld [vmem:[%s9764_s5 + $0x6] sm:$0x3]  ;;  %v1694_v44 = vld [vmem:[%s9766_s7 + $0x8] sm:$0xff]  ;;  %vm1073_vm6 = vcmp.lt.s32.totalorder %v7675_v5, 127  ;;  %s7483_s21 = smov 116   ;;  %s7484_s22 = smov 12  }
  0x5c   : > { %v425_v14 = vrot.slane %v6251_v9, %v7679_v7  ;;  %v395_v15 = vrot.slane %v390_v8, %v7677_v6  ;;  %v668_v26 = vrot.slane %v6268_v16, %v7679_v7  ;;  %v664_v39 = vrot.slane %v6268_v16, %v7677_v6  ;;  %v404_v42 = vld [vmem:[%s9760_s1] sm:$0xff]  ;;  %v1696_v45 = vld [vmem:[%s9766_s7 + $0x18] sm:$0xff]  ;;  %v1695_v49 = vld [vmem:[%s9766_s7 + $0x10] sm:$0xff]  ;;  %s7485_s15 = smov 115  }
  0x5d   : > { %v810_v41 = vrot.slane %v7721_v35, %v7679_v7  ;;  %v1693_v46 = vld [vmem:[%s9766_s7] sm:$0xff]  ;;  %v6573_v48 = vpack.c.bf16 %v1696_v45, %v1694_v44  ;;  %v1698_v50 = vld [vmem:[%s9766_s7 + $0x28] sm:$0xff]  ;;  %v1700_v51 = vld [vmem:[%s9766_s7 + $0x38] sm:$0xff]  ;;  %vm1215_vm7 = vcmp.lt.s32.totalorder %v7675_v5, 113  ;;  %vm1357_vm8 = vcmp.lt.s32.totalorder %v7675_v5, 112 }
  0x5e   : > { %v6575_v53 = vpack.c.bf16 %v1695_v49, %v1693_v46  ;;  %v6577_v54 = vpack.c.bf16 %v1700_v51, %v1698_v50  ;;  %v1697_v55 = vld [vmem:[%s9766_s7 + $0x20] sm:$0xff]  ;;  %v1699_v56 = vld [vmem:[%s9766_s7 + $0x30] sm:$0xff]  ;;  %v1702_v57 = vld [vmem:[%s9766_s7 + $0x48] sm:$0xff]  ;;  %vm1499_vm9 = vcmp.lt.s32.totalorder %v7675_v5, 111  ;;  %vm1918_vm10 = vcmp.lt.s32.totalorder %v7675_v5, 13 }
  0x5f   : > { %410 = vrot.lane.b32.xlu0 %v379_v2, %s7472_s13  ;;  %383 = vrot.lane.b32.xlu1 %v379_v2, %s7473_s26  ;;  %v6290_v58 = vld [vmem:[%s9764_s5 + $0x8] sm:$0x3]  ;;  %v1704_v59 = vld [vmem:[%s9766_s7 + $0x58] sm:$0xff]  ;;  %v6579_v60 = vpack.c.bf16 %v1699_v56, %v1697_v55  ;;  %vm2221_vm11 = vcmp.lt.s32.totalorder %v7675_v5, 11  ;;  %vm2002_vm12 = vcmask 261120   ;;  %vm2834_vm13 = vcmp.lt.s32.totalorder %v7675_v5, 117 }
  0x60   : > { %6574 = vmatprep.subr.bf16.mxu1 %v6573_v48  ;;  %v405_v61 = vld [vmem:[%s9760_s1 + $0x8] sm:$0xff]  ;;  %v6581_v62 = vpack.c.bf16 %v1704_v59, %v1702_v57  ;;  %v1701_v63 = vld [vmem:[%s9766_s7 + $0x40] sm:$0xff]  ;;  %v941_v3 = vrot.slane %v6290_v58, %v7677_v6  ;;  %v945_v4 = vrot.slane %v6290_v58, %v7679_v7  ;;  %v1708_v9 = vld [vmem:[%s9766_s7 + $0x78] sm:$0xff]  ;;  %vm1967_vm14 = vcmp.lt.s32.totalorder %v7675_v5, 12 }
  0x61   : > { %6576 = vmatpush1.bf16.msra.mxu1 %v6575_v53  ;;  %v1706_v8 = vld [vmem:[%s9766_s7 + $0x68] sm:$0xff]  ;;  %v6271_v44 = vld [vmem:[%s9760_s1 + $0x50] sm:$0xff]  ;;  %v1721_v46 = vld [vmem:[%s9766_s7 + $0xe0] sm:$0xff]  ;;  %vm2994_vm15 = vcmp.lt.s32.totalorder %v7675_v5, 116 }
  0x62   : > { %6578 = vmatprep.subr.bf16.mxu1 %v6577_v54  ;;  %v1710_v16 = vld [vmem:[%s9766_s7 + $0x88] sm:$0xff]  ;;  %v1728_v49 = vld [vmem:[%s9766_s7 + $0x118] sm:$0xff]  ;;  %v6280_v58 = vld [vmem:[%s9760_s1 + $0x60] sm:$0xff] }
  0x63   : > { %653 = vrot.lane.b32.xlu1 %v379_v2, %s7474_s27  ;;  %651 = vrot.lane.b32.xlu0 %v7659_v1, %s7474_s27  ;;  %v1726_v48 = vld [vmem:[%s9766_s7 + $0x108] sm:$0xff]  ;;  %v6272_v54 = vld [vmem:[%s9760_s1 + $0x58] sm:$0xff] }
  0x64   : > { %v6301_v50 = vld [vmem:[%s9764_s5 + $0xa] sm:$0x3]  ;;  %v6605_v55 = vpack.c.bf16 %v1728_v49, %v1726_v48  ;;  %v6327_v48 = vld [vmem:[%s9760_s1 + $0xf8] sm:$0xff]  ;;  %v6335_v49 = vld [vmem:[%s9760_s1 + $0x100] sm:$0xff] }
  0x65   : > { %6580 = vmatpush1.bf16.msra.mxu1 %v6579_v60  ;;  %v1086_v56 = vrot.slane %v6301_v50, %v7679_v7  ;;  %v6281_v60 = vld [vmem:[%s9760_s1 + $0x68] sm:$0xff] }
  0x66   : > { %6582 = vmatprep.subr.bf16.mxu1 %v6581_v62  ;;  %v6312_v62 = vld [vmem:[%s9764_s5 + $0xc] sm:$0x3] }
  0x67   : > { %795 = vrot.lane.b32.xlu1 %v379_v2, %s7475_s12  ;;  %793 = vrot.lane.b32.xlu0 %v7659_v1, %s7475_s12 }
  0x6b   : > { %1071 = vrot.lane.b32.xlu1 %v379_v2, %s7476_s14  ;;  %1069 = vrot.lane.b32.xlu0 %v7659_v1, %s7476_s14 }
  0x6f   : > { %1213 = vrot.lane.b32.xlu1 %v379_v2, %s7477_s17  ;;  %1211 = vrot.lane.b32.xlu0 %v7659_v1, %s7477_s17  ;;  %s7480_s17 = smov 13  }
  0x73   : > { %1355 = vrot.lane.b32.xlu1 %v379_v2, %s7478_s19  ;;  %1353 = vrot.lane.b32.xlu0 %v7659_v1, %s7478_s19  ;;  %s7481_s19 = smov 11  }
  0x77   : > { %1497 = vrot.lane.b32.xlu1 %v379_v2, %s7479_s20  ;;  %1495 = vrot.lane.b32.xlu0 %v7659_v1, %s7479_s20  ;;  %v1703_v2 = vld [vmem:[%s9766_s7 + $0x50] sm:$0xff]  ;;  %s7482_s20 = smov 117  }
  0xcd   : > { %v409_v10 = vpop.permute.xlu0 %408  ;;  %v382_v11 = vpop.permute.xlu1 %381 }
  0xd1   : > { %v411_v17 = vpop.permute.xlu0 %410  ;;  %v384_v18 = vpop.permute.xlu1 %383 }
  0xd2   : > { %v414_v19 = vsel %vm412_vm0, %v411_v17, %v409_v10  ;;  %v388_v20 = vsel %vm387_vm1, %v382_v11, %v384_v18  ;;  %v389_v21 = vsel %vm387_vm1, %v384_v18, %v382_v11  ;;  %v413_v22 = vsel %vm412_vm0, %v409_v10, %v411_v17  ;;  %v406_v11 = vld [vmem:[%s9760_s1 + $0x10] sm:$0xff]  ;;  %v1712_v17 = vld [vmem:[%s9766_s7 + $0x98] sm:$0xff] }
  0xd3   : > { %v403_v23 = vmul.f32 %v399_v12, %v388_v20  ;;  %v429_v24 = vmul.f32 %v425_v14, %v413_v22  ;;  %v428_v25 = vmul.f32 %v421_v13, %v414_v19  ;;  %v402_v27 = vmul.f32 %v395_v15, %v389_v21  ;;  %v1705_v13 = vld [vmem:[%s9766_s7 + $0x60] sm:$0xff]  ;;  %v1707_v14 = vld [vmem:[%s9766_s7 + $0x70] sm:$0xff]  ;;  %v407_v19 = vld [vmem:[%s9760_s1 + $0x18] sm:$0xff] }
  0xd4   : > { %v6583_v10 = vpack.c.bf16 %v1703_v2, %v1701_v63  ;;  %v6585_v12 = vpack.c.bf16 %v1708_v9, %v1706_v8  ;;  %v946_v15 = vcombine.low %v941_v3, %v945_v4  ;;  %v6587_v18 = vpack.c.bf16 %v1707_v14, %v1705_v13  ;;  %v1709_v22 = vld [vmem:[%s9766_s7 + $0x80] sm:$0xff]  ;;  %v6283_v3 = vld [vmem:[%s9760_s1 + $0x78] sm:$0xff]  ;;  %v6292_v14 = vld [vmem:[%s9760_s1 + $0x88] sm:$0xff] }
  0xd5   : > { %6256 = vmatprep.subr.msk.mxu0 %vm448_vm2, %v429_v24  ;;  %v654_v29 = vpop.permute.xlu1 %653  ;;  %v652_v30 = vpop.permute.xlu0 %651  ;;  %v806_v20 = vrot.slane %v7721_v35, %v7677_v6  ;;  %v6589_v21 = vpack.c.bf16 %v1712_v17, %v1710_v16  ;;  %v1720_v35 = vld [vmem:[%s9766_s7 + $0xd8] sm:$0xff]  ;;  %v1082_v4 = vrot.slane %v6301_v50, %v7677_v6  ;;  %v1228_v9 = vrot.slane %v6312_v62, %v7679_v7  ;;  %v6323_v16 = vld [vmem:[%s9764_s5 + $0xe] sm:$0x3] }
  0xd6   : > { %6257 = vmatpush1.msk.msra.mxu0 %vm448_vm2, %v428_v25  ;;  %v656_v31 = vsel %vm655_vm3, %v652_v30, %v654_v29  ;;  %v657_v40 = vsel %vm655_vm3, %v654_v29, %v652_v30  ;;  %6584 = vmatpush1.bf16.msra.mxu1 %v6583_v10  ;;  %v948_v25 = vmul.f32 %v946_v15, %v7659_v1  ;;  %v6269_v30 = vld [vmem:[%s9760_s1 + $0x40] sm:$0xff]  ;;  %v6293_v15 = vld [vmem:[%s9760_s1 + $0x90] sm:$0xff]  ;;  %v6336_v50 = vld [vmem:[%s9760_s1 + $0x108] sm:$0xff]  ;;  %vm3154_vm0 = vcmp.lt.s32.totalorder %v7675_v5, 115 }
  0xd7   : > { %6258 = vmatmul.mubr.msk.f32.vlgmr.msra.gmra.mrb[0].mxu0 %vm435_vm4, %v6252_v28  ;;  %6262 = vmatprep.subr.msk.mxu0 %vm448_vm2, %v403_v23  ;;  %v672_v32 = vmul.f32 %v668_v26, %v656_v31  ;;  %v671_v47 = vmul.f32 %v664_v39, %v657_v40  ;;  %v1711_v23 = vld [vmem:[%s9766_s7 + $0x90] sm:$0xff]  ;;  %v1714_v26 = vld [vmem:[%s9766_s7 + $0xa8] sm:$0xff]  ;;  %v1713_v1 = vld [vmem:[%s9766_s7 + $0xa0] sm:$0xff]  ;;  %vm6145_vm1 = vcmask 523264  }
  0xd8   : > { %6263 = vmatpush1.msk.msra.mxu0 %vm448_vm2, %v402_v27  ;;  %525 = vmatprep.mubr.f32.mxu0 %v7471_v0  ;;  %v1716_v27 = vld [vmem:[%s9766_s7 + $0xb8] sm:$0xff]  ;;  %v6591_v28 = vpack.c.bf16 %v1711_v23, %v1709_v22  ;;  %v1715_v31 = vld [vmem:[%s9766_s7 + $0xb0] sm:$0xff]  ;;  %v1717_v39 = vld [vmem:[%s9766_s7 + $0xc0] sm:$0xff]  ;;  %v1370_v22 = vrot.slane %v6323_v16, %v7679_v7 }
  0xd9   : > { %6273 = vmatprep.subr.msk.mxu0 %vm448_vm2, %v672_v32  ;;  %v7724_v36 = vpop.permute.xlu1 %795  ;;  %v7727_v37 = vpop.permute.xlu0 %793  ;;  %6586 = vmatprep.subr.bf16.mxu1 %v6585_v12  ;;  %v955_v32 = vcombine.high %v948_v25, %v948_v25  ;;  %v1719_v40 = vld [vmem:[%s9766_s7 + $0xd0] sm:$0xff]  ;;  %v6291_v12 = vld [vmem:[%s9760_s1 + $0x80] sm:$0xff] }
  0xda   : > { %v798_v43 = vsel %vm797_vm5, %v7727_v37, %v7724_v36  ;;  %v799_v24 = vsel %vm797_vm5, %v7724_v36, %v7727_v37  ;;  %6588 = vmatpush1.bf16.msra.mxu1 %v6587_v18  ;;  %v6595_v36 = vpack.c.bf16 %v1715_v31, %v1713_v1  ;;  %v6270_v37 = vld [vmem:[%s9760_s1 + $0x48] sm:$0xff]  ;;  %v6305_v31 = vld [vmem:[%s9760_s1 + $0xb8] sm:$0xff]  ;;  %v5699_v5 = vld [vmem:[#allocation4 + $0xf0] sm:$0xff] }
  0xdb   : > { %6259 = vmatmul.mubr.msk.f32.gmra.mrb[2].mxu0 %vm435_vm4, %v6253_v33  ;;  %v814_v52 = vmul.f32 %v810_v41, %v798_v43  ;;  %v813_v29 = vmul.f32 %v806_v20, %v799_v24  ;;  %6590 = vmatprep.subr.bf16.mxu1 %v6589_v21  ;;  %v6593_v33 = vpack.c.bf16 %v1716_v27, %v1714_v26  ;;  %v1722_v41 = vld [vmem:[%s9766_s7 + $0xe8] sm:$0xff] }
  0xdc   : > { %531 = vmatprep.mubr.f32.mxu0 %v7471_v0  ;;  %v6599_v43 = vpack.c.bf16 %v1719_v40, %v1717_v39  ;;  %v1224_v20 = vrot.slane %v6312_v62, %v7677_v6  ;;  %v6303_v27 = vld [vmem:[%s9760_s1 + $0xa8] sm:$0xff]  ;;  %v6315_v40 = vld [vmem:[%s9760_s1 + $0xd0] sm:$0xff] }
  0xdd   : > { %v1072_v51 = vpop.permute.xlu1 %1071  ;;  %v6314_v39 = vld [vmem:[%s9760_s1 + $0xc8] sm:$0xff] }
  0xde   : > { %6592 = vmatpush1.bf16.msra.mxu1 %v6591_v28  ;;  %v6304_v28 = vld [vmem:[%s9760_s1 + $0xb0] sm:$0xff]  ;;  %v1734_v62 = vld [vmem:[%s9766_s7 + $0x148] sm:$0xff] }
  0xdf   : > { %6260 = vmatmul.mubr.msk.f32.gmra.mrb[4].mxu0 %vm435_vm4, %v6254_v34  ;;  %v1718_v34 = vld [vmem:[%s9766_s7 + $0xc8] sm:$0xff]  ;;  %6594 = vmatprep.subr.bf16.mxu1 %v6593_v33 }
  0xe0   : > { %537 = vmatprep.mubr.f32.mxu0 %v7471_v0 }
  0xe1   : > { %v1214_v63 = vpop.permute.xlu1 %1213 }
  0xe2   : > { %6596 = vmatpush1.bf16.msra.mxu1 %v6595_v36 }
  0xe3   : > { %6261 = vmatmul.mubr.msk.f32.gmra.mrb[6].mxu0 %vm435_vm4, %v6255_v38  ;;  %v6597_v38 = vpack.c.bf16 %v1720_v35, %v1718_v34 }
  0xe4   : > { %626 = vmatprep.mubr.f32.mxu0 %v7471_v0 }
  0xe5   : > { %6598 = vmatprep.subr.bf16.mxu1 %v6597_v38  ;;  %v1356_v17 = vpop.permute.xlu1 %1355 }
  0xe6   : > { %6600 = vmatpush1.bf16.msra.mxu1 %v6599_v43 }
  0xe7   : > { %6264 = vmatmul.mubr.msk.f32.vlgmr.msra.gmra.mrb[0].mxu0 %vm435_vm4, %v404_v42  ;;  %v1724_v42 = vld [vmem:[%s9766_s7 + $0xf8] sm:$0xff] }
  0xe8   : > { %632 = vmatprep.mubr.f32.mxu0 %v7471_v0  ;;  %6274 = vmatpush1.msk.msra.mxu0 %vm448_vm2, %v671_v47  ;;  %v6601_v45 = vpack.c.bf16 %v1724_v42, %v1722_v41  ;;  %v1723_v47 = vld [vmem:[%s9766_s7 + $0xf0] sm:$0xff]  ;;  %v6316_v41 = vld [vmem:[%s9760_s1 + $0xd8] sm:$0xff] }
  0xe9   : > { %6284 = vmatprep.subr.msk.mxu0 %vm448_vm2, %v814_v52  ;;  %v1070_v52 = vpop.permute.xlu0 %1069  ;;  %v6603_v53 = vpack.c.bf16 %v1723_v47, %v1721_v46  ;;  %v6325_v46 = vld [vmem:[%s9760_s1 + $0xe8] sm:$0xff]  ;;  %v6326_v47 = vld [vmem:[%s9760_s1 + $0xf0] sm:$0xff] }
  0xea   : > { %6602 = vmatprep.subr.bf16.mxu1 %v6601_v45  ;;  %v1075_v57 = vsel %vm1073_vm6, %v1072_v51, %v1070_v52  ;;  %v1074_v8 = vsel %vm1073_vm6, %v1070_v52, %v1072_v51  ;;  %v6324_v45 = vld [vmem:[%s9760_s1 + $0xe0] sm:$0xff]  ;;  %v6337_v51 = vld [vmem:[%s9760_s1 + $0x110] sm:$0xff]  ;;  %v6338_v52 = vld [vmem:[%s9760_s1 + $0x118] sm:$0xff] }
  0xeb   : > { %6265 = vmatmul.mubr.msk.f32.gmra.mrb[2].mxu0 %vm435_vm4, %v405_v61  ;;  %6604 = vmatpush1.bf16.msra.mxu1 %v6603_v53  ;;  %v1090_v59 = vmul.f32 %v1086_v56, %v1075_v57  ;;  %v6282_v61 = vld [vmem:[%s9760_s1 + $0x70] sm:$0xff]  ;;  %v1725_v53 = vld [vmem:[%s9766_s7 + $0x100] sm:$0xff]  ;;  %v1730_v56 = vld [vmem:[%s9766_s7 + $0x128] sm:$0xff] }
  0xec   : > { %638 = vmatprep.mubr.f32.mxu0 %v7471_v0  ;;  %6606 = vmatprep.subr.bf16.mxu1 %v6605_v55  ;;  %v1732_v57 = vld [vmem:[%s9766_s7 + $0x138] sm:$0xff] }
  0xed   : > { %v1212_v2 = vpop.permute.xlu0 %1211 }
  0xee   : > { %v1217_v10 = vsel %vm1215_vm7, %v1214_v63, %v1212_v2  ;;  %v1216_v21 = vsel %vm1215_vm7, %v1212_v2, %v1214_v63  ;;  %v1736_v63 = vld [vmem:[%s9766_s7 + $0x158] sm:$0xff] }
  0xef   : > { %6266 = vmatmul.mubr.msk.f32.gmra.mrb[4].mxu0 %vm435_vm4, %v406_v11  ;;  %v1089_v11 = vmul.f32 %v1082_v4, %v1074_v8  ;;  %v1232_v13 = vmul.f32 %v1228_v9, %v1217_v10  ;;  %v1231_v24 = vmul.f32 %v1224_v20, %v1216_v21  ;;  %v6613_v2 = vpack.c.bf16 %v1736_v63, %v1734_v62  ;;  %v1735_v4 = vld [vmem:[%s9766_s7 + $0x150] sm:$0xff]  ;;  %v1738_v9 = vld [vmem:[%s9766_s7 + $0x168] sm:$0xff]  ;;  %v1740_v10 = vld [vmem:[%s9766_s7 + $0x178] sm:$0xff] }
  0xf0   : > { %644 = vmatprep.mubr.f32.mxu0 %v7471_v0  ;;  %v1746_v21 = vld [vmem:[%s9766_s7 + $0x1a8] sm:$0xff] }
  0xf1   : > { %v1354_v18 = vpop.permute.xlu0 %1353 }
  0xf2   : > { %v1359_v23 = vsel %vm1357_vm8, %v1356_v17, %v1354_v18  ;;  %v1358_v33 = vsel %vm1357_vm8, %v1354_v18, %v1356_v17  ;;  %v1741_v18 = vld [vmem:[%s9766_s7 + $0x180] sm:$0xff] }
  0xf3   : > { %6267 = vmatmul.mubr.msk.f32.gmra.mrb[6].mxu0 %vm435_vm4, %v407_v19  ;;  %v6294_v19 = vld [vmem:[%s9760_s1 + $0x98] sm:$0xff]  ;;  %v1374_v26 = vmul.f32 %v1370_v22, %v1359_v23 }
  0xf4   : > { %760 = vmatprep.mubr.f32.mxu0 %v7471_v0  ;;  %v1748_v22 = vld [vmem:[%s9766_s7 + $0x1b8] sm:$0xff] }
  0xf5   : > { %v1496_v1 = vpop.permute.xlu0 %1495  ;;  %v6625_v23 = vpack.c.bf16 %v1748_v22, %v1746_v21 }
  0xf7   : > { %6275 = vmatmul.mubr.msk.f32.vlgmr.msra.gmra.mrb[0].mxu0 %vm435_vm4, %v6269_v30  ;;  %v1498_v30 = vpop.permute.xlu1 %1497 }
  0xf8   : > { %766 = vmatprep.mubr.f32.mxu0 %v7471_v0  ;;  %6285 = vmatpush1.msk.msra.mxu0 %vm448_vm2, %v813_v29  ;;  %v6334_v29 = vld [vmem:[%s9764_s5 + $0x10] sm:$0x3]  ;;  %v1501_v35 = vsel %vm1499_vm9, %v1498_v30, %v1496_v1  ;;  %v1500_v43 = vsel %vm1499_vm9, %v1496_v1, %v1498_v30  ;;  %v1749_v30 = vld [vmem:[%s9766_s7 + $0x1c0] sm:$0xff] }
  0xf9   : > { %6295 = vmatprep.subr.msk.mxu0 %vm448_vm2, %v955_v32  ;;  %v1366_v32 = vrot.slane %v6323_v16, %v7677_v6  ;;  %v1512_v34 = vrot.slane %v6334_v29, %v7679_v7  ;;  %v1508_v42 = vrot.slane %v6334_v29, %v7677_v6  ;;  %v1744_v16 = vld [vmem:[%s9766_s7 + $0x198] sm:$0xff]  ;;  %v1751_v1 = vld [vmem:[%s9766_s7 + $0x1d0] sm:$0xff] }
  0xfb   : > { %6276 = vmatmul.mubr.msk.f32.gmra.mrb[2].mxu0 %vm435_vm4, %v6270_v37  ;;  %v1373_v36 = vmul.f32 %v1366_v32, %v1358_v33  ;;  %v6313_v37 = vld [vmem:[%s9760_s1 + $0xc0] sm:$0xff]  ;;  %v1516_v38 = vmul.f32 %v1512_v34, %v1501_v35  ;;  %v1754_v32 = vld [vmem:[%s9766_s7 + $0x1e8] sm:$0xff]  ;;  %v1756_v33 = vld [vmem:[%s9766_s7 + $0x1f8] sm:$0xff] }
  0xfc   : > { %772 = vmatprep.mubr.f32.mxu0 %v7471_v0  ;;  %v6633_v34 = vpack.c.bf16 %v1756_v33, %v1754_v32  ;;  %v1753_v35 = vld [vmem:[%s9766_s7 + $0x1e0] sm:$0xff] }
  0xff   : > { %6277 = vmatmul.mubr.msk.f32.gmra.mrb[4].mxu0 %vm435_vm4, %v6271_v44  ;;  %v1515_v44 = vmul.f32 %v1508_v42, %v1500_v43 }
 0x100   : > { %778 = vmatprep.mubr.f32.mxu0 %v7471_v0 }
 0x103   : > { %6278 = vmatmul.mubr.msk.f32.gmra.mrb[6].mxu0 %vm435_vm4, %v6272_v54  ;;  %v1727_v54 = vld [vmem:[%s9766_s7 + $0x110] sm:$0xff] }
 0x104   : > { %902 = vmatprep.mubr.f32.mxu0 %v7471_v0  ;;  %v6607_v55 = vpack.c.bf16 %v1727_v54, %v1725_v53 }
 0x106   : > { %6608 = vmatpush1.bf16.msra.mxu1 %v6607_v55 }
 0x107   : > { %6286 = vmatmul.mubr.msk.f32.vlgmr.msra.gmra.mrb[0].mxu0 %vm435_vm4, %v6280_v58  ;;  %v6609_v58 = vpack.c.bf16 %v1732_v57, %v1730_v56 }
 0x108   : > { %908 = vmatprep.mubr.f32.mxu0 %v7471_v0  ;;  %6296 = vmatpush1.msk.msra.mxu0 %vm448_vm2, %v948_v25  ;;  %v6302_v25 = vld [vmem:[%s9760_s1 + $0xa0] sm:$0xff] }
 0x109   : > { %6306 = vmatprep.subr.msk.mxu0 %vm448_vm2, %v1090_v59  ;;  %v1729_v59 = vld [vmem:[%s9766_s7 + $0x120] sm:$0xff]  ;;  %6610 = vmatprep.subr.bf16.mxu1 %v6609_v58 }
 0x10b   : > { %6287 = vmatmul.mubr.msk.f32.gmra.mrb[2].mxu0 %vm435_vm4, %v6281_v60  ;;  %v1731_v60 = vld [vmem:[%s9766_s7 + $0x130] sm:$0xff] }
 0x10c   : > { %914 = vmatprep.mubr.f32.mxu0 %v7471_v0 }
 0x10f   : > { %6288 = vmatmul.mubr.msk.f32.gmra.mrb[4].mxu0 %vm435_vm4, %v6282_v61  ;;  %v6611_v61 = vpack.c.bf16 %v1731_v60, %v1729_v59 }
 0x110   : > { %920 = vmatprep.mubr.f32.mxu0 %v7471_v0 }
 0x111   : > { %6612 = vmatpush1.bf16.msra.mxu1 %v6611_v61 }
 0x112   : > { %6614 = vmatprep.subr.bf16.mxu1 %v6613_v2 }
 0x113   : > { %6289 = vmatmul.mubr.msk.f32.gmra.mrb[6].mxu0 %vm435_vm4, %v6283_v3  ;;  %v1733_v3 = vld [vmem:[%s9766_s7 + $0x140] sm:$0xff] }
 0x114   : > { %1036 = vmatprep.mubr.f32.mxu0 %v7471_v0  ;;  %v6615_v8 = vpack.c.bf16 %v1735_v4, %v1733_v3 }
 0x116   : > { %6616 = vmatpush1.bf16.msra.mxu1 %v6615_v8 }
 0x117   : > { %6297 = vmatmul.mubr.msk.f32.vlgmr.msra.gmra.mrb[0].mxu0 %vm435_vm4, %v6291_v12  ;;  %v1737_v12 = vld [vmem:[%s9766_s7 + $0x160] sm:$0xff] }
 0x118   : > { %1042 = vmatprep.mubr.f32.mxu0 %v7471_v0  ;;  %6307 = vmatpush1.msk.msra.mxu0 %vm448_vm2, %v1089_v11  ;;  %v6617_v11 = vpack.c.bf16 %v1740_v10, %v1738_v9 }
 0x119   : > { %6317 = vmatprep.subr.msk.mxu0 %vm448_vm2, %v1232_v13  ;;  %v1739_v13 = vld [vmem:[%s9766_s7 + $0x170] sm:$0xff] }
 0x11a   : > { %6618 = vmatprep.subr.bf16.mxu1 %v6617_v11 }
 0x11b   : > { %6298 = vmatmul.mubr.msk.f32.gmra.mrb[2].mxu0 %vm435_vm4, %v6292_v14  ;;  %v6619_v14 = vpack.c.bf16 %v1739_v13, %v1737_v12 }
 0x11c   : > { %1048 = vmatprep.mubr.f32.mxu0 %v7471_v0 }
 0x11d   : > { %6620 = vmatpush1.bf16.msra.mxu1 %v6619_v14 }
 0x11f   : > { %6299 = vmatmul.mubr.msk.f32.gmra.mrb[4].mxu0 %vm435_vm4, %v6293_v15  ;;  %v1742_v15 = vld [vmem:[%s9766_s7 + $0x188] sm:$0xff] }
 0x120   : > { %1054 = vmatprep.mubr.f32.mxu0 %v7471_v0  ;;  %v6621_v17 = vpack.c.bf16 %v1744_v16, %v1742_v15 }
 0x122   : > { %6622 = vmatprep.subr.bf16.mxu1 %v6621_v17 }
 0x123   : > { %6300 = vmatmul.mubr.msk.f32.gmra.mrb[6].mxu0 %vm435_vm4, %v6294_v19  ;;  %v1743_v19 = vld [vmem:[%s9766_s7 + $0x190] sm:$0xff] }
 0x124   : > { %1178 = vmatprep.mubr.f32.mxu0 %v7471_v0  ;;  %v6623_v20 = vpack.c.bf16 %v1743_v19, %v1741_v18 }
 0x126   : > { %6624 = vmatpush1.bf16.msra.mxu1 %v6623_v20 }
 0x127   : > { %6308 = vmatmul.mubr.msk.f32.vlgmr.msra.gmra.mrb[0].mxu0 %vm435_vm4, %v6302_v25  ;;  %v1747_v25 = vld [vmem:[%s9766_s7 + $0x1b0] sm:$0xff]  ;;  %6626 = vmatprep.subr.bf16.mxu1 %v6625_v23 }
 0x128   : > { %1184 = vmatprep.mubr.f32.mxu0 %v7471_v0  ;;  %6318 = vmatpush1.msk.msra.mxu0 %vm448_vm2, %v1231_v24  ;;  %v1745_v24 = vld [vmem:[%s9766_s7 + $0x1a0] sm:$0xff] }
 0x129   : > { %6328 = vmatprep.subr.msk.mxu0 %vm448_vm2, %v1374_v26  ;;  %v6627_v26 = vpack.c.bf16 %v1747_v25, %v1745_v24 }
 0x12b   : > { %6309 = vmatmul.mubr.msk.f32.gmra.mrb[2].mxu0 %vm435_vm4, %v6303_v27  ;;  %6628 = vmatpush1.bf16.msra.mxu1 %v6627_v26  ;;  %v1750_v27 = vld [vmem:[%s9766_s7 + $0x1c8] sm:$0xff] }
 0x12c   : > { %1190 = vmatprep.mubr.f32.mxu0 %v7471_v0 }
 0x12f   : > { %6310 = vmatmul.mubr.msk.f32.gmra.mrb[4].mxu0 %vm435_vm4, %v6304_v28  ;;  %v1752_v28 = vld [vmem:[%s9766_s7 + $0x1d8] sm:$0xff] }
 0x130   : > { %1196 = vmatprep.mubr.f32.mxu0 %v7471_v0  ;;  %v6629_v29 = vpack.c.bf16 %v1752_v28, %v1750_v27 }
 0x132   : > { %6630 = vmatprep.subr.bf16.mxu1 %v6629_v29 }
 0x133   : > { %6311 = vmatmul.mubr.msk.f32.gmra.mrb[6].mxu0 %vm435_vm4, %v6305_v31  ;;  %v6631_v31 = vpack.c.bf16 %v1751_v1, %v1749_v30 }
 0x134   : > { %1320 = vmatprep.mubr.f32.mxu0 %v7471_v0 }
 0x135   : > { %6632 = vmatpush1.bf16.msra.mxu1 %v6631_v31 }
 0x136   : > { %6634 = vmatprep.subr.bf16.mxu1 %v6633_v34 }
 0x137   : > { %6319 = vmatmul.mubr.msk.f32.vlgmr.msra.gmra.mrb[0].mxu0 %vm435_vm4, %v6313_v37 }
 0x138   : > { %1326 = vmatprep.mubr.f32.mxu0 %v7471_v0  ;;  %6329 = vmatpush1.msk.msra.mxu0 %vm448_vm2, %v1373_v36  ;;  %v1755_v36 = vld [vmem:[%s9766_s7 + $0x1f0] sm:$0xff] }
 0x139   : > { %6339 = vmatprep.subr.msk.mxu0 %vm448_vm2, %v1516_v38  ;;  %v6635_v37 = vpack.c.bf16 %v1755_v36, %v1753_v35 }
 0x13b   : > { %6320 = vmatmul.mubr.msk.f32.gmra.mrb[2].mxu0 %vm435_vm4, %v6314_v39  ;;  %6636 = vmatpush1.bf16.msra.mxu1 %v6635_v37 }
 0x13c   : > { %1332 = vmatprep.mubr.f32.mxu0 %v7471_v0 }
 0x13f   : > { %6321 = vmatmul.mubr.msk.f32.gmra.mrb[4].mxu0 %vm435_vm4, %v6315_v40 }
 0x140   : > { %1338 = vmatprep.mubr.f32.mxu0 %v7471_v0 }
 0x143   : > { %6322 = vmatmul.mubr.msk.f32.gmra.mrb[6].mxu0 %vm435_vm4, %v6316_v41 }
 0x144   : > { %1462 = vmatprep.mubr.f32.mxu0 %v7471_v0 }
 0x147   : > { %6330 = vmatmul.mubr.msk.f32.vlgmr.msra.gmra.mrb[0].mxu0 %vm435_vm4, %v6324_v45 }
 0x148   : > { %1468 = vmatprep.mubr.f32.mxu0 %v7471_v0  ;;  %6340 = vmatpush1.msk.msra.mxu0 %vm448_vm2, %v1515_v44 }
 0x14b   : > { %6331 = vmatmul.mubr.msk.f32.gmra.mrb[2].mxu0 %vm435_vm4, %v6325_v46 }
 0x14c   : > { %1474 = vmatprep.mubr.f32.mxu0 %v7471_v0 }
 0x14f   : > { %6332 = vmatmul.mubr.msk.f32.gmra.mrb[4].mxu0 %vm435_vm4, %v6326_v47 }
 0x150   : > { %1480 = vmatprep.mubr.f32.mxu0 %v7471_v0 }
 0x153   : > { %6333 = vmatmul.mubr.msk.f32.gmra.mrb[6].mxu0 %vm435_vm4, %v6327_v48 }
 0x154   : > { %1604 = vmatprep.mubr.f32.mxu0 %v7471_v0 }
 0x157   : > { %6341 = vmatmul.mubr.msk.f32.vlgmr.msra.gmra.mrb[0].mxu0 %vm435_vm4, %v6335_v49 }
 0x158   : > { %1610 = vmatprep.mubr.f32.mxu0 %v7471_v0 }
 0x15b   : > { %6342 = vmatmul.mubr.msk.f32.gmra.mrb[2].mxu0 %vm435_vm4, %v6336_v50 }
 0x15c   : > { %1616 = vmatprep.mubr.f32.mxu0 %v7471_v0 }
 0x15f   : > { %6343 = vmatmul.mubr.msk.f32.gmra.mrb[4].mxu0 %vm435_vm4, %v6337_v51 }
 0x160   : > { %1622 = vmatprep.mubr.f32.mxu0 %v7471_v0 }
 0x163   : > { %6344 = vmatmul.mubr.msk.f32.gmra.mrb[6].mxu0 %vm435_vm4, %v6338_v52 }
 0x164   : > { %2079 = vmatprep.mubr.f32.mxu0 %v7471_v0 }
 0x22a   : > { %v1606_v38 = vpop.f32.mrb[0].mxu0 }
 0x22b   : > { %v6345_v39 = vmul.f32 -1.442695, %v1606_v38  ;;  %v1608_v40 = vpop.f32.mrb[1].mxu0 }
 0x22c   : > { %v6346_v41 = vmul.f32 -1.442695, %v1608_v40 }
 0x22d   : > { %7204 = vpow2.f32 %v6345_v39 }
 0x22e   : > { %7206 = vpow2.f32 %v6346_v41  ;;  %v1612_v42 = vpop.f32.mrb[2].mxu0 }
 0x22f   : > { %v6347_v43 = vmul.f32 -1.442695, %v1612_v42  ;;  %v1614_v44 = vpop.f32.mrb[3].mxu0 }
 0x230   : > { %v6348_v45 = vmul.f32 -1.442695, %v1614_v44 }
 0x231   : > { %7208 = vpow2.f32 %v6347_v43 }
 0x232   : > { %7210 = vpow2.f32 %v6348_v45  ;;  %v1618_v46 = vpop.f32.mrb[4].mxu0 }
 0x233   : > { %v6349_v47 = vmul.f32 -1.442695, %v1618_v46  ;;  %v1620_v48 = vpop.f32.mrb[5].mxu0 }
 0x234   : > { %v6350_v49 = vmul.f32 -1.442695, %v1620_v48 }
 0x235   : > { %7212 = vpow2.f32 %v6349_v47 }
 0x236   : > { %7214 = vpow2.f32 %v6350_v49  ;;  %v1624_v50 = vpop.f32.mrb[6].mxu0 }
 0x237   : > { %v7205_v51 = vpop.eup %7204  ;;  %v6351_v52 = vmul.f32 -1.442695, %v1624_v50  ;;  %v1626_v53 = vpop.f32.mrb[7].mxu0 }
 0x238   : > { %v7207_v54 = vpop.eup %7206  ;;  %v1661_v55 = vadd.f32 1.0, %v7205_v51  ;;  %v6352_v56 = vmul.f32 -1.442695, %v1626_v53 }
 0x239   : > { %v1662_v57 = vadd.f32 1.0, %v7207_v54  ;;  %7216 = vpow2.f32 %v6351_v52 }
 0x23a   : > { %7218 = vrcp.f32 %v1661_v55 }
 0x23b   : > { %v7209_v58 = vpop.eup %7208  ;;  %7220 = vrcp.f32 %v1662_v57 }
 0x23c   : > { %v7211_v59 = vpop.eup %7210  ;;  %v1663_v60 = vadd.f32 1.0, %v7209_v58  ;;  %7222 = vpow2.f32 %v6352_v56 }
 0x23d   : > { %v1664_v61 = vadd.f32 1.0, %v7211_v59 }
 0x23e   : > { %7224 = vrcp.f32 %v1663_v60 }
 0x23f   : > { %v7213_v62 = vpop.eup %7212  ;;  %7226 = vrcp.f32 %v1664_v61 }
 0x240   : > { %v7215_v63 = vpop.eup %7214  ;;  %v1665_v2 = vadd.f32 1.0, %v7213_v62 }
 0x241   : > { %v1666_v3 = vadd.f32 1.0, %v7215_v63 }
 0x242   : > { %7228 = vrcp.f32 %v1665_v2 }
 0x243   : > { %v7217_v4 = vpop.eup %7216  ;;  %7230 = vrcp.f32 %v1666_v3 }
 0x244   : > { %v7219_v8 = vpop.eup %7218  ;;  %v1667_v9 = vadd.f32 1.0, %v7217_v4 }
 0x245   : > { %v7221_v10 = vpop.eup %7220  ;;  %v1685_v13 = vmul.f32 %v7219_v8, %v1606_v38 }
 0x246   : > { %v7223_v11 = vpop.eup %7222  ;;  %v1686_v12 = vmul.f32 %v7221_v10, %v1608_v40  ;;  %7232 = vrcp.f32 %v1667_v9 }
 0x247   : > { %v1668_v14 = vadd.f32 1.0, %v7223_v11 }
 0x248   : > { %v7225_v15 = vpop.eup %7224  ;;  %1821 = vmatprep.mubr.f32.mxu1 %v1686_v12 }
 0x249   : > { %v7227_v16 = vpop.eup %7226  ;;  %7234 = vrcp.f32 %v1668_v14  ;;  %1822 = vmatmul.mubr.f32.vlgmr.msra.gmra.mrb[0].mxu1 %v1685_v13  ;;  %v1687_v18 = vmul.f32 %v7225_v15, %v1612_v42 }
 0x24a   : > { %v1688_v17 = vmul.f32 %v7227_v16, %v1614_v44 }
 0x24c   : > { %v7229_v19 = vpop.eup %7228  ;;  %1827 = vmatprep.mubr.f32.mxu1 %v1688_v17 }
 0x24d   : > { %v7231_v20 = vpop.eup %7230  ;;  %1828 = vmatmul.mubr.f32.gmra.mrb[2].mxu1 %v1687_v18  ;;  %v1689_v22 = vmul.f32 %v7229_v19, %v1618_v46  ;;  %v1927_v18 = vld [vmem:[#allocation6] sm:$0x3] }
 0x24e   : > { %v1690_v21 = vmul.f32 %v7231_v20, %v1620_v48 }
 0x250   : > { %1833 = vmatprep.mubr.f32.mxu1 %v1690_v21  ;;  %v7233_v23 = vpop.eup %7232  ;;  %v8302_v21 = vrot.slane %v1927_v18, %v7677_v6 }
 0x251   : > { %1834 = vmatmul.mubr.f32.gmra.mrb[4].mxu1 %v1689_v22  ;;  %v1691_v26 = vmul.f32 %v7233_v23, %v1624_v50  ;;  %v8305_v22 = vrot.slane %v1927_v18, %v7679_v7 }
 0x253   : > { %v7235_v24 = vpop.eup %7234 }
 0x254   : > { %v1692_v25 = vmul.f32 %v7235_v24, %v1626_v53 }
 0x256   : > { %1839 = vmatprep.mubr.f32.mxu1 %v1692_v25 }
 0x257   : > { %1840 = vmatmul.mubr.f32.gmra.mrb[6].mxu1 %v1691_v26 }
 0x258   : > { %2192 = vmatprep.mubr.f32.mxu1 %v7471_v0 }
 0x31c   : > { %v1823_v27 = vpop.f32.mrb[0].mxu1 }
 0x31d   : > { %v6353_v28 = vmul.f32 -1.442695, %v1823_v27  ;;  %v1825_v29 = vpop.f32.mrb[1].mxu1 }
 0x31e   : > { %v6354_v30 = vmul.f32 -1.442695, %v1825_v29 }
 0x31f   : > { %7236 = vpow2.f32 %v6353_v28 }
 0x320   : > { %v1829_v1 = vpop.f32.mrb[2].mxu1  ;;  %7238 = vpow2.f32 %v6354_v30 }
 0x321   : > { %v6355_v31 = vmul.f32 -1.442695, %v1829_v1  ;;  %v1831_v32 = vpop.f32.mrb[3].mxu1 }
 0x322   : > { %v6356_v33 = vmul.f32 -1.442695, %v1831_v32 }
 0x323   : > { %7240 = vpow2.f32 %v6355_v31 }
 0x324   : > { %v1835_v34 = vpop.f32.mrb[4].mxu1  ;;  %7242 = vpow2.f32 %v6356_v33 }
 0x325   : > { %v6357_v35 = vmul.f32 -1.442695, %v1835_v34  ;;  %v1837_v36 = vpop.f32.mrb[5].mxu1 }
 0x326   : > { %v6358_v37 = vmul.f32 -1.442695, %v1837_v36 }
 0x327   : > { %7244 = vpow2.f32 %v6357_v35 }
 0x328   : > { %7246 = vpow2.f32 %v6358_v37 }
 0x329   : > { %v7237_v38 = vpop.eup %7236 }
 0x32a   : > { %v1870_v39 = vadd.f32 1.0, %v7237_v38  ;;  %v1841_v40 = vpop.f32.mrb[6].mxu1  ;;  %v7239_v41 = vpop.eup %7238 }
 0x32b   : > { %v6359_v42 = vmul.f32 -1.442695, %v1841_v40  ;;  %v1843_v43 = vpop.f32.mrb[7].mxu1  ;;  %v1871_v46 = vadd.f32 1.0, %v7239_v41 }
 0x32c   : > { %7248 = vrcp.f32 %v1870_v39  ;;  %v6360_v45 = vmul.f32 -1.442695, %v1843_v43 }
 0x32d   : > { %v7241_v44 = vpop.eup %7240  ;;  %7250 = vpow2.f32 %v6359_v42 }
 0x32e   : > { %v1872_v47 = vadd.f32 1.0, %v7241_v44  ;;  %v7243_v48 = vpop.eup %7242 }
 0x32f   : > { %v1873_v49 = vadd.f32 1.0, %v7243_v48 }
 0x330   : > { %7252 = vrcp.f32 %v1872_v47 }
 0x331   : > { %7254 = vpow2.f32 %v6360_v45  ;;  %v7245_v50 = vpop.eup %7244 }
 0x332   : > { %7256 = vrcp.f32 %v1871_v46  ;;  %v7247_v51 = vpop.eup %7246  ;;  %v1874_v53 = vadd.f32 1.0, %v7245_v50 }
 0x333   : > { %7258 = vrcp.f32 %v1873_v49  ;;  %v1875_v56 = vadd.f32 1.0, %v7247_v51 }
 0x334   : > { %7260 = vrcp.f32 %v1874_v53 }
 0x335   : > { %7262 = vrcp.f32 %v1875_v56 }
 0x336   : > { %v7249_v52 = vpop.eup %7248 }
 0x337   : > { %v8162_v54 = vmul.f32 %v7249_v52, %v1823_v27  ;;  %v7251_v55 = vpop.eup %7250 }
 0x338   : > { %v1876_v58 = vadd.f32 1.0, %v7251_v55 }
 0x339   : > { %1902 = vrot.lane.b32.xlu0 %v8162_v54, %s7480_s17 }
 0x33a   : > { %v7253_v57 = vpop.eup %7252  ;;  %7264 = vrcp.f32 %v1876_v58 }
 0x33b   : > { %v7255_v59 = vpop.eup %7254  ;;  %v8166_v60 = vmul.f32 %v7253_v57, %v1829_v1 }
 0x33c   : > { %v7257_v61 = vpop.eup %7256  ;;  %v1877_v62 = vadd.f32 1.0, %v7255_v59 }
 0x33d   : > { %2205 = vrot.lane.b32.xlu0 %v8162_v54, %s7481_s19  ;;  %1904 = vrot.lane.b32.xlu1 %v8166_v60, %s7480_s17  ;;  %v8172_v63 = vmul.f32 %v7257_v61, %v1825_v29  ;;  %v7259_v2 = vpop.eup %7258 }
 0x33e   : > { %7266 = vrcp.f32 %v1877_v62  ;;  %v8178_v3 = vmul.f32 %v7259_v2, %v1831_v32  ;;  %v7261_v4 = vpop.eup %7260 }
 0x33f   : > { %v7263_v8 = vpop.eup %7262  ;;  %v8184_v9 = vmul.f32 %v7261_v4, %v1835_v34 }
 0x340   : > { %v8190_v11 = vmul.f32 %v7263_v8, %v1837_v36  ;;  %v2231_v36 = vld [vmem:[#allocation6 + $0x4] sm:$0x3] }
 0x341   : > { %1910 = vrot.lane.b32.xlu0 %v8172_v63, %s7480_s17  ;;  %2207 = vrot.lane.b32.xlu1 %v8166_v60, %s7481_s19  ;;  %v8355_v55 = vrot.slane %v2231_v36, %v7677_v6 }
 0x344   : > { %v7265_v10 = vpop.eup %7264 }
 0x345   : > { %2213 = vrot.lane.b32.xlu0 %v8172_v63, %s7481_s19  ;;  %1912 = vrot.lane.b32.xlu1 %v8178_v3, %s7480_s17  ;;  %v8192_v12 = vmul.f32 %v7265_v10, %v1841_v40  ;;  %v8335_v40 = vrot.slane %v2231_v36, %v7679_v7 }
 0x348   : > { %v7267_v13 = vpop.eup %7266 }
 0x349   : > { %2215 = vrot.lane.b32.xlu1 %v8178_v3, %s7481_s19  ;;  %1906 = vrot.lane.b32.xlu0 %v8184_v9, %s7480_s17  ;;  %v8198_v14 = vmul.f32 %v7267_v13, %v1843_v43 }
 0x34d   : > { %1914 = vrot.lane.b32.xlu0 %v8190_v11, %s7480_s17  ;;  %1908 = vrot.lane.b32.xlu1 %v8192_v12, %s7480_s17 }
 0x351   : > { %2209 = vrot.lane.b32.xlu0 %v8184_v9, %s7481_s19  ;;  %1916 = vrot.lane.b32.xlu1 %v8198_v14, %s7480_s17 }
 0x355   : > { %2217 = vrot.lane.b32.xlu0 %v8190_v11, %s7481_s19  ;;  %2211 = vrot.lane.b32.xlu1 %v8192_v12, %s7481_s19 }
 0x359   : > { %2365 = vrot.lane.b32.xlu0 %v8162_v54, %s7475_s12  ;;  %2219 = vrot.lane.b32.xlu1 %v8198_v14, %s7481_s19 }
 0x35d   : > { %2373 = vrot.lane.b32.xlu0 %v8172_v63, %s7475_s12  ;;  %2367 = vrot.lane.b32.xlu1 %v8166_v60, %s7475_s12 }
 0x361   : > { %2369 = vrot.lane.b32.xlu0 %v8184_v9, %s7475_s12  ;;  %2375 = vrot.lane.b32.xlu1 %v8178_v3, %s7475_s12 }
 0x365   : > { %2377 = vrot.lane.b32.xlu0 %v8190_v11, %s7475_s12  ;;  %2371 = vrot.lane.b32.xlu1 %v8192_v12, %s7475_s12 }
 0x369   : > { %2659 = vrot.lane.b32.xlu0 %v8162_v54, %s7476_s14  ;;  %2379 = vrot.lane.b32.xlu1 %v8198_v14, %s7475_s12 }
 0x36d   : > { %2667 = vrot.lane.b32.xlu0 %v8172_v63, %s7476_s14  ;;  %2661 = vrot.lane.b32.xlu1 %v8166_v60, %s7476_s14 }
 0x371   : > { %2663 = vrot.lane.b32.xlu0 %v8184_v9, %s7476_s14  ;;  %2669 = vrot.lane.b32.xlu1 %v8178_v3, %s7476_s14 }
 0x375   : > { %2671 = vrot.lane.b32.xlu0 %v8190_v11, %s7476_s14  ;;  %2665 = vrot.lane.b32.xlu1 %v8192_v12, %s7476_s14 }
 0x379   : > { %2818 = vrot.lane.b32.xlu0 %v8162_v54, %s7482_s20  ;;  %2820 = vrot.lane.b32.xlu1 %v8166_v60, %s7482_s20 }
 0x37d   : > { %2826 = vrot.lane.b32.xlu0 %v8172_v63, %s7482_s20  ;;  %2828 = vrot.lane.b32.xlu1 %v8178_v3, %s7482_s20 }
 0x381   : > { %2822 = vrot.lane.b32.xlu0 %v8184_v9, %s7482_s20  ;;  %2824 = vrot.lane.b32.xlu1 %v8192_v12, %s7482_s20 }
 0x385   : > { %2830 = vrot.lane.b32.xlu0 %v8190_v11, %s7482_s20  ;;  %2980 = vrot.lane.b32.xlu1 %v8166_v60, %s7483_s21 }
 0x389   : > { %2978 = vrot.lane.b32.xlu0 %v8162_v54, %s7483_s21  ;;  %2673 = vrot.lane.b32.xlu1 %v8198_v14, %s7476_s14 }
 0x38d   : > { %2986 = vrot.lane.b32.xlu0 %v8172_v63, %s7483_s21  ;;  %2988 = vrot.lane.b32.xlu1 %v8178_v3, %s7483_s21 }
 0x391   : > { %1951 = vrot.lane.b32.xlu0 %v8162_v54, %s7484_s22  ;;  %1953 = vrot.lane.b32.xlu1 %v8166_v60, %s7484_s22 }
 0x395   : > { %1959 = vrot.lane.b32.xlu0 %v8172_v63, %s7484_s22  ;;  %1961 = vrot.lane.b32.xlu1 %v8178_v3, %s7484_s22 }
 0x399   : > { %2982 = vrot.lane.b32.xlu0 %v8184_v9, %s7483_s21  ;;  %2832 = vrot.lane.b32.xlu1 %v8198_v14, %s7482_s20 }
 0x39d   : > { %2990 = vrot.lane.b32.xlu0 %v8190_v11, %s7483_s21  ;;  %2984 = vrot.lane.b32.xlu1 %v8192_v12, %s7483_s21 }
 0x3a1   : > { %1955 = vrot.lane.b32.xlu0 %v8184_v9, %s7484_s22  ;;  %1957 = vrot.lane.b32.xlu1 %v8192_v12, %s7484_s22 }
 0x3a5   : > { %1963 = vrot.lane.b32.xlu0 %v8190_v11, %s7484_s22  ;;  %3140 = vrot.lane.b32.xlu1 %v8166_v60, %s7485_s15 }
 0x3a9   : > { %3138 = vrot.lane.b32.xlu0 %v8162_v54, %s7485_s15  ;;  %2992 = vrot.lane.b32.xlu1 %v8198_v14, %s7483_s21 }
 0x3ab   : > { %v1903_v15 = vpop.permute.xlu0 %1902 }
 0x3ad   : > { %3146 = vrot.lane.b32.xlu0 %v8172_v63, %s7485_s15  ;;  %1965 = vrot.lane.b32.xlu1 %v8198_v14, %s7484_s22 }
 0x3af   : > { %v2206_v16 = vpop.permute.xlu0 %2205  ;;  %v1905_v17 = vpop.permute.xlu1 %1904 }
 0x3b1   : > { %3142 = vrot.lane.b32.xlu0 %v8184_v9, %s7485_s15  ;;  %3148 = vrot.lane.b32.xlu1 %v8178_v3, %s7485_s15 }
 0x3b3   : > { %v1911_v19 = vpop.permute.xlu0 %1910  ;;  %v2208_v20 = vpop.permute.xlu1 %2207 }
 0x3b4   : > { %v1919_v23 = vsel %vm1918_vm10, %v1903_v15, %v1911_v19  ;;  %v1923_v24 = vsel %vm1918_vm10, %v1911_v19, %v1903_v15  ;;  %v1949_v15 = vld [vmem:[%s9761_s2 + $0x10] sm:$0xff] }
 0x3b5   : > { %3150 = vrot.lane.b32.xlu0 %v8190_v11, %s7485_s15  ;;  %3144 = vrot.lane.b32.xlu1 %v8192_v12, %s7485_s15  ;;  %v1939_v29 = vmul.f32 %v8302_v21, %v1923_v24  ;;  %v1940_v30 = vmul.f32 %v8305_v22, %v1919_v23 }
 0x3b7   : > { %v2214_v25 = vpop.permute.xlu0 %2213  ;;  %v1913_v26 = vpop.permute.xlu1 %1912 }
 0x3b8   : > { %v1920_v27 = vsel %vm1918_vm10, %v1905_v17, %v1913_v26  ;;  %v1924_v28 = vsel %vm1918_vm10, %v1913_v26, %v1905_v17  ;;  %v2222_v43 = vsel %vm2221_vm11, %v2206_v16, %v2214_v25  ;;  %v2226_v56 = vsel %vm2221_vm11, %v2214_v25, %v2206_v16 }
 0x3b9   : > { %v1941_v1 = vmul.f32 %v8302_v21, %v1924_v28  ;;  %v1942_v31 = vmul.f32 %v8305_v22, %v1920_v27  ;;  %3152 = vrot.lane.b32.xlu1 %v8198_v14, %s7485_s15  ;;  %v2244_v57 = vmul.f32 %v8335_v40, %v2222_v43  ;;  %v2243_v8 = vmul.f32 %v8355_v55, %v2226_v56  ;;  %v2390_v27 = vld [vmem:[#allocation6 + $0x6] sm:$0x3]  ;;  %v1950_v28 = vld [vmem:[%s9761_s2 + $0x18] sm:$0xff] }
 0x3bb   : > { %v8325_v32 = vpack.c.bf16 %v1941_v1, %v1939_v29  ;;  %v2216_v33 = vpop.permute.xlu1 %2215  ;;  %v1907_v34 = vpop.permute.xlu0 %1906  ;;  %v8327_v35 = vpack.c.bf16 %v1942_v31, %v1940_v30 }
 0x3bc   : > { %v2223_v39 = vsel %vm2221_vm11, %v2208_v20, %v2216_v33  ;;  %v2227_v46 = vsel %vm2221_vm11, %v2216_v33, %v2208_v20  ;;  %v8389_v33 = vrot.slane %v2390_v27, %v7677_v6 }
 0x3bd   : > { %6885 = vmatprep.subr.bf16.mxu1 %v8327_v35  ;;  %v2246_v47 = vmul.f32 %v8335_v40, %v2223_v39  ;;  %v2245_v2 = vmul.f32 %v8355_v55, %v2227_v46 }
 0x3be   : > { %6887 = vmatpush1.bf16.msra.mxu1 %v8325_v32 }
 0x3bf   : > { %v1915_v37 = vpop.permute.xlu0 %1914  ;;  %v1909_v38 = vpop.permute.xlu1 %1908  ;;  %v6653_v4 = vpack.c.bf16 %v2246_v47, %v2244_v57  ;;  %v6655_v18 = vpack.c.bf16 %v2245_v2, %v2243_v8 }
 0x3c0   : > { %v1921_v41 = vsel %vm1918_vm10, %v1907_v34, %v1915_v37  ;;  %v1925_v42 = vsel %vm1918_vm10, %v1915_v37, %v1907_v34  ;;  %v8392_v34 = vrot.slane %v2390_v27, %v7679_v7  ;;  %v2684_v27 = vld [vmem:[#allocation6 + $0xa] sm:$0x3] }
 0x3c1   : > { %v1943_v50 = vmul.f32 %v8302_v21, %v1925_v42  ;;  %v1944_v51 = vmul.f32 %v8305_v22, %v1921_v41 }
 0x3c3   : > { %v2210_v44 = vpop.permute.xlu0 %2209  ;;  %v1917_v45 = vpop.permute.xlu1 %1916 }
 0x3c4   : > { %v1922_v48 = vsel %vm1918_vm10, %v1909_v38, %v1917_v45  ;;  %v1926_v49 = vsel %vm1918_vm10, %v1917_v45, %v1909_v38  ;;  %v6373_v38 = vld [vmem:[%s9761_s2 + $0x40] sm:$0xff] }
 0x3c5   : > { %v1945_v52 = vmul.f32 %v8302_v21, %v1926_v49  ;;  %v1946_v53 = vmul.f32 %v8305_v22, %v1922_v48  ;;  %v6374_v48 = vld [vmem:[%s9761_s2 + $0x48] sm:$0xff] }
 0x3c7   : > { %v8360_v58 = vpack.c.bf16 %v1945_v52, %v1943_v50  ;;  %v2218_v59 = vpop.permute.xlu0 %2217  ;;  %v2212_v61 = vpop.permute.xlu1 %2211  ;;  %v8362_v62 = vpack.c.bf16 %v1946_v53, %v1944_v51  ;;  %v2525_v53 = vld [vmem:[#allocation6 + $0x8] sm:$0x3] }
 0x3c8   : > { %v2224_v10 = vsel %vm2221_vm11, %v2210_v44, %v2218_v59  ;;  %v2228_v13 = vsel %vm2221_vm11, %v2218_v59, %v2210_v44  ;;  %v6375_v59 = vld [vmem:[%s9761_s2 + $0x50] sm:$0xff] }
 0x3c9   : > { %6886 = vmatprep.subr.bf16.mxu1 %v8362_v62  ;;  %v2247_v23 = vmul.f32 %v8355_v55, %v2228_v13  ;;  %v2248_v24 = vmul.f32 %v8335_v40, %v2224_v10 }
 0x3ca   : > { %6888 = vmatpush1.bf16.msra.mxu1 %v8360_v58 }
 0x3cb   : > { %v2366_v16 = vpop.permute.xlu0 %2365  ;;  %6654 = vmatprep.subr.bf16.mxu1 %v6653_v4  ;;  %v2220_v17 = vpop.permute.xlu1 %2219 }
 0x3cc   : > { %v2225_v19 = vsel %vm2221_vm11, %v2212_v61, %v2220_v17  ;;  %v2229_v20 = vsel %vm2221_vm11, %v2220_v17, %v2212_v61  ;;  %v8426_v61 = vrot.slane %v2525_v53, %v7679_v7 }
 0x3cd   : > { %v2249_v25 = vmul.f32 %v8355_v55, %v2229_v20  ;;  %v2250_v26 = vmul.f32 %v8335_v40, %v2225_v19  ;;  %6371 = vmatmul.mubr.msk.f32.vlgmr.msra.gmra.mrb[8].mxu1 %vm2002_vm12, %v1949_v15  ;;  %v6376_v19 = vld [vmem:[%s9761_s2 + $0x58] sm:$0xff]  ;;  %v8446_v20 = vrot.slane %v2525_v53, %v7677_v6 }
 0x3ce   : > { %6656 = vmatpush1.bf16.msra.mxu1 %v6655_v18  ;;  %2198 = vmatprep.mubr.f32.mxu1 %v7471_v0  ;;  %v2540_v13 = vmul.f32 %v8426_v61, %v8178_v3 }
 0x3cf   : > { %v6659_v29 = vpack.c.bf16 %v2249_v25, %v2247_v23  ;;  %v2374_v30 = vpop.permute.xlu0 %2373  ;;  %v2368_v1 = vpop.permute.xlu1 %2367  ;;  %v6657_v31 = vpack.c.bf16 %v2250_v26, %v2248_v24  ;;  %v2538_v26 = vmul.f32 %v8426_v61, %v8172_v63  ;;  %v2537_v63 = vmul.f32 %v8446_v20, %v8162_v54 }
 0x3d0   : > { %v2381_v36 = vsel %vm797_vm5, %v2366_v16, %v2374_v30  ;;  %v2385_v37 = vsel %vm797_vm5, %v2374_v30, %v2366_v16  ;;  %v2544_v30 = vmul.f32 %v8426_v61, %v8198_v14  ;;  %v2543_v54 = vmul.f32 %v8446_v20, %v8192_v12 }
 0x3d1   : > { %6372 = vmatmul.mubr.msk.f32.gmra.mrb[10].mxu1 %vm2002_vm12, %v1950_v28  ;;  %6658 = vmatprep.subr.bf16.mxu1 %v6657_v31  ;;  %v2402_v44 = vmul.f32 %v8389_v33, %v2385_v37  ;;  %v2403_v45 = vmul.f32 %v8392_v34, %v2381_v36  ;;  %v2539_v28 = vmul.f32 %v8446_v20, %v8166_v60 }
 0x3d2   : > { %6660 = vmatpush1.bf16.msra.mxu1 %v6659_v29  ;;  %2332 = vmatprep.mubr.f32.mxu1 %v7471_v0  ;;  %v6669_v29 = vpack.c.bf16 %v2540_v13, %v2538_v26  ;;  %v8462_v31 = vrot.slane %v2684_v27, %v7679_v7  ;;  %v2542_v37 = vmul.f32 %v8426_v61, %v8190_v11  ;;  %v6382_v11 = vld [vmem:[%s9761_s2 + $0x68] sm:$0xff] }
 0x3d3   : > { %v2370_v39 = vpop.permute.xlu0 %2369  ;;  %v2376_v41 = vpop.permute.xlu1 %2375 }
 0x3d4   : > { %v2382_v42 = vsel %vm797_vm5, %v2368_v1, %v2376_v41  ;;  %v2386_v43 = vsel %vm797_vm5, %v2376_v41, %v2368_v1  ;;  %v6381_v1 = vld [vmem:[%s9761_s2 + $0x60] sm:$0xff] }
 0x3d5   : > { %v2404_v46 = vmul.f32 %v8389_v33, %v2386_v43  ;;  %v2405_v47 = vmul.f32 %v8392_v34, %v2382_v42  ;;  %6377 = vmatmul.mubr.msk.f32.vlgmr.msra.gmra.mrb[12].mxu1 %vm2002_vm12, %v6373_v38  ;;  %v6673_v42 = vpack.c.bf16 %v2544_v30, %v2542_v37  ;;  %v2541_v43 = vmul.f32 %v8446_v20, %v8184_v9 }
 0x3d6   : > { %2338 = vmatprep.mubr.f32.mxu1 %v7471_v0 }
 0x3d7   : > { %v6663_v49 = vpack.c.bf16 %v2404_v46, %v2402_v44  ;;  %v2378_v50 = vpop.permute.xlu0 %2377  ;;  %v2372_v51 = vpop.permute.xlu1 %2371  ;;  %v6661_v52 = vpack.c.bf16 %v2405_v47, %v2403_v45  ;;  %v6675_v12 = vpack.c.bf16 %v2543_v54, %v2541_v43 }
 0x3d8   : > { %v2383_v56 = vsel %vm797_vm5, %v2370_v39, %v2378_v50  ;;  %v2387_v57 = vsel %vm797_vm5, %v2378_v50, %v2370_v39  ;;  %v6671_v39 = vpack.c.bf16 %v2539_v28, %v2537_v63 }
 0x3d9   : > { %6378 = vmatmul.mubr.msk.f32.gmra.mrb[14].mxu1 %vm2002_vm12, %v6374_v48  ;;  %6662 = vmatprep.subr.bf16.mxu1 %v6661_v52  ;;  %v2406_v15 = vmul.f32 %v8389_v33, %v2387_v57  ;;  %v2407_v16 = vmul.f32 %v8392_v34, %v2383_v56  ;;  %v6383_v48 = vld [vmem:[%s9761_s2 + $0x70] sm:$0xff]  ;;  %v6384_v52 = vld [vmem:[%s9761_s2 + $0x78] sm:$0xff] }
 0x3da   : > { %6664 = vmatpush1.bf16.msra.mxu1 %v6663_v49  ;;  %2344 = vmatprep.mubr.f32.mxu1 %v7471_v0 }
 0x3db   : > { %v8428_v2 = vpop.permute.xlu0 %2659  ;;  %v2380_v4 = vpop.permute.xlu1 %2379 }
 0x3dc   : > { %v2384_v8 = vsel %vm797_vm5, %v2372_v51, %v2380_v4  ;;  %v2388_v10 = vsel %vm797_vm5, %v2380_v4, %v2372_v51  ;;  %v8491_v51 = vrot.slane %v2684_v27, %v7677_v6 }
 0x3dd   : > { %v2408_v17 = vmul.f32 %v8389_v33, %v2388_v10  ;;  %v2409_v18 = vmul.f32 %v8392_v34, %v2384_v8  ;;  %6379 = vmatmul.mubr.msk.f32.gmra.mrb[8].mxu1 %vm2002_vm12, %v6375_v59  ;;  %v6389_v8 = vld [vmem:[%s9761_s2 + $0x80] sm:$0xff] }
 0x3de   : > { %2350 = vmatprep.mubr.f32.mxu1 %v7471_v0 }
 0x3df   : > { %v6667_v3 = vpack.c.bf16 %v2408_v17, %v2406_v15  ;;  %v2668_v23 = vpop.permute.xlu0 %2667  ;;  %v2662_v24 = vpop.permute.xlu1 %2661  ;;  %v6665_v25 = vpack.c.bf16 %v2409_v18, %v2407_v16  ;;  %v2844_v16 = vld [vmem:[#allocation6 + $0xc] sm:$0x3] }
 0x3e0   : > { %v2679_v14 = vsel %vm1073_vm6, %v2668_v23, %v8428_v2  ;;  %v2675_v53 = vsel %vm1073_vm6, %v8428_v2, %v2668_v23  ;;  %v6390_v2 = vld [vmem:[%s9761_s2 + $0x88] sm:$0xff]  ;;  %v8527_v23 = vrot.slane %v2844_v16, %v7679_v7 }
 0x3e1   : > { %6380 = vmatmul.mubr.msk.f32.gmra.mrb[10].mxu1 %vm2002_vm12, %v6376_v19  ;;  %6666 = vmatprep.subr.bf16.mxu1 %v6665_v25  ;;  %v2697_v44 = vmul.f32 %v8462_v31, %v2679_v14  ;;  %v2696_v4 = vmul.f32 %v8491_v51, %v2675_v53 }
 0x3e2   : > { %6668 = vmatpush1.bf16.msra.mxu1 %v6667_v3  ;;  %2491 = vmatprep.mubr.f32.mxu1 %v7471_v0 }
 0x3e3   : > { %v2664_v60 = vpop.permute.xlu0 %2663  ;;  %6670 = vmatprep.subr.bf16.mxu1 %v6669_v29  ;;  %v2670_v36 = vpop.permute.xlu1 %2669  ;;  %v8540_v29 = vrot.slane %v2844_v16, %v7677_v6 }
 0x3e4   : > { %v2680_v38 = vsel %vm1073_vm6, %v2670_v36, %v2662_v24  ;;  %v2676_v9 = vsel %vm1073_vm6, %v2662_v24, %v2670_v36  ;;  %v6391_v24 = vld [vmem:[%s9761_s2 + $0x90] sm:$0xff] }
 0x3e5   : > { %v2699_v41 = vmul.f32 %v8462_v31, %v2680_v38  ;;  %6385 = vmatmul.mubr.msk.f32.vlgmr.msra.gmra.mrb[12].mxu1 %vm2002_vm12, %v6381_v1  ;;  %v2698_v59 = vmul.f32 %v8491_v51, %v2676_v9 }
 0x3e6   : > { %6672 = vmatpush1.bf16.msra.mxu1 %v6671_v39  ;;  %2497 = vmatprep.mubr.f32.mxu1 %v7471_v0 }
 0x3e7   : > { %v2672_v45 = vpop.permute.xlu0 %2671  ;;  %v2666_v46 = vpop.permute.xlu1 %2665  ;;  %6674 = vmatprep.subr.bf16.mxu1 %v6673_v42  ;;  %v6677_v47 = vpack.c.bf16 %v2699_v41, %v2697_v44  ;;  %v6679_v15 = vpack.c.bf16 %v2698_v59, %v2696_v4  ;;  %v6392_v41 = vld [vmem:[%s9761_s2 + $0x98] sm:$0xff] }
 0x3e8   : > { %v2677_v19 = vsel %vm1073_vm6, %v2664_v60, %v2672_v45  ;;  %v2681_v3 = vsel %vm1073_vm6, %v2672_v45, %v2664_v60 }
 0x3e9   : > { %6386 = vmatmul.mubr.msk.f32.gmra.mrb[14].mxu1 %vm2002_vm12, %v6382_v11  ;;  %v2700_v63 = vmul.f32 %v8491_v51, %v2677_v19  ;;  %v2701_v60 = vmul.f32 %v8462_v31, %v2681_v3 }
 0x3ea   : > { %6676 = vmatpush1.bf16.msra.mxu1 %v6675_v12  ;;  %2503 = vmatprep.mubr.f32.mxu1 %v7471_v0 }
 0x3eb   : > { %v2819_v49 = vpop.permute.xlu0 %2818  ;;  %v2821_v50 = vpop.permute.xlu1 %2820  ;;  %6678 = vmatprep.subr.bf16.mxu1 %v6677_v47  ;;  %v1977_v47 = vld [vmem:[#allocation6 + $0x2] sm:$0x3] }
 0x3ec   : > { %v8573_v53 = vrot.slane %v1977_v47, %v7679_v7 }
 0x3ed   : > { %6387 = vmatmul.mubr.msk.f32.gmra.mrb[8].mxu1 %vm2002_vm12, %v6383_v48 }
 0x3ee   : > { %2509 = vmatprep.mubr.f32.mxu1 %v7471_v0 }
 0x3ef   : > { %v2827_v56 = vpop.permute.xlu0 %2826  ;;  %v2829_v57 = vpop.permute.xlu1 %2828 }
 0x3f0   : > { %v2839_v25 = vsel %vm2834_vm13, %v2827_v56, %v2819_v49  ;;  %v2840_v26 = vsel %vm2834_vm13, %v2829_v57, %v2821_v50  ;;  %v2835_v14 = vsel %vm2834_vm13, %v2819_v49, %v2827_v56  ;;  %v2836_v39 = vsel %vm2834_vm13, %v2821_v50, %v2829_v57  ;;  %v6397_v50 = vld [vmem:[%s9761_s2 + $0xa0] sm:$0xff]  ;;  %v3004_v57 = vld [vmem:[#allocation6 + $0xe] sm:$0x3] }
 0x3f1   : > { %6388 = vmatmul.mubr.msk.f32.gmra.mrb[10].mxu1 %vm2002_vm12, %v6384_v52  ;;  %v2857_v38 = vmul.f32 %v8527_v23, %v2839_v25  ;;  %v2859_v54 = vmul.f32 %v8527_v23, %v2840_v26  ;;  %v2856_v45 = vmul.f32 %v8540_v29, %v2835_v14  ;;  %v8570_v52 = vrot.slane %v1977_v47, %v7677_v6 }
 0x3f2   : > { %2626 = vmatprep.mubr.f32.mxu1 %v7471_v0 }
 0x3f3   : > { %v8507_v10 = vpop.permute.xlu0 %2822  ;;  %v8509_v13 = vpop.permute.xlu1 %2824  ;;  %v6685_v12 = vpack.c.bf16 %v2859_v54, %v2857_v38  ;;  %v8617_v38 = vrot.slane %v3004_v57, %v7677_v6 }
 0x3f5   : > { %6393 = vmatmul.mubr.msk.f32.vlgmr.msra.gmra.mrb[12].mxu1 %vm2002_vm12, %v6389_v8  ;;  %v6398_v8 = vld [vmem:[%s9761_s2 + $0xa8] sm:$0xff] }
 0x3f6   : > { %6680 = vmatpush1.bf16.msra.mxu1 %v6679_v15  ;;  %2632 = vmatprep.mubr.f32.mxu1 %v7471_v0 }
 0x3f7   : > { %v8516_v17 = vpop.permute.xlu0 %2830  ;;  %v8518_v18 = vpop.permute.xlu1 %2980 }
 0x3f8   : > { %v2837_v56 = vsel %vm2834_vm13, %v8507_v10, %v8516_v17 }
 0x3f9   : > { %6394 = vmatmul.mubr.msk.f32.gmra.mrb[14].mxu1 %vm2002_vm12, %v6390_v2 }
 0x3fa   : > { %2638 = vmatprep.mubr.f32.mxu1 %v7471_v0 }
 0x3fb   : > { %v8537_v27 = vpop.permute.xlu0 %2978  ;;  %v2674_v28 = vpop.permute.xlu1 %2673 }
 0x3fc   : > { %v2678_v30 = vsel %vm1073_vm6, %v2666_v46, %v2674_v28  ;;  %v2682_v1 = vsel %vm1073_vm6, %v2674_v28, %v2666_v46  ;;  %v2858_v46 = vmul.f32 %v8540_v29, %v2836_v39  ;;  %v2841_v28 = vsel %vm2834_vm13, %v8516_v17, %v8507_v10  ;;  %v6399_v10 = vld [vmem:[%s9761_s2 + $0xb0] sm:$0xff] }
 0x3fd   : > { %v2702_v36 = vmul.f32 %v8491_v51, %v2678_v30  ;;  %v2703_v37 = vmul.f32 %v8462_v31, %v2682_v1  ;;  %6395 = vmatmul.mubr.msk.f32.gmra.mrb[8].mxu1 %vm2002_vm12, %v6391_v24  ;;  %v8602_v30 = vrot.slane %v3004_v57, %v7679_v7  ;;  %v2860_v17 = vmul.f32 %v8540_v29, %v2837_v56  ;;  %v6405_v57 = vld [vmem:[%s9761_s2 + $0xc0] sm:$0xff] }
 0x3fe   : > { %2644 = vmatprep.mubr.f32.mxu1 %v7471_v0  ;;  %v6687_v9 = vpack.c.bf16 %v2858_v46, %v2856_v45 }
 0x3ff   : > { %v6683_v42 = vpack.c.bf16 %v2702_v36, %v2700_v63  ;;  %v2987_v11 = vpop.permute.xlu0 %2986  ;;  %v2989_v43 = vpop.permute.xlu1 %2988  ;;  %v6681_v44 = vpack.c.bf16 %v2703_v37, %v2701_v60 }
 0x400   : > { %v2999_v1 = vsel %vm2994_vm15, %v2987_v11, %v8537_v27  ;;  %v3000_v63 = vsel %vm2994_vm15, %v2989_v43, %v8518_v18 }
 0x401   : > { %6396 = vmatmul.mubr.msk.f32.gmra.mrb[10].mxu1 %vm2002_vm12, %v6392_v41  ;;  %6682 = vmatprep.subr.bf16.mxu1 %v6681_v44  ;;  %v2861_v41 = vmul.f32 %v8527_v23, %v2841_v28  ;;  %v3017_v46 = vmul.f32 %v8602_v30, %v2999_v1  ;;  %v3019_v47 = vmul.f32 %v8602_v30, %v3000_v63 }
 0x402   : > { %2785 = vmatprep.mubr.f32.mxu1 %v7471_v0  ;;  %6684 = vmatpush1.bf16.msra.mxu1 %v6683_v42  ;;  %v2995_v42 = vsel %vm2994_vm15, %v8537_v27, %v2987_v11  ;;  %v6400_v27 = vld [vmem:[%s9761_s2 + $0xb8] sm:$0xff] }
 0x403   : > { %v1952_v48 = vpop.permute.xlu0 %1951  ;;  %v1954_v49 = vpop.permute.xlu1 %1953  ;;  %6686 = vmatprep.subr.bf16.mxu1 %v6685_v12  ;;  %v2996_v12 = vsel %vm2994_vm15, %v8518_v18, %v2989_v43  ;;  %v6693_v18 = vpack.c.bf16 %v3019_v47, %v3017_v46 }
 0x405   : > { %6401 = vmatmul.mubr.msk.f32.vlgmr.msra.gmra.mrb[12].mxu1 %vm2002_vm12, %v6397_v50  ;;  %v3016_v50 = vmul.f32 %v8617_v38, %v2995_v42 }
 0x406   : > { %6688 = vmatpush1.bf16.msra.mxu1 %v6687_v9  ;;  %2791 = vmatprep.mubr.f32.mxu1 %v7471_v0  ;;  %v3018_v9 = vmul.f32 %v8617_v38, %v2996_v12 }
 0x407   : > { %v1960_v59 = vpop.permute.xlu0 %1959  ;;  %v1962_v4 = vpop.permute.xlu1 %1961 }
 0x408   : > { %v1968_v15 = vsel %vm1967_vm14, %v1952_v48, %v1960_v59  ;;  %v1972_v2 = vsel %vm1967_vm14, %v1960_v59, %v1952_v48  ;;  %v1969_v16 = vsel %vm1967_vm14, %v1954_v49, %v1962_v4  ;;  %v1973_v19 = vsel %vm1967_vm14, %v1962_v4, %v1954_v49 }
 0x409   : > { %v1989_v3 = vmul.f32 %v8570_v52, %v1972_v2  ;;  %v1990_v24 = vmul.f32 %v8573_v53, %v1968_v15  ;;  %v1991_v25 = vmul.f32 %v8570_v52, %v1973_v19  ;;  %v1992_v26 = vmul.f32 %v8573_v53, %v1969_v16  ;;  %6402 = vmatmul.mubr.msk.f32.gmra.mrb[14].mxu1 %vm2002_vm12, %v6398_v8  ;;  %v6406_v15 = vld [vmem:[%s9761_s2 + $0xc8] sm:$0xff] }
 0x40a   : > { %2797 = vmatprep.mubr.f32.mxu1 %v7471_v0  ;;  %v6695_v59 = vpack.c.bf16 %v3018_v9, %v3016_v50  ;;  %v6413_v9 = vld [vmem:[%s9761_s2 + $0xe0] sm:$0xff] }
 0x40b   : > { %v6639_v60 = vpack.c.bf16 %v1991_v25, %v1989_v3  ;;  %v2983_v36 = vpop.permute.xlu0 %2982  ;;  %v2833_v37 = vpop.permute.xlu1 %2832  ;;  %v6637_v14 = vpack.c.bf16 %v1992_v26, %v1990_v24  ;;  %v6407_v24 = vld [vmem:[%s9761_s2 + $0xd0] sm:$0xff] }
 0x40c   : > { %v2838_v39 = vsel %vm2834_vm13, %v8509_v13, %v2833_v37  ;;  %v2842_v54 = vsel %vm2834_vm13, %v2833_v37, %v8509_v13 }
 0x40d   : > { %v2862_v44 = vmul.f32 %v8540_v29, %v2838_v39  ;;  %v2863_v45 = vmul.f32 %v8527_v23, %v2842_v54  ;;  %6638 = vmatprep.subr.bf16.mxu0 %v6637_v14  ;;  %6403 = vmatmul.mubr.msk.f32.gmra.mrb[8].mxu1 %vm2002_vm12, %v6399_v10  ;;  %v6408_v54 = vld [vmem:[%s9761_s2 + $0xd8] sm:$0xff] }
 0x40e   : > { %6640 = vmatpush1.bf16.msra.mxu0 %v6639_v60  ;;  %2803 = vmatprep.mubr.f32.mxu1 %v7471_v0 }
 0x40f   : > { %v6691_v13 = vpack.c.bf16 %v2862_v44, %v2860_v17  ;;  %v2991_v48 = vpop.permute.xlu0 %2990  ;;  %v2985_v49 = vpop.permute.xlu1 %2984  ;;  %v6689_v11 = vpack.c.bf16 %v2863_v45, %v2861_v41 }
 0x410   : > { %v2997_v2 = vsel %vm2994_vm15, %v2983_v36, %v2991_v48  ;;  %v3001_v16 = vsel %vm2994_vm15, %v2991_v48, %v2983_v36  ;;  %v3164_v36 = vld [vmem:[#allocation6 + $0x10] sm:$0x3] }
 0x411   : > { %6690 = vmatprep.subr.bf16.mxu1 %v6689_v11  ;;  %6404 = vmatmul.mubr.msk.f32.gmra.mrb[10].mxu1 %vm2002_vm12, %v6400_v27  ;;  %v3020_v28 = vmul.f32 %v8617_v38, %v2997_v2  ;;  %v3021_v1 = vmul.f32 %v8602_v30, %v3001_v16  ;;  %v8681_v42 = vrot.slane %v3164_v36, %v7677_v6 }
 0x412   : > { %6692 = vmatpush1.bf16.msra.mxu1 %v6691_v13  ;;  %2945 = vmatprep.mubr.f32.mxu1 %v7471_v0  ;;  %v8684_v44 = vrot.slane %v3164_v36, %v7679_v7 }
 0x413   : > { %v1956_v43 = vpop.permute.xlu0 %1955  ;;  %v1958_v56 = vpop.permute.xlu1 %1957  ;;  %6694 = vmatprep.subr.bf16.mxu1 %v6693_v18 }
 0x415   : > { %6409 = vmatmul.mubr.msk.f32.vlgmr.msra.gmra.mrb[12].mxu1 %vm2002_vm12, %v6405_v57 }
 0x416   : > { %6696 = vmatpush1.bf16.msra.mxu1 %v6695_v59  ;;  %2951 = vmatprep.mubr.f32.mxu1 %v7471_v0 }
 0x417   : > { %v1964_v4 = vpop.permute.xlu0 %1963  ;;  %v3141_v8 = vpop.permute.xlu1 %3140 }
 0x418   : > { %v1970_v37 = vsel %vm1967_vm14, %v1956_v43, %v1964_v4  ;;  %v1974_v14 = vsel %vm1967_vm14, %v1964_v4, %v1956_v43 }
 0x419   : > { %6410 = vmatmul.mubr.msk.f32.gmra.mrb[14].mxu1 %vm2002_vm12, %v6406_v15  ;;  %v1993_v12 = vmul.f32 %v8570_v52, %v1974_v14  ;;  %v1994_v47 = vmul.f32 %v8573_v53, %v1970_v37  ;;  %v6361_v15 = vld [vmem:[%s9761_s2 + $0x20] sm:$0xff]  ;;  %v6363_v37 = vld [vmem:[%s9761_s2 + $0x30] sm:$0xff] }
 0x41a   : > { %2957 = vmatprep.mubr.f32.mxu1 %v7471_v0 }
 0x41b   : > { %v3139_v19 = vpop.permute.xlu0 %3138  ;;  %v2993_v3 = vpop.permute.xlu1 %2992 }
 0x41c   : > { %v2998_v25 = vsel %vm2994_vm15, %v2985_v49, %v2993_v3  ;;  %v3002_v26 = vsel %vm2994_vm15, %v2993_v3, %v2985_v49 }
 0x41d   : > { %v3022_v63 = vmul.f32 %v8617_v38, %v2998_v25  ;;  %v3023_v60 = vmul.f32 %v8602_v30, %v3002_v26  ;;  %6411 = vmatmul.mubr.msk.f32.gmra.mrb[8].mxu1 %vm2002_vm12, %v6407_v24 }
 0x41e   : > { %2963 = vmatprep.mubr.f32.mxu1 %v7471_v0 }
 0x41f   : > { %v6699_v10 = vpack.c.bf16 %v3022_v63, %v3020_v28  ;;  %v3147_v17 = vpop.permute.xlu0 %3146  ;;  %v1966_v39 = vpop.permute.xlu1 %1965  ;;  %v6697_v41 = vpack.c.bf16 %v3023_v60, %v3021_v1  ;;  %v6415_v28 = vld [vmem:[%s9761_s2 + $0xf0] sm:$0xff] }
 0x420   : > { %v1971_v45 = vsel %vm1967_vm14, %v1958_v56, %v1966_v39  ;;  %v1975_v46 = vsel %vm1967_vm14, %v1966_v39, %v1958_v56  ;;  %v3155_v6 = vsel %vm3154_vm0, %v3139_v19, %v3147_v17  ;;  %v3159_v7 = vsel %vm3154_vm0, %v3147_v17, %v3139_v19  ;;  %v6414_v19 = vld [vmem:[%s9761_s2 + $0xe8] sm:$0xff]  ;;  %v6421_v39 = vld [vmem:[%s9761_s2 + $0x100] sm:$0xff] }
 0x421   : > { %v1995_v13 = vmul.f32 %v8570_v52, %v1975_v46  ;;  %v1996_v48 = vmul.f32 %v8573_v53, %v1971_v45  ;;  %6698 = vmatprep.subr.bf16.mxu1 %v6697_v41  ;;  %6412 = vmatmul.mubr.msk.f32.gmra.mrb[10].mxu1 %vm2002_vm12, %v6408_v54  ;;  %v3176_v56 = vmul.f32 %v8681_v42, %v3155_v6  ;;  %v1947_v54 = vld [vmem:[%s9761_s2] sm:$0xff]  ;;  %v6422_v41 = vld [vmem:[%s9761_s2 + $0x108] sm:$0xff]  ;;  %v6423_v46 = vld [vmem:[%s9761_s2 + $0x110] sm:$0xff] }
 0x422   : > { %6700 = vmatpush1.bf16.msra.mxu1 %v6699_v10  ;;  %3105 = vmatprep.mubr.f32.mxu1 %v7471_v0  ;;  %v3177_v57 = vmul.f32 %v8684_v44, %v3159_v7  ;;  %v6416_v10 = vld [vmem:[%s9761_s2 + $0xf8] sm:$0xff]  ;;  %v1948_v45 = vld [vmem:[%s9761_s2 + $0x8] sm:$0xff] }
 0x423   : > { %v6643_v49 = vpack.c.bf16 %v1995_v13, %v1993_v12  ;;  %v3143_v27 = vpop.permute.xlu0 %3142  ;;  %v3149_v11 = vpop.permute.xlu1 %3148  ;;  %v6641_v50 = vpack.c.bf16 %v1996_v48, %v1994_v47  ;;  %v6424_v12 = vld [vmem:[%s9761_s2 + $0x118] sm:$0xff] }
 0x424   : > { %v3156_v18 = vsel %vm3154_vm0, %v3141_v8, %v3149_v11  ;;  %v3160_v43 = vsel %vm3154_vm0, %v3149_v11, %v3141_v8 }
 0x425   : > { %v3178_v59 = vmul.f32 %v8681_v42, %v3156_v18  ;;  %v3179_v4 = vmul.f32 %v8684_v44, %v3160_v43  ;;  %6642 = vmatprep.subr.bf16.mxu0 %v6641_v50  ;;  %6417 = vmatmul.mubr.msk.f32.vlgmr.msra.gmra.mrb[12].mxu1 %vm2002_vm12, %v6413_v9 }
 0x426   : > { %6644 = vmatpush1.bf16.msra.mxu0 %v6643_v49  ;;  %3111 = vmatprep.mubr.f32.mxu1 %v7471_v0 }
 0x427   : > { %v6703_v2 = vpack.c.bf16 %v3178_v59, %v3176_v56  ;;  %v3151_v16 = vpop.permute.xlu0 %3150  ;;  %6646 = vmatprep.subr.bf16.mxu0 %v8327_v35  ;;  %v3145_v8 = vpop.permute.xlu1 %3144  ;;  %v6701_v3 = vpack.c.bf16 %v3179_v4, %v3177_v57  ;;  %v6362_v35 = vld [vmem:[%s9761_s2 + $0x28] sm:$0xff] }
 0x428   : > { %v3157_v24 = vsel %vm3154_vm0, %v3143_v27, %v3151_v16  ;;  %v3161_v25 = vsel %vm3154_vm0, %v3151_v16, %v3143_v27 }
 0x429   : > { %6365 = vmatmul.mubr.msk.f32.vlgmr.msra.gmra.mrb[8].mxu0 %vm2002_vm12, %v6361_v15  ;;  %6702 = vmatprep.subr.bf16.mxu1 %v6701_v3  ;;  %v3181_v60 = vmul.f32 %v8684_v44, %v3161_v25 }
 0x42a   : > { %6418 = vmatmul.mubr.msk.f32.gmra.mrb[14].mxu1 %vm2002_vm12, %v6414_v19  ;;  %6648 = vmatpush1.bf16.msra.mxu0 %v8325_v32  ;;  %v3180_v32 = vmul.f32 %v8681_v42, %v3157_v24 }
 0x42b   : > { %6704 = vmatpush1.bf16.msra.mxu1 %v6703_v2  ;;  %6650 = vmatprep.subr.bf16.mxu0 %v8362_v62  ;;  %v3153_v26 = vpop.permute.xlu1 %3152 }
 0x42c   : > { %v3158_v1 = vsel %vm3154_vm0, %v3145_v8, %v3153_v26  ;;  %v3162_v63 = vsel %vm3154_vm0, %v3153_v26, %v3145_v8  ;;  %2085 = vmatprep.mubr.f32.mxu0 %v7471_v0  ;;  %3117 = vmatprep.mubr.f32.mxu1 %v7471_v0 }
 0x42d   : > { %v3182_v62 = vmul.f32 %v8681_v42, %v3158_v1  ;;  %v3183_v36 = vmul.f32 %v8684_v44, %v3162_v63  ;;  %6366 = vmatmul.mubr.msk.f32.gmra.mrb[10].mxu0 %vm2002_vm12, %v6362_v35 }
 0x42e   : > { %6419 = vmatmul.mubr.msk.f32.gmra.mrb[8].mxu1 %vm2002_vm12, %v6415_v28  ;;  %6652 = vmatpush1.bf16.msra.mxu0 %v8360_v58  ;;  %v6364_v58 = vld [vmem:[%s9761_s2 + $0x38] sm:$0xff] }
 0x42f   : > { %v6707_v14 = vpack.c.bf16 %v3182_v62, %v3180_v32  ;;  %2091 = vmatprep.mubr.f32.mxu0 %v7471_v0  ;;  %3123 = vmatprep.mubr.f32.mxu1 %v7471_v0  ;;  %v6705_v17 = vpack.c.bf16 %v3183_v36, %v3181_v60 }
 0x431   : > { %6367 = vmatmul.mubr.msk.f32.gmra.mrb[12].mxu0 %vm2002_vm12, %v6363_v37  ;;  %6706 = vmatprep.subr.bf16.mxu1 %v6705_v17 }
 0x432   : > { %6420 = vmatmul.mubr.msk.f32.gmra.mrb[10].mxu1 %vm2002_vm12, %v6416_v10  ;;  %2097 = vmatprep.mubr.f32.mxu0 %v7471_v0 }
 0x433   : > { %6708 = vmatpush1.bf16.msra.mxu1 %v6707_v14  ;;  %3265 = vmatprep.mubr.f32.mxu1 %v7471_v0 }
 0x435   : > { %6368 = vmatmul.mubr.msk.f32.gmra.mrb[14].mxu0 %vm2002_vm12, %v6364_v58 }
 0x436   : > { %6425 = vmatmul.mubr.msk.f32.vlgmr.msra.gmra.mrb[12].mxu1 %vm2002_vm12, %v6421_v39  ;;  %2180 = vmatprep.mubr.f32.mxu0 %v7471_v0 }
 0x437   : > { %3271 = vmatprep.mubr.f32.mxu1 %v7471_v0 }
 0x439   : > { %6369 = vmatmul.mubr.msk.f32.vlgmr.msra.gmra.mrb[8].mxu0 %vm2002_vm12, %v1947_v54 }
 0x43a   : > { %6426 = vmatmul.mubr.msk.f32.gmra.mrb[14].mxu1 %vm2002_vm12, %v6422_v41  ;;  %2186 = vmatprep.mubr.f32.mxu0 %v7471_v0 }
 0x43b   : > { %3277 = vmatprep.mubr.f32.mxu1 %v7471_v0 }
 0x43d   : > { %6370 = vmatmul.mubr.msk.f32.gmra.mrb[10].mxu0 %vm2002_vm12, %v1948_v45 }
 0x43e   : > { %6427 = vmatmul.mubr.msk.f32.gmra.mrb[8].mxu1 %vm2002_vm12, %v6423_v46  ;;  %3503 = vmatprep.mubr.f32.mxu0 %v7471_v0 }
 0x43f   : > { %3283 = vmatprep.mubr.f32.mxu1 %v7471_v0 }
 0x442   : > { %6428 = vmatmul.mubr.msk.f32.gmra.mrb[10].mxu1 %vm2002_vm12, %v6424_v12 }
 0x443   : > { %4832 = vmatprep.mubr.f32.mxu1 %v7471_v0 }
 0x504   : > { %v2093_v47 = vpop.f32.mrb[12].mxu0 }
 0x505   : > { %v2095_v13 = vpop.f32.mrb[13].mxu0 }
 0x508   : > { %v2099_v48 = vpop.f32.mrb[14].mxu0 }
 0x509   : > { %v3267_v6 = vpop.f32.mrb[12].mxu1  ;;  %v2101_v7 = vpop.f32.mrb[15].mxu0 }
 0x50a   : > { %v3269_v49 = vpop.f32.mrb[13].mxu1 }
 0x50c   : > { %v2182_v27 = vpop.f32.mrb[8].mxu0 }
 0x50d   : > { %v6889_v11 = vadd.f32 %v3267_v6, %v2182_v27  ;;  %v3273_v50 = vpop.f32.mrb[14].mxu1  ;;  %v2184_v9 = vpop.f32.mrb[9].mxu0 }
 0x50e   : > { %v6890_v18 = vadd.f32 %v3269_v49, %v2184_v9  ;;  %v3275_v43 = vpop.f32.mrb[15].mxu1 }
 0x50f   : > { %v6429_v56 = vmul.f32 -1.442695, %v6889_v11 }
 0x510   : > { %v6430_v57 = vmul.f32 -1.442695, %v6890_v18  ;;  %v2188_v59 = vpop.f32.mrb[10].mxu0 }
 0x511   : > { %7268 = vpow2.f32 %v6429_v56  ;;  %v6891_v4 = vadd.f32 %v3273_v50, %v2188_v59  ;;  %v3279_v15 = vpop.f32.mrb[8].mxu1  ;;  %v2190_v2 = vpop.f32.mrb[11].mxu0 }
 0x512   : > { %7270 = vpow2.f32 %v6430_v57  ;;  %v6893_v16 = vadd.f32 %v3279_v15, %v2093_v47  ;;  %v6892_v8 = vadd.f32 %v3275_v43, %v2190_v2  ;;  %v3281_v19 = vpop.f32.mrb[9].mxu1 }
 0x513   : > { %v6431_v3 = vmul.f32 -1.442695, %v6891_v4  ;;  %v6894_v24 = vadd.f32 %v3281_v19, %v2095_v13 }
 0x514   : > { %v6433_v25 = vmul.f32 -1.442695, %v6893_v16  ;;  %v6432_v35 = vmul.f32 -1.442695, %v6892_v8 }
 0x515   : > { %7272 = vpow2.f32 %v6431_v3  ;;  %v6434_v26 = vmul.f32 -1.442695, %v6894_v24  ;;  %v3285_v28 = vpop.f32.mrb[10].mxu1 }
 0x516   : > { %7274 = vpow2.f32 %v6433_v25  ;;  %v6895_v1 = vadd.f32 %v3285_v28, %v2099_v48  ;;  %v3287_v63 = vpop.f32.mrb[11].mxu1 }
 0x517   : > { %7276 = vpow2.f32 %v6432_v35  ;;  %v6896_v32 = vadd.f32 %v3287_v63, %v2101_v7 }
 0x518   : > { %7278 = vpow2.f32 %v6434_v26  ;;  %v6435_v60 = vmul.f32 -1.442695, %v6895_v1 }
 0x519   : > { %v6436_v62 = vmul.f32 -1.442695, %v6896_v32 }
 0x51a   : > { %7280 = vpow2.f32 %v6435_v60 }
 0x51b   : > { %v7269_v36 = vpop.eup %7268  ;;  %7282 = vpow2.f32 %v6436_v62 }
 0x51c   : > { %v7271_v37 = vpop.eup %7270  ;;  %v3322_v14 = vadd.f32 1.0, %v7269_v36 }
 0x51d   : > { %v3323_v10 = vadd.f32 1.0, %v7271_v37 }
 0x51e   : > { %7284 = vrcp.f32 %v3322_v14 }
 0x51f   : > { %v7273_v17 = vpop.eup %7272  ;;  %7286 = vrcp.f32 %v3323_v10 }
 0x520   : > { %v7275_v58 = vpop.eup %7274  ;;  %v3324_v39 = vadd.f32 1.0, %v7273_v17 }
 0x521   : > { %v7277_v54 = vpop.eup %7276  ;;  %v3326_v41 = vadd.f32 1.0, %v7275_v58 }
 0x522   : > { %v7279_v45 = vpop.eup %7278  ;;  %7288 = vrcp.f32 %v3324_v39  ;;  %v3325_v46 = vadd.f32 1.0, %v7277_v54 }
 0x523   : > { %7290 = vrcp.f32 %v3326_v41  ;;  %v3327_v12 = vadd.f32 1.0, %v7279_v45 }
 0x524   : > { %v7281_v47 = vpop.eup %7280  ;;  %7292 = vrcp.f32 %v3325_v46 }
 0x525   : > { %v7283_v13 = vpop.eup %7282  ;;  %v3328_v48 = vadd.f32 1.0, %v7281_v47  ;;  %7294 = vrcp.f32 %v3327_v12 }
 0x526   : > { %v3329_v7 = vadd.f32 1.0, %v7283_v13 }
 0x527   : > { %7296 = vrcp.f32 %v3328_v48 }
 0x528   : > { %v7285_v6 = vpop.eup %7284  ;;  %7298 = vrcp.f32 %v3329_v7 }
 0x529   : > { %v8794_v49 = vmul.f32 %v7285_v6, %v6889_v11  ;;  %v7287_v27 = vpop.eup %7286 }
 0x52a   : > { %v8798_v43 = vmul.f32 %v7287_v27, %v6890_v18 }
 0x52b   : > { %3390 = vrot.lane.b32.xlu0 %v8794_v49, %s7484_s22 }
 0x52c   : > { %v7289_v50 = vpop.eup %7288 }
 0x52d   : > { %v7291_v9 = vpop.eup %7290  ;;  %v8800_v56 = vmul.f32 %v7289_v50, %v6891_v4 }
 0x52e   : > { %v7293_v57 = vpop.eup %7292  ;;  %v8806_v59 = vmul.f32 %v7291_v9, %v6893_v16 }
 0x52f   : > { %3398 = vrot.lane.b32.xlu0 %v8798_v43, %s7484_s22  ;;  %3392 = vrot.lane.b32.xlu1 %v8800_v56, %s7484_s22  ;;  %v7295_v11 = vpop.eup %7294  ;;  %v8808_v15 = vmul.f32 %v7293_v57, %v6892_v8 }
 0x530   : > { %v8814_v18 = vmul.f32 %v7295_v11, %v6894_v24  ;;  %v3423_v11 = vld [vmem:[#allocation2 + $0x20] sm:$0xff] }
 0x531   : > { %v7297_v2 = vpop.eup %7296 }
 0x532   : > { %v8816_v4 = vmul.f32 %v7297_v2, %v6895_v1  ;;  %v7299_v19 = vpop.eup %7298 }
 0x533   : > { %3400 = vrot.lane.b32.xlu1 %v8808_v15, %s7484_s22  ;;  %3394 = vrot.lane.b32.xlu0 %v8806_v59, %s7484_s22  ;;  %v8822_v16 = vmul.f32 %v7299_v19, %v6896_v32 }
 0x537   : > { %3402 = vrot.lane.b32.xlu0 %v8814_v18, %s7484_s22  ;;  %3396 = vrot.lane.b32.xlu1 %v8816_v4, %s7484_s22 }
 0x53b   : > { %3354 = vrot.lane.b32.xlu0 %v8794_v49, %s7480_s17  ;;  %3404 = vrot.lane.b32.xlu1 %v8822_v16, %s7484_s22 }
 0x53f   : > { %3362 = vrot.lane.b32.xlu0 %v8798_v43, %s7480_s17  ;;  %3356 = vrot.lane.b32.xlu1 %v8800_v56, %s7480_s17 }
 0x543   : > { %3358 = vrot.lane.b32.xlu0 %v8806_v59, %s7480_s17  ;;  %3364 = vrot.lane.b32.xlu1 %v8808_v15, %s7480_s17 }
 0x547   : > { %3366 = vrot.lane.b32.xlu0 %v8814_v18, %s7480_s17  ;;  %3360 = vrot.lane.b32.xlu1 %v8816_v4, %s7480_s17 }
 0x54b   : > { %3629 = vrot.lane.b32.xlu0 %v8794_v49, %s7481_s19  ;;  %3368 = vrot.lane.b32.xlu1 %v8822_v16, %s7480_s17 }
 0x54f   : > { %3637 = vrot.lane.b32.xlu0 %v8798_v43, %s7481_s19  ;;  %3631 = vrot.lane.b32.xlu1 %v8800_v56, %s7481_s19 }
 0x553   : > { %3633 = vrot.lane.b32.xlu0 %v8806_v59, %s7481_s19  ;;  %3639 = vrot.lane.b32.xlu1 %v8808_v15, %s7481_s19 }
 0x557   : > { %3641 = vrot.lane.b32.xlu0 %v8814_v18, %s7481_s19  ;;  %3635 = vrot.lane.b32.xlu1 %v8816_v4, %s7481_s19 }
 0x55b   : > { %3775 = vrot.lane.b32.xlu0 %v8794_v49, %s7475_s12  ;;  %3643 = vrot.lane.b32.xlu1 %v8822_v16, %s7481_s19 }
 0x55f   : > { %3783 = vrot.lane.b32.xlu0 %v8798_v43, %s7475_s12  ;;  %3777 = vrot.lane.b32.xlu1 %v8800_v56, %s7475_s12 }
 0x563   : > { %3779 = vrot.lane.b32.xlu0 %v8806_v59, %s7475_s12  ;;  %3785 = vrot.lane.b32.xlu1 %v8808_v15, %s7475_s12 }
 0x567   : > { %3787 = vrot.lane.b32.xlu0 %v8814_v18, %s7475_s12  ;;  %3781 = vrot.lane.b32.xlu1 %v8816_v4, %s7475_s12 }
 0x56b   : > { %4043 = vrot.lane.b32.xlu0 %v8794_v49, %s7476_s14  ;;  %3789 = vrot.lane.b32.xlu1 %v8822_v16, %s7475_s12 }
 0x56f   : > { %4051 = vrot.lane.b32.xlu0 %v8798_v43, %s7476_s14  ;;  %4045 = vrot.lane.b32.xlu1 %v8800_v56, %s7476_s14 }
 0x573   : > { %4047 = vrot.lane.b32.xlu0 %v8806_v59, %s7476_s14  ;;  %4053 = vrot.lane.b32.xlu1 %v8808_v15, %s7476_s14 }
 0x577   : > { %4055 = vrot.lane.b32.xlu0 %v8814_v18, %s7476_s14  ;;  %4049 = vrot.lane.b32.xlu1 %v8816_v4, %s7476_s14 }
 0x57b   : > { %4189 = vrot.lane.b32.xlu0 %v8794_v49, %s7482_s20  ;;  %4057 = vrot.lane.b32.xlu1 %v8822_v16, %s7476_s14 }
 0x57f   : > { %4197 = vrot.lane.b32.xlu0 %v8798_v43, %s7482_s20  ;;  %4191 = vrot.lane.b32.xlu1 %v8800_v56, %s7482_s20 }
 0x583   : > { %4193 = vrot.lane.b32.xlu0 %v8806_v59, %s7482_s20  ;;  %4199 = vrot.lane.b32.xlu1 %v8808_v15, %s7482_s20 }
 0x587   : > { %4201 = vrot.lane.b32.xlu0 %v8814_v18, %s7482_s20  ;;  %4195 = vrot.lane.b32.xlu1 %v8816_v4, %s7482_s20 }
 0x58b   : > { %4335 = vrot.lane.b32.xlu0 %v8794_v49, %s7483_s21  ;;  %4203 = vrot.lane.b32.xlu1 %v8822_v16, %s7482_s20 }
 0x58f   : > { %4343 = vrot.lane.b32.xlu0 %v8798_v43, %s7483_s21  ;;  %4337 = vrot.lane.b32.xlu1 %v8800_v56, %s7483_s21 }
 0x593   : > { %4339 = vrot.lane.b32.xlu0 %v8806_v59, %s7483_s21  ;;  %4345 = vrot.lane.b32.xlu1 %v8808_v15, %s7483_s21 }
 0x597   : > { %4347 = vrot.lane.b32.xlu0 %v8814_v18, %s7483_s21  ;;  %4341 = vrot.lane.b32.xlu1 %v8816_v4, %s7483_s21 }
 0x59b   : > { %4481 = vrot.lane.b32.xlu0 %v8794_v49, %s7485_s15  ;;  %4349 = vrot.lane.b32.xlu1 %v8822_v16, %s7483_s21 }
 0x59d   : > { %v3391_v8 = vpop.permute.xlu0 %3390 }
 0x59f   : > { %4489 = vrot.lane.b32.xlu0 %v8798_v43, %s7485_s15  ;;  %4483 = vrot.lane.b32.xlu1 %v8800_v56, %s7485_s15 }
 0x5a1   : > { %v3399_v3 = vpop.permute.xlu0 %3398  ;;  %v3393_v24 = vpop.permute.xlu1 %3392 }
 0x5a2   : > { %v3410_v25 = vsel %vm1967_vm14, %v3399_v3, %v3391_v8  ;;  %v3406_v35 = vsel %vm1967_vm14, %v3391_v8, %v3399_v3 }
 0x5a3   : > { %4485 = vrot.lane.b32.xlu0 %v8806_v59, %s7485_s15  ;;  %4491 = vrot.lane.b32.xlu1 %v8808_v15, %s7485_s15  ;;  %v3414_v1 = vmul.f32 %v3410_v25, %v8570_v52  ;;  %v3415_v60 = vmul.f32 %v3406_v35, %v8573_v53 }
 0x5a5   : > { %v3401_v26 = vpop.permute.xlu1 %3400  ;;  %v3395_v28 = vpop.permute.xlu0 %3394 }
 0x5a6   : > { %v3407_v63 = vsel %vm1967_vm14, %v3393_v24, %v3401_v26  ;;  %v3411_v32 = vsel %vm1967_vm14, %v3401_v26, %v3393_v24 }
 0x5a7   : > { %v3416_v62 = vmul.f32 %v3411_v32, %v8570_v52  ;;  %v3417_v36 = vmul.f32 %v3407_v63, %v8573_v53  ;;  %4493 = vrot.lane.b32.xlu0 %v8814_v18, %s7485_s15  ;;  %4487 = vrot.lane.b32.xlu1 %v8816_v4, %s7485_s15 }
 0x5a9   : > { %v6711_v37 = vpack.c.bf16 %v3416_v62, %v3414_v1  ;;  %v3403_v14 = vpop.permute.xlu0 %3402  ;;  %v3397_v10 = vpop.permute.xlu1 %3396  ;;  %v6709_v17 = vpack.c.bf16 %v3417_v36, %v3415_v60 }
 0x5aa   : > { %v3408_v58 = vsel %vm1967_vm14, %v3395_v28, %v3403_v14  ;;  %v3412_v39 = vsel %vm1967_vm14, %v3403_v14, %v3395_v28  ;;  %v3424_v28 = vld [vmem:[#allocation2 + $0x28] sm:$0xff] }
 0x5ab   : > { %6710 = vmatprep.subr.bf16.mxu0 %v6709_v17  ;;  %4495 = vrot.lane.b32.xlu1 %v8822_v16, %s7485_s15  ;;  %v3418_v12 = vmul.f32 %v3412_v39, %v8570_v52  ;;  %v3419_v47 = vmul.f32 %v3408_v58, %v8573_v53 }
 0x5ac   : > { %6712 = vmatpush1.bf16.msra.mxu0 %v6711_v37  ;;  %v3425_v37 = vld [vmem:[#allocation2 + $0x30] sm:$0xff] }
 0x5ad   : > { %v3355_v54 = vpop.permute.xlu0 %3354  ;;  %v3405_v41 = vpop.permute.xlu1 %3404 }
 0x5ae   : > { %v3409_v45 = vsel %vm1967_vm14, %v3397_v10, %v3405_v41  ;;  %v3413_v46 = vsel %vm1967_vm14, %v3405_v41, %v3397_v10 }
 0x5af   : > { %v3420_v13 = vmul.f32 %v3413_v46, %v8570_v52  ;;  %v3421_v48 = vmul.f32 %v3409_v45, %v8573_v53  ;;  %v3426_v46 = vld [vmem:[#allocation2 + $0x38] sm:$0xff] }
 0x5b1   : > { %v6715_v6 = vpack.c.bf16 %v3420_v13, %v3418_v12  ;;  %v3363_v7 = vpop.permute.xlu0 %3362  ;;  %v3357_v27 = vpop.permute.xlu1 %3356  ;;  %v6713_v50 = vpack.c.bf16 %v3421_v48, %v3419_v47 }
 0x5b2   : > { %v3370_v9 = vsel %vm1918_vm10, %v3355_v54, %v3363_v7  ;;  %v3374_v57 = vsel %vm1918_vm10, %v3363_v7, %v3355_v54 }
 0x5b3   : > { %6714 = vmatprep.subr.bf16.mxu0 %v6713_v50  ;;  %v3378_v24 = vmul.f32 %v3374_v57, %v8302_v21  ;;  %v3379_v25 = vmul.f32 %v3370_v9, %v8305_v22 }
 0x5b4   : > { %6716 = vmatpush1.bf16.msra.mxu0 %v6715_v6 }
 0x5b5   : > { %v3359_v2 = vpop.permute.xlu0 %3358  ;;  %v3365_v19 = vpop.permute.xlu1 %3364 }
 0x5b6   : > { %v3371_v8 = vsel %vm1918_vm10, %v3357_v27, %v3365_v19  ;;  %v3375_v3 = vsel %vm1918_vm10, %v3365_v19, %v3357_v27  ;;  %v3386_v27 = vld [vmem:[#allocation2] sm:$0xff] }
 0x5b7   : > { %v3380_v35 = vmul.f32 %v3375_v3, %v8302_v21  ;;  %v3381_v26 = vmul.f32 %v3371_v8, %v8305_v22  ;;  %6437 = vmatmul.mubr.msk.f32.vlgmr.msra.gmra.mrb[16].mxu0 %vm2002_vm12, %v3423_v11 }
 0x5b8   : > { %3509 = vmatprep.mubr.f32.mxu0 %v7471_v0 }
 0x5b9   : > { %v6719_v1 = vpack.c.bf16 %v3380_v35, %v3378_v24  ;;  %v3367_v63 = vpop.permute.xlu0 %3366  ;;  %v3361_v32 = vpop.permute.xlu1 %3360  ;;  %v6717_v60 = vpack.c.bf16 %v3381_v26, %v3379_v25  ;;  %v3387_v24 = vld [vmem:[#allocation2 + $0x8] sm:$0xff] }
 0x5ba   : > { %v3372_v62 = vsel %vm1918_vm10, %v3359_v2, %v3367_v63  ;;  %v3376_v36 = vsel %vm1918_vm10, %v3367_v63, %v3359_v2 }
 0x5bb   : > { %6438 = vmatmul.mubr.msk.f32.gmra.mrb[18].mxu0 %vm2002_vm12, %v3424_v28  ;;  %6718 = vmatprep.subr.bf16.mxu0 %v6717_v60  ;;  %v3382_v39 = vmul.f32 %v3376_v36, %v8302_v21  ;;  %v3383_v54 = vmul.f32 %v3372_v62, %v8305_v22 }
 0x5bc   : > { %6720 = vmatpush1.bf16.msra.mxu0 %v6719_v1  ;;  %3515 = vmatprep.mubr.f32.mxu0 %v7471_v0 }
 0x5bd   : > { %v3630_v14 = vpop.permute.xlu0 %3629  ;;  %v3369_v10 = vpop.permute.xlu1 %3368 }
 0x5be   : > { %v3373_v17 = vsel %vm1918_vm10, %v3361_v32, %v3369_v10  ;;  %v3377_v58 = vsel %vm1918_vm10, %v3369_v10, %v3361_v32  ;;  %v3388_v32 = vld [vmem:[#allocation2 + $0x10] sm:$0xff] }
 0x5bf   : > { %v3384_v41 = vmul.f32 %v3377_v58, %v8302_v21  ;;  %v3385_v45 = vmul.f32 %v3373_v17, %v8305_v22  ;;  %6439 = vmatmul.mubr.msk.f32.gmra.mrb[20].mxu0 %vm2002_vm12, %v3425_v37 }
 0x5c0   : > { %3521 = vmatprep.mubr.f32.mxu0 %v7471_v0 }
 0x5c1   : > { %v6723_v12 = vpack.c.bf16 %v3384_v41, %v3382_v39  ;;  %v3638_v47 = vpop.permute.xlu0 %3637  ;;  %v3632_v13 = vpop.permute.xlu1 %3631  ;;  %v6721_v48 = vpack.c.bf16 %v3385_v45, %v3383_v54  ;;  %v3389_v39 = vld [vmem:[#allocation2 + $0x18] sm:$0xff] }
 0x5c2   : > { %v3645_v6 = vsel %vm2221_vm11, %v3630_v14, %v3638_v47  ;;  %v3649_v7 = vsel %vm2221_vm11, %v3638_v47, %v3630_v14 }
 0x5c3   : > { %6440 = vmatmul.mubr.msk.f32.gmra.mrb[22].mxu0 %vm2002_vm12, %v3426_v46  ;;  %6722 = vmatprep.subr.bf16.mxu0 %v6721_v48  ;;  %v3653_v2 = vmul.f32 %v3649_v7, %v8355_v55  ;;  %v3654_v19 = vmul.f32 %v3645_v6, %v8335_v40 }
 0x5c4   : > { %6724 = vmatpush1.bf16.msra.mxu0 %v6723_v12  ;;  %3604 = vmatprep.mubr.f32.mxu0 %v7471_v0 }
 0x5c5   : > { %v3634_v50 = vpop.permute.xlu0 %3633  ;;  %v3640_v9 = vpop.permute.xlu1 %3639 }
 0x5c6   : > { %v3646_v57 = vsel %vm2221_vm11, %v3632_v13, %v3640_v9  ;;  %v3650_v11 = vsel %vm2221_vm11, %v3640_v9, %v3632_v13  ;;  %v3662_v13 = vld [vmem:[#allocation2 + $0x40] sm:$0xff] }
 0x5c7   : > { %v3655_v8 = vmul.f32 %v3650_v11, %v8355_v55  ;;  %v3656_v3 = vmul.f32 %v3646_v57, %v8335_v40  ;;  %6441 = vmatmul.mubr.msk.f32.vlgmr.msra.gmra.mrb[16].mxu0 %vm2002_vm12, %v3386_v27 }
 0x5c8   : > { %3610 = vmatprep.mubr.f32.mxu0 %v7471_v0 }
 0x5c9   : > { %v6727_v25 = vpack.c.bf16 %v3655_v8, %v3653_v2  ;;  %v3642_v35 = vpop.permute.xlu0 %3641  ;;  %v3636_v26 = vpop.permute.xlu1 %3635  ;;  %v6725_v28 = vpack.c.bf16 %v3656_v3, %v3654_v19  ;;  %v3663_v2 = vld [vmem:[#allocation2 + $0x48] sm:$0xff] }
 0x5ca   : > { %v3647_v1 = vsel %vm2221_vm11, %v3634_v50, %v3642_v35  ;;  %v3651_v63 = vsel %vm2221_vm11, %v3642_v35, %v3634_v50 }
 0x5cb   : > { %6442 = vmatmul.mubr.msk.f32.gmra.mrb[18].mxu0 %vm2002_vm12, %v3387_v24  ;;  %6726 = vmatprep.subr.bf16.mxu0 %v6725_v28  ;;  %v3657_v14 = vmul.f32 %v3651_v63, %v8355_v55  ;;  %v3658_v10 = vmul.f32 %v3647_v1, %v8335_v40 }
 0x5cc   : > { %6728 = vmatpush1.bf16.msra.mxu0 %v6727_v25  ;;  %3616 = vmatprep.mubr.f32.mxu0 %v7471_v0 }
 0x5cd   : > { %v3776_v60 = vpop.permute.xlu0 %3775  ;;  %v3644_v62 = vpop.permute.xlu1 %3643 }
 0x5ce   : > { %v3648_v36 = vsel %vm2221_vm11, %v3636_v26, %v3644_v62  ;;  %v3652_v37 = vsel %vm2221_vm11, %v3644_v62, %v3636_v26  ;;  %v3664_v26 = vld [vmem:[#allocation2 + $0x50] sm:$0xff] }
 0x5cf   : > { %v3659_v17 = vmul.f32 %v3652_v37, %v8355_v55  ;;  %v3660_v58 = vmul.f32 %v3648_v36, %v8335_v40  ;;  %6443 = vmatmul.mubr.msk.f32.gmra.mrb[20].mxu0 %vm2002_vm12, %v3388_v32 }
 0x5d0   : > { %3622 = vmatprep.mubr.f32.mxu0 %v7471_v0 }
 0x5d1   : > { %v6731_v54 = vpack.c.bf16 %v3659_v17, %v3657_v14  ;;  %v3784_v41 = vpop.permute.xlu0 %3783  ;;  %v3778_v45 = vpop.permute.xlu1 %3777  ;;  %v6729_v46 = vpack.c.bf16 %v3660_v58, %v3658_v10  ;;  %v3665_v10 = vld [vmem:[#allocation2 + $0x58] sm:$0xff] }
 0x5d2   : > { %v3791_v12 = vsel %vm797_vm5, %v3776_v60, %v3784_v41  ;;  %v3795_v47 = vsel %vm797_vm5, %v3784_v41, %v3776_v60  ;;  %v3924_v60 = vmul.f32 %v8808_v15, %v8426_v61  ;;  %v3922_v41 = vmul.f32 %v8798_v43, %v8426_v61 }
 0x5d3   : > { %6444 = vmatmul.mubr.msk.f32.gmra.mrb[22].mxu0 %vm2002_vm12, %v3389_v39  ;;  %6730 = vmatprep.subr.bf16.mxu0 %v6729_v46  ;;  %v3799_v50 = vmul.f32 %v3795_v47, %v8389_v33  ;;  %v3800_v9 = vmul.f32 %v3791_v12, %v8392_v34  ;;  %v3928_v12 = vmul.f32 %v8822_v16, %v8426_v61  ;;  %v3808_v47 = vld [vmem:[#allocation2 + $0x60] sm:$0xff] }
 0x5d4   : > { %6732 = vmatpush1.bf16.msra.mxu0 %v6731_v54  ;;  %3742 = vmatprep.mubr.f32.mxu0 %v7471_v0  ;;  %v6741_v46 = vpack.c.bf16 %v3924_v60, %v3922_v41 }
 0x5d5   : > { %v3780_v48 = vpop.permute.xlu0 %3779  ;;  %v3786_v6 = vpop.permute.xlu1 %3785 }
 0x5d6   : > { %v3792_v7 = vsel %vm797_vm5, %v3778_v45, %v3786_v6  ;;  %v3796_v27 = vsel %vm797_vm5, %v3786_v6, %v3778_v45  ;;  %v3923_v45 = vmul.f32 %v8800_v56, %v8446_v20 }
 0x5d7   : > { %v3801_v57 = vmul.f32 %v3796_v27, %v8389_v33  ;;  %v3802_v11 = vmul.f32 %v3792_v7, %v8392_v34  ;;  %6445 = vmatmul.mubr.msk.f32.vlgmr.msra.gmra.mrb[16].mxu0 %vm2002_vm12, %v3662_v13  ;;  %v3921_v13 = vmul.f32 %v8794_v49, %v8446_v20  ;;  %v3926_v7 = vmul.f32 %v8814_v18, %v8426_v61 }
 0x5d8   : > { %3748 = vmatprep.mubr.f32.mxu0 %v7471_v0 }
 0x5d9   : > { %v6735_v19 = vpack.c.bf16 %v3801_v57, %v3799_v50  ;;  %v3788_v8 = vpop.permute.xlu0 %3787  ;;  %v3782_v3 = vpop.permute.xlu1 %3781  ;;  %v6733_v24 = vpack.c.bf16 %v3802_v11, %v3800_v9  ;;  %v6743_v9 = vpack.c.bf16 %v3923_v45, %v3921_v13  ;;  %v3927_v57 = vmul.f32 %v8816_v4, %v8446_v20 }
 0x5da   : > { %v3793_v25 = vsel %vm797_vm5, %v3780_v48, %v3788_v8  ;;  %v3797_v35 = vsel %vm797_vm5, %v3788_v8, %v3780_v48  ;;  %v3925_v8 = vmul.f32 %v8806_v59, %v8446_v20 }
 0x5db   : > { %6446 = vmatmul.mubr.msk.f32.gmra.mrb[18].mxu0 %vm2002_vm12, %v3663_v2  ;;  %6734 = vmatprep.subr.bf16.mxu0 %v6733_v24  ;;  %v3803_v62 = vmul.f32 %v3797_v35, %v8389_v33  ;;  %v3804_v36 = vmul.f32 %v3793_v25, %v8392_v34  ;;  %v6745_v2 = vpack.c.bf16 %v3928_v12, %v3926_v7 }
 0x5dc   : > { %6736 = vmatpush1.bf16.msra.mxu0 %v6735_v19  ;;  %3754 = vmatprep.mubr.f32.mxu0 %v7471_v0  ;;  %v3809_v19 = vld [vmem:[#allocation2 + $0x68] sm:$0xff]  ;;  %v6747_v35 = vpack.c.bf16 %v3927_v57, %v3925_v8 }
 0x5dd   : > { %v4044_v28 = vpop.permute.xlu0 %4043  ;;  %v3790_v1 = vpop.permute.xlu1 %3789 }
 0x5de   : > { %v3794_v63 = vsel %vm797_vm5, %v3782_v3, %v3790_v1  ;;  %v3798_v32 = vsel %vm797_vm5, %v3790_v1, %v3782_v3  ;;  %v3810_v1 = vld [vmem:[#allocation2 + $0x70] sm:$0xff] }
 0x5df   : > { %v3805_v37 = vmul.f32 %v3798_v32, %v8389_v33  ;;  %v3806_v14 = vmul.f32 %v3794_v63, %v8392_v34  ;;  %6447 = vmatmul.mubr.msk.f32.gmra.mrb[20].mxu0 %vm2002_vm12, %v3664_v26 }
 0x5e0   : > { %3760 = vmatprep.mubr.f32.mxu0 %v7471_v0 }
 0x5e1   : > { %v6739_v17 = vpack.c.bf16 %v3805_v37, %v3803_v62  ;;  %v4052_v58 = vpop.permute.xlu0 %4051  ;;  %v4046_v39 = vpop.permute.xlu1 %4045  ;;  %v6737_v54 = vpack.c.bf16 %v3806_v14, %v3804_v36  ;;  %v3811_v36 = vld [vmem:[#allocation2 + $0x78] sm:$0xff] }
 0x5e2   : > { %v4063_v27 = vsel %vm1073_vm6, %v4052_v58, %v4044_v28  ;;  %v4059_v37 = vsel %vm1073_vm6, %v4044_v28, %v4052_v58  ;;  %v3930_v28 = vld [vmem:[#allocation2 + $0x80] sm:$0xff] }
 0x5e3   : > { %6448 = vmatmul.mubr.msk.f32.gmra.mrb[22].mxu0 %vm2002_vm12, %v3665_v10  ;;  %6738 = vmatprep.subr.bf16.mxu0 %v6737_v54  ;;  %v4068_v3 = vmul.f32 %v4063_v27, %v8462_v31  ;;  %v4067_v45 = vmul.f32 %v4059_v37, %v8491_v51 }
 0x5e4   : > { %6740 = vmatpush1.bf16.msra.mxu0 %v6739_v17  ;;  %3888 = vmatprep.mubr.f32.mxu0 %v7471_v0 }
 0x5e5   : > { %v4048_v48 = vpop.permute.xlu0 %4047  ;;  %6742 = vmatprep.subr.bf16.mxu0 %v6741_v46  ;;  %v4054_v6 = vpop.permute.xlu1 %4053 }
 0x5e6   : > { %v4064_v50 = vsel %vm1073_vm6, %v4054_v6, %v4046_v39  ;;  %v4060_v60 = vsel %vm1073_vm6, %v4046_v39, %v4054_v6 }
 0x5e7   : > { %v4070_v11 = vmul.f32 %v4064_v50, %v8462_v31  ;;  %6449 = vmatmul.mubr.msk.f32.vlgmr.msra.gmra.mrb[16].mxu0 %vm2002_vm12, %v3808_v47  ;;  %v4069_v17 = vmul.f32 %v4060_v60, %v8491_v51 }
 0x5e8   : > { %6744 = vmatpush1.bf16.msra.mxu0 %v6743_v9  ;;  %3894 = vmatprep.mubr.f32.mxu0 %v7471_v0 }
 0x5e9   : > { %v4056_v24 = vpop.permute.xlu0 %4055  ;;  %v4050_v25 = vpop.permute.xlu1 %4049  ;;  %6746 = vmatprep.subr.bf16.mxu0 %v6745_v2  ;;  %v6749_v26 = vpack.c.bf16 %v4070_v11, %v4068_v3  ;;  %v6751_v6 = vpack.c.bf16 %v4069_v17, %v4067_v45 }
 0x5ea   : > { %v4065_v54 = vsel %vm1073_vm6, %v4056_v24, %v4048_v48  ;;  %v4061_v58 = vsel %vm1073_vm6, %v4048_v48, %v4056_v24  ;;  %v3931_v48 = vld [vmem:[#allocation2 + $0x88] sm:$0xff]  ;;  %v3932_v24 = vld [vmem:[#allocation2 + $0x90] sm:$0xff] }
 0x5eb   : > { %6450 = vmatmul.mubr.msk.f32.gmra.mrb[18].mxu0 %vm2002_vm12, %v3809_v19  ;;  %v4072_v12 = vmul.f32 %v4065_v54, %v8462_v31  ;;  %v4071_v11 = vmul.f32 %v4061_v58, %v8491_v51 }
 0x5ec   : > { %6748 = vmatpush1.bf16.msra.mxu0 %v6747_v35  ;;  %3900 = vmatprep.mubr.f32.mxu0 %v7471_v0 }
 0x5ed   : > { %v4190_v63 = vpop.permute.xlu0 %4189  ;;  %v4058_v32 = vpop.permute.xlu1 %4057  ;;  %6750 = vmatprep.subr.bf16.mxu0 %v6749_v26 }
 0x5ee   : > { %v4066_v62 = vsel %vm1073_vm6, %v4058_v32, %v4050_v25  ;;  %v4062_v39 = vsel %vm1073_vm6, %v4050_v25, %v4058_v32  ;;  %v3933_v32 = vld [vmem:[#allocation2 + $0x98] sm:$0xff] }
 0x5ef   : > { %6451 = vmatmul.mubr.msk.f32.gmra.mrb[20].mxu0 %vm2002_vm12, %v3810_v1  ;;  %v4074_v41 = vmul.f32 %v4066_v62, %v8462_v31  ;;  %v4073_v7 = vmul.f32 %v4062_v39, %v8491_v51 }
 0x5f0   : > { %3906 = vmatprep.mubr.f32.mxu0 %v7471_v0 }
 0x5f1   : > { %v4198_v14 = vpop.permute.xlu0 %4197  ;;  %v4192_v10 = vpop.permute.xlu1 %4191  ;;  %v6753_v57 = vpack.c.bf16 %v4074_v41, %v4072_v12  ;;  %v6755_v3 = vpack.c.bf16 %v4073_v7, %v4071_v11 }
 0x5f2   : > { %v4209_v46 = vsel %vm2834_vm13, %v4198_v14, %v4190_v63  ;;  %v4205_v60 = vsel %vm2834_vm13, %v4190_v63, %v4198_v14  ;;  %v4076_v63 = vld [vmem:[#allocation2 + $0xa0] sm:$0xff] }
 0x5f3   : > { %6452 = vmatmul.mubr.msk.f32.gmra.mrb[22].mxu0 %vm2002_vm12, %v3811_v36  ;;  %v4214_v50 = vmul.f32 %v4209_v46, %v8527_v23  ;;  %v4213_v39 = vmul.f32 %v4205_v60, %v8540_v29 }
 0x5f4   : > { %4010 = vmatprep.mubr.f32.mxu0 %v7471_v0 }
 0x5f5   : > { %v4194_v47 = vpop.permute.xlu0 %4193  ;;  %v4200_v13 = vpop.permute.xlu1 %4199 }
 0x5f6   : > { %v4210_v27 = vsel %vm2834_vm13, %v4200_v13, %v4192_v10  ;;  %v4206_v26 = vsel %vm2834_vm13, %v4192_v10, %v4200_v13 }
 0x5f7   : > { %v4216_v9 = vmul.f32 %v4210_v27, %v8527_v23  ;;  %6453 = vmatmul.mubr.msk.f32.vlgmr.msra.gmra.mrb[16].mxu0 %vm2002_vm12, %v3930_v28  ;;  %v4215_v37 = vmul.f32 %v4206_v26, %v8540_v29 }
 0x5f8   : > { %6752 = vmatpush1.bf16.msra.mxu0 %v6751_v6  ;;  %4016 = vmatprep.mubr.f32.mxu0 %v7471_v0 }
 0x5f9   : > { %6754 = vmatprep.subr.bf16.mxu0 %v6753_v57  ;;  %v4202_v2 = vpop.permute.xlu0 %4201  ;;  %v4196_v19 = vpop.permute.xlu1 %4195  ;;  %v6757_v8 = vpack.c.bf16 %v4216_v9, %v4214_v50  ;;  %v6759_v58 = vpack.c.bf16 %v4215_v37, %v4213_v39 }
 0x5fa   : > { %v4211_v17 = vsel %vm2834_vm13, %v4202_v2, %v4194_v47  ;;  %v4207_v14 = vsel %vm2834_vm13, %v4194_v47, %v4202_v2  ;;  %v4077_v47 = vld [vmem:[#allocation2 + $0xa8] sm:$0xff]  ;;  %v4078_v2 = vld [vmem:[#allocation2 + $0xb0] sm:$0xff] }
 0x5fb   : > { %6454 = vmatmul.mubr.msk.f32.gmra.mrb[18].mxu0 %vm2002_vm12, %v3931_v48  ;;  %v4218_v45 = vmul.f32 %v4211_v17, %v8527_v23  ;;  %v4217_v50 = vmul.f32 %v4207_v14, %v8540_v29 }
 0x5fc   : > { %6756 = vmatpush1.bf16.msra.mxu0 %v6755_v3  ;;  %4022 = vmatprep.mubr.f32.mxu0 %v7471_v0 }
 0x5fd   : > { %6758 = vmatprep.subr.bf16.mxu0 %v6757_v8  ;;  %v4336_v25 = vpop.permute.xlu0 %4335  ;;  %v4204_v35 = vpop.permute.xlu1 %4203 }
 0x5fe   : > { %v4212_v1 = vsel %vm2834_vm13, %v4204_v35, %v4196_v19  ;;  %v4208_v10 = vsel %vm2834_vm13, %v4196_v19, %v4204_v35  ;;  %v4079_v35 = vld [vmem:[#allocation2 + $0xb8] sm:$0xff] }
 0x5ff   : > { %6455 = vmatmul.mubr.msk.f32.gmra.mrb[20].mxu0 %vm2002_vm12, %v3932_v24  ;;  %v4220_v54 = vmul.f32 %v4212_v1, %v8527_v23  ;;  %v4219_v12 = vmul.f32 %v4208_v10, %v8540_v29 }
 0x600   : > { %4028 = vmatprep.mubr.f32.mxu0 %v7471_v0 }
 0x601   : > { %v4344_v62 = vpop.permute.xlu0 %4343  ;;  %v4338_v36 = vpop.permute.xlu1 %4337  ;;  %v6761_v27 = vpack.c.bf16 %v4220_v54, %v4218_v45  ;;  %v6763_v48 = vpack.c.bf16 %v4219_v12, %v4217_v50 }
 0x602   : > { %v4355_v41 = vsel %vm2994_vm15, %v4344_v62, %v4336_v25  ;;  %v4351_v26 = vsel %vm2994_vm15, %v4336_v25, %v4344_v62  ;;  %v4222_v25 = vld [vmem:[#allocation2 + $0xc0] sm:$0xff] }
 0x603   : > { %6456 = vmatmul.mubr.msk.f32.gmra.mrb[22].mxu0 %vm2002_vm12, %v3933_v32  ;;  %v4360_v6 = vmul.f32 %v4355_v41, %v8602_v30  ;;  %v4359_v10 = vmul.f32 %v4351_v26, %v8617_v38 }
 0x604   : > { %4156 = vmatprep.mubr.f32.mxu0 %v7471_v0 }
 0x605   : > { %v4340_v46 = vpop.permute.xlu0 %4339  ;;  %v4346_v28 = vpop.permute.xlu1 %4345 }
 0x606   : > { %v4356_v13 = vsel %vm2994_vm15, %v4346_v28, %v4338_v36  ;;  %v4352_v3 = vsel %vm2994_vm15, %v4338_v36, %v4346_v28 }
 0x607   : > { %v4362_v7 = vmul.f32 %v4356_v13, %v8602_v30  ;;  %6457 = vmatmul.mubr.msk.f32.vlgmr.msra.gmra.mrb[16].mxu0 %vm2002_vm12, %v4076_v63  ;;  %v4361_v60 = vmul.f32 %v4352_v3, %v8617_v38 }
 0x608   : > { %6760 = vmatpush1.bf16.msra.mxu0 %v6759_v58  ;;  %4162 = vmatprep.mubr.f32.mxu0 %v7471_v0 }
 0x609   : > { %6762 = vmatprep.subr.bf16.mxu0 %v6761_v27  ;;  %v4348_v9 = vpop.permute.xlu0 %4347  ;;  %v4342_v57 = vpop.permute.xlu1 %4341  ;;  %v6765_v11 = vpack.c.bf16 %v4362_v7, %v4360_v6  ;;  %v6767_v63 = vpack.c.bf16 %v4361_v60, %v4359_v10  ;;  %v4368_v60 = vld [vmem:[#allocation2 + $0xe0] sm:$0xff] }
 0x60a   : > { %v4357_v37 = vsel %vm2994_vm15, %v4348_v9, %v4340_v46  ;;  %v4353_v62 = vsel %vm2994_vm15, %v4340_v46, %v4348_v9  ;;  %v4223_v46 = vld [vmem:[#allocation2 + $0xc8] sm:$0xff] }
 0x60b   : > { %6458 = vmatmul.mubr.msk.f32.gmra.mrb[18].mxu0 %vm2002_vm12, %v4077_v47  ;;  %v4364_v39 = vmul.f32 %v4357_v37, %v8602_v30  ;;  %v4363_v13 = vmul.f32 %v4353_v62, %v8617_v38  ;;  %v4224_v47 = vld [vmem:[#allocation2 + $0xd0] sm:$0xff] }
 0x60c   : > { %6764 = vmatpush1.bf16.msra.mxu0 %v6763_v48  ;;  %4168 = vmatprep.mubr.f32.mxu0 %v7471_v0  ;;  %v4370_v62 = vld [vmem:[#allocation2 + $0xf0] sm:$0xff] }
 0x60d   : > { %6766 = vmatprep.subr.bf16.mxu0 %v6765_v11  ;;  %v4482_v19 = vpop.permute.xlu0 %4481  ;;  %v4350_v8 = vpop.permute.xlu1 %4349 }
 0x60e   : > { %v4358_v24 = vsel %vm2994_vm15, %v4350_v8, %v4342_v57  ;;  %v4354_v36 = vsel %vm2994_vm15, %v4342_v57, %v4350_v8 }
 0x60f   : > { %6459 = vmatmul.mubr.msk.f32.gmra.mrb[20].mxu0 %vm2002_vm12, %v4078_v2  ;;  %v4366_v17 = vmul.f32 %v4358_v24, %v8602_v30  ;;  %v4365_v14 = vmul.f32 %v4354_v36, %v8617_v38  ;;  %v4225_v2 = vld [vmem:[#allocation2 + $0xd8] sm:$0xff] }
 0x610   : > { %4174 = vmatprep.mubr.f32.mxu0 %v7471_v0 }
 0x611   : > { %v4490_v1 = vpop.permute.xlu0 %4489  ;;  %v4484_v32 = vpop.permute.xlu1 %4483  ;;  %v6769_v12 = vpack.c.bf16 %v4366_v17, %v4364_v39  ;;  %v6771_v50 = vpack.c.bf16 %v4365_v14, %v4363_v13  ;;  %v4371_v39 = vld [vmem:[#allocation2 + $0xf8] sm:$0xff]  ;;  %v4516_v14 = vld [vmem:[#allocation2 + $0x110] sm:$0xff] }
 0x612   : > { %v4501_v54 = vsel %vm3154_vm0, %v4490_v1, %v4482_v19  ;;  %v4497_v8 = vsel %vm3154_vm0, %v4482_v19, %v4490_v1 }
 0x613   : > { %6460 = vmatmul.mubr.msk.f32.gmra.mrb[22].mxu0 %vm2002_vm12, %v4079_v35  ;;  %v4506_v28 = vmul.f32 %v4501_v54, %v8684_v44  ;;  %v4369_v54 = vld [vmem:[#allocation2 + $0xe8] sm:$0xff] }
 0x614   : > { %4302 = vmatprep.mubr.f32.mxu0 %v7471_v0 }
 0x615   : > { %v4492_v41 = vpop.permute.xlu1 %4491  ;;  %v4486_v6 = vpop.permute.xlu0 %4485 }
 0x616   : > { %v4502_v45 = vsel %vm3154_vm0, %v4492_v41, %v4484_v32  ;;  %v4498_v57 = vsel %vm3154_vm0, %v4484_v32, %v4492_v41  ;;  %v4505_v32 = vmul.f32 %v4497_v8, %v8681_v42  ;;  %v4514_v41 = vld [vmem:[#allocation2 + $0x100] sm:$0xff] }
 0x617   : > { %v4508_v58 = vmul.f32 %v4502_v45, %v8684_v44  ;;  %6461 = vmatmul.mubr.msk.f32.vlgmr.msra.gmra.mrb[16].mxu0 %vm2002_vm12, %v4222_v25  ;;  %v4507_v3 = vmul.f32 %v4498_v57, %v8681_v42  ;;  %v4517_v45 = vld [vmem:[#allocation2 + $0x118] sm:$0xff] }
 0x618   : > { %6768 = vmatpush1.bf16.msra.mxu0 %v6767_v63  ;;  %4308 = vmatprep.mubr.f32.mxu0 %v7471_v0  ;;  %v4515_v63 = vld [vmem:[#allocation2 + $0x108] sm:$0xff] }
 0x619   : > { %6770 = vmatprep.subr.bf16.mxu0 %v6769_v12  ;;  %v4488_v7 = vpop.permute.xlu1 %4487  ;;  %v6773_v27 = vpack.c.bf16 %v4508_v58, %v4506_v28  ;;  %v4494_v11 = vpop.permute.xlu0 %4493  ;;  %v6775_v37 = vpack.c.bf16 %v4507_v3, %v4505_v32 }
 0x61a   : > { %v4503_v24 = vsel %vm3154_vm0, %v4494_v11, %v4486_v6  ;;  %v4499_v19 = vsel %vm3154_vm0, %v4486_v6, %v4494_v11 }
 0x61b   : > { %6462 = vmatmul.mubr.msk.f32.gmra.mrb[18].mxu0 %vm2002_vm12, %v4223_v46  ;;  %v4510_v1 = vmul.f32 %v4503_v24, %v8684_v44  ;;  %v4509_v10 = vmul.f32 %v4499_v19, %v8681_v42 }
 0x61c   : > { %6772 = vmatpush1.bf16.msra.mxu0 %v6771_v50  ;;  %4314 = vmatprep.mubr.f32.mxu0 %v7471_v0 }
 0x61d   : > { %6774 = vmatprep.subr.bf16.mxu0 %v6773_v27  ;;  %v4496_v9 = vpop.permute.xlu1 %4495 }
 0x61e   : > { %v4504_v48 = vsel %vm3154_vm0, %v4496_v9, %v4488_v7  ;;  %v4500_v35 = vsel %vm3154_vm0, %v4488_v7, %v4496_v9 }
 0x61f   : > { %6463 = vmatmul.mubr.msk.f32.gmra.mrb[20].mxu0 %vm2002_vm12, %v4224_v47  ;;  %v4512_v26 = vmul.f32 %v4504_v48, %v8684_v44  ;;  %v4511_v36 = vmul.f32 %v4500_v35, %v8681_v42 }
 0x620   : > { %4320 = vmatprep.mubr.f32.mxu0 %v7471_v0 }
 0x621   : > { %v6777_v17 = vpack.c.bf16 %v4512_v26, %v4510_v1  ;;  %v6779_v25 = vpack.c.bf16 %v4511_v36, %v4509_v10 }
 0x623   : > { %6464 = vmatmul.mubr.msk.f32.gmra.mrb[22].mxu0 %vm2002_vm12, %v4225_v2 }
 0x624   : > { %4448 = vmatprep.mubr.f32.mxu0 %v7471_v0 }
 0x627   : > { %6465 = vmatmul.mubr.msk.f32.vlgmr.msra.gmra.mrb[16].mxu0 %vm2002_vm12, %v4368_v60 }
 0x628   : > { %6776 = vmatpush1.bf16.msra.mxu0 %v6775_v37  ;;  %4454 = vmatprep.mubr.f32.mxu0 %v7471_v0 }
 0x629   : > { %6778 = vmatprep.subr.bf16.mxu0 %v6777_v17 }
 0x62b   : > { %6466 = vmatmul.mubr.msk.f32.gmra.mrb[18].mxu0 %vm2002_vm12, %v4369_v54 }
 0x62c   : > { %6780 = vmatpush1.bf16.msra.mxu0 %v6779_v25  ;;  %4460 = vmatprep.mubr.f32.mxu0 %v7471_v0 }
 0x62f   : > { %6467 = vmatmul.mubr.msk.f32.gmra.mrb[20].mxu0 %vm2002_vm12, %v4370_v62 }
 0x630   : > { %4466 = vmatprep.mubr.f32.mxu0 %v7471_v0 }
 0x633   : > { %6468 = vmatmul.mubr.msk.f32.gmra.mrb[22].mxu0 %vm2002_vm12, %v4371_v39 }
 0x634   : > { %4594 = vmatprep.mubr.f32.mxu0 %v7471_v0 }
 0x637   : > { %6469 = vmatmul.mubr.msk.f32.vlgmr.msra.gmra.mrb[16].mxu0 %vm2002_vm12, %v4514_v41 }
 0x638   : > { %4600 = vmatprep.mubr.f32.mxu0 %v7471_v0 }
 0x63b   : > { %6470 = vmatmul.mubr.msk.f32.gmra.mrb[18].mxu0 %vm2002_vm12, %v4515_v63 }
 0x63c   : > { %4606 = vmatprep.mubr.f32.mxu0 %v7471_v0 }
 0x63f   : > { %6471 = vmatmul.mubr.msk.f32.gmra.mrb[20].mxu0 %vm2002_vm12, %v4516_v14 }
 0x640   : > { %4612 = vmatprep.mubr.f32.mxu0 %v7471_v0 }
 0x643   : > { %6472 = vmatmul.mubr.msk.f32.gmra.mrb[22].mxu0 %vm2002_vm12, %v4517_v45 }
 0x70a   : > { %v4596_v28 = vpop.f32.mrb[16].mxu0 }
 0x70b   : > { %v6473_v58 = vmul.f32 -1.442695, %v4596_v28  ;;  %v4598_v12 = vpop.f32.mrb[17].mxu0 }
 0x70c   : > { %v6474_v13 = vmul.f32 -1.442695, %v4598_v12 }
 0x70d   : > { %7300 = vpow2.f32 %v6473_v58 }
 0x70e   : > { %7302 = vpow2.f32 %v6474_v13  ;;  %v4602_v46 = vpop.f32.mrb[18].mxu0 }
 0x70f   : > { %v6475_v6 = vmul.f32 -1.442695, %v4602_v46  ;;  %v4604_v7 = vpop.f32.mrb[19].mxu0 }
 0x710   : > { %v6476_v27 = vmul.f32 -1.442695, %v4604_v7 }
 0x711   : > { %7304 = vpow2.f32 %v6475_v6 }
 0x712   : > { %7306 = vpow2.f32 %v6476_v27  ;;  %v4608_v50 = vpop.f32.mrb[20].mxu0 }
 0x713   : > { %v6477_v47 = vmul.f32 -1.442695, %v4608_v50  ;;  %v4610_v9 = vpop.f32.mrb[21].mxu0 }
 0x714   : > { %v6478_v57 = vmul.f32 -1.442695, %v4610_v9 }
 0x715   : > { %7308 = vpow2.f32 %v6477_v47 }
 0x716   : > { %7310 = vpow2.f32 %v6478_v57  ;;  %v4614_v11 = vpop.f32.mrb[22].mxu0 }
 0x717   : > { %v7301_v48 = vpop.eup %7300  ;;  %v6479_v2 = vmul.f32 -1.442695, %v4614_v11  ;;  %v4616_v8 = vpop.f32.mrb[23].mxu0 }
 0x718   : > { %v7303_v3 = vpop.eup %7302  ;;  %v4651_v24 = vadd.f32 1.0, %v7301_v48  ;;  %v6480_v35 = vmul.f32 -1.442695, %v4616_v8 }
 0x719   : > { %v4652_v26 = vadd.f32 1.0, %v7303_v3  ;;  %7312 = vpow2.f32 %v6479_v2 }
 0x71a   : > { %7314 = vrcp.f32 %v4651_v24 }
 0x71b   : > { %v7305_v32 = vpop.eup %7304  ;;  %7316 = vrcp.f32 %v4652_v26 }
 0x71c   : > { %v7307_v60 = vpop.eup %7306  ;;  %v4653_v19 = vadd.f32 1.0, %v7305_v32  ;;  %7318 = vpow2.f32 %v6480_v35 }
 0x71d   : > { %v4654_v1 = vadd.f32 1.0, %v7307_v60 }
 0x71e   : > { %7320 = vrcp.f32 %v4653_v19 }
 0x71f   : > { %v7309_v37 = vpop.eup %7308  ;;  %7322 = vrcp.f32 %v4654_v1 }
 0x720   : > { %v7311_v36 = vpop.eup %7310  ;;  %v4655_v17 = vadd.f32 1.0, %v7309_v37 }
 0x721   : > { %v4656_v10 = vadd.f32 1.0, %v7311_v36 }
 0x722   : > { %7324 = vrcp.f32 %v4655_v17 }
 0x723   : > { %v7313_v54 = vpop.eup %7312  ;;  %7326 = vrcp.f32 %v4656_v10 }
 0x724   : > { %v7315_v25 = vpop.eup %7314  ;;  %v4657_v62 = vadd.f32 1.0, %v7313_v54 }
 0x725   : > { %v7317_v39 = vpop.eup %7316  ;;  %v9217_v41 = vmul.f32 %v7315_v25, %v4596_v28 }
 0x726   : > { %v7319_v63 = vpop.eup %7318  ;;  %7328 = vrcp.f32 %v4657_v62  ;;  %v9221_v58 = vmul.f32 %v7317_v39, %v4598_v12 }
 0x727   : > { %v4658_v14 = vadd.f32 1.0, %v7319_v63  ;;  %4719 = vrot.lane.b32.xlu0 %v9217_v41, %s7484_s22 }
 0x728   : > { %v7321_v45 = vpop.eup %7320 }
 0x729   : > { %v9223_v13 = vmul.f32 %v7321_v45, %v4602_v46  ;;  %7330 = vrcp.f32 %v4658_v14  ;;  %v7323_v6 = vpop.eup %7322 }
 0x72a   : > { %v9229_v27 = vmul.f32 %v7323_v6, %v4604_v7 }
 0x72b   : > { %4727 = vrot.lane.b32.xlu0 %v9221_v58, %s7484_s22  ;;  %4721 = vrot.lane.b32.xlu1 %v9223_v13, %s7484_s22 }
 0x72c   : > { %v7325_v28 = vpop.eup %7324 }
 0x72d   : > { %v9231_v47 = vmul.f32 %v7325_v28, %v4608_v50  ;;  %v7327_v57 = vpop.eup %7326 }
 0x72e   : > { %v9237_v46 = vmul.f32 %v7327_v57, %v4610_v9 }
 0x72f   : > { %4729 = vrot.lane.b32.xlu1 %v9229_v27, %s7484_s22  ;;  %4723 = vrot.lane.b32.xlu0 %v9231_v47, %s7484_s22 }
 0x730   : > { %v7329_v12 = vpop.eup %7328 }
 0x731   : > { %v9239_v48 = vmul.f32 %v7329_v12, %v4614_v11 }
 0x733   : > { %v7331_v2 = vpop.eup %7330  ;;  %4731 = vrot.lane.b32.xlu0 %v9237_v46, %s7484_s22  ;;  %4725 = vrot.lane.b32.xlu1 %v9239_v48, %s7484_s22 }
 0x734   : > { %v9245_v7 = vmul.f32 %v7331_v2, %v4616_v8 }
 0x737   : > { %4683 = vrot.lane.b32.xlu0 %v9217_v41, %s7480_s17  ;;  %4733 = vrot.lane.b32.xlu1 %v9245_v7, %s7484_s22 }
 0x73b   : > { %4691 = vrot.lane.b32.xlu0 %v9221_v58, %s7480_s17  ;;  %4685 = vrot.lane.b32.xlu1 %v9223_v13, %s7480_s17 }
 0x73f   : > { %4687 = vrot.lane.b32.xlu0 %v9231_v47, %s7480_s17  ;;  %4693 = vrot.lane.b32.xlu1 %v9229_v27, %s7480_s17 }
 0x743   : > { %4695 = vrot.lane.b32.xlu0 %v9237_v46, %s7480_s17  ;;  %4689 = vrot.lane.b32.xlu1 %v9239_v48, %s7480_s17 }
 0x747   : > { %4958 = vrot.lane.b32.xlu0 %v9217_v41, %s7481_s19  ;;  %4697 = vrot.lane.b32.xlu1 %v9245_v7, %s7480_s17 }
 0x74b   : > { %4966 = vrot.lane.b32.xlu0 %v9221_v58, %s7481_s19  ;;  %4960 = vrot.lane.b32.xlu1 %v9223_v13, %s7481_s19 }
 0x74f   : > { %4962 = vrot.lane.b32.xlu0 %v9231_v47, %s7481_s19  ;;  %4968 = vrot.lane.b32.xlu1 %v9229_v27, %s7481_s19 }
 0x753   : > { %4970 = vrot.lane.b32.xlu0 %v9237_v46, %s7481_s19  ;;  %4964 = vrot.lane.b32.xlu1 %v9239_v48, %s7481_s19 }
 0x757   : > { %5104 = vrot.lane.b32.xlu0 %v9217_v41, %s7475_s12  ;;  %4972 = vrot.lane.b32.xlu1 %v9245_v7, %s7481_s19 }
 0x75b   : > { %5112 = vrot.lane.b32.xlu0 %v9221_v58, %s7475_s12  ;;  %5106 = vrot.lane.b32.xlu1 %v9223_v13, %s7475_s12 }
 0x75f   : > { %5108 = vrot.lane.b32.xlu0 %v9231_v47, %s7475_s12  ;;  %5114 = vrot.lane.b32.xlu1 %v9229_v27, %s7475_s12 }
 0x763   : > { %5116 = vrot.lane.b32.xlu0 %v9237_v46, %s7475_s12  ;;  %5110 = vrot.lane.b32.xlu1 %v9239_v48, %s7475_s12 }
 0x767   : > { %5372 = vrot.lane.b32.xlu0 %v9217_v41, %s7476_s14  ;;  %5118 = vrot.lane.b32.xlu1 %v9245_v7, %s7475_s12 }
 0x76b   : > { %5380 = vrot.lane.b32.xlu0 %v9221_v58, %s7476_s14  ;;  %5374 = vrot.lane.b32.xlu1 %v9223_v13, %s7476_s14 }
 0x76f   : > { %5376 = vrot.lane.b32.xlu0 %v9231_v47, %s7476_s14  ;;  %5382 = vrot.lane.b32.xlu1 %v9229_v27, %s7476_s14 }
 0x773   : > { %5384 = vrot.lane.b32.xlu0 %v9237_v46, %s7476_s14  ;;  %5378 = vrot.lane.b32.xlu1 %v9239_v48, %s7476_s14 }
 0x777   : > { %5518 = vrot.lane.b32.xlu0 %v9217_v41, %s7482_s20  ;;  %5386 = vrot.lane.b32.xlu1 %v9245_v7, %s7476_s14 }
 0x77b   : > { %5526 = vrot.lane.b32.xlu0 %v9221_v58, %s7482_s20  ;;  %5520 = vrot.lane.b32.xlu1 %v9223_v13, %s7482_s20 }
 0x77f   : > { %5522 = vrot.lane.b32.xlu0 %v9231_v47, %s7482_s20  ;;  %5528 = vrot.lane.b32.xlu1 %v9229_v27, %s7482_s20 }
 0x783   : > { %5530 = vrot.lane.b32.xlu0 %v9237_v46, %s7482_s20  ;;  %5524 = vrot.lane.b32.xlu1 %v9239_v48, %s7482_s20 }
 0x787   : > { %5664 = vrot.lane.b32.xlu0 %v9217_v41, %s7483_s21  ;;  %5532 = vrot.lane.b32.xlu1 %v9245_v7, %s7482_s20 }
 0x78b   : > { %5672 = vrot.lane.b32.xlu0 %v9221_v58, %s7483_s21  ;;  %5666 = vrot.lane.b32.xlu1 %v9223_v13, %s7483_s21 }
 0x78f   : > { %5668 = vrot.lane.b32.xlu0 %v9231_v47, %s7483_s21  ;;  %5674 = vrot.lane.b32.xlu1 %v9229_v27, %s7483_s21 }
 0x793   : > { %5676 = vrot.lane.b32.xlu0 %v9237_v46, %s7483_s21  ;;  %5670 = vrot.lane.b32.xlu1 %v9239_v48, %s7483_s21 }
 0x797   : > { %5810 = vrot.lane.b32.xlu0 %v9217_v41, %s7485_s15  ;;  %5678 = vrot.lane.b32.xlu1 %v9245_v7, %s7483_s21 }
 0x799   : > { %v4720_v50 = vpop.permute.xlu0 %4719 }
 0x79b   : > { %5818 = vrot.lane.b32.xlu0 %v9221_v58, %s7485_s15  ;;  %5812 = vrot.lane.b32.xlu1 %v9223_v13, %s7485_s15 }
 0x79d   : > { %v4728_v9 = vpop.permute.xlu0 %4727  ;;  %v4722_v11 = vpop.permute.xlu1 %4721 }
 0x79e   : > { %v4739_v8 = vsel %vm1967_vm14, %v4728_v9, %v4720_v50  ;;  %v4735_v3 = vsel %vm1967_vm14, %v4720_v50, %v4728_v9 }
 0x79f   : > { %5814 = vrot.lane.b32.xlu0 %v9231_v47, %s7485_s15  ;;  %5820 = vrot.lane.b32.xlu1 %v9229_v27, %s7485_s15  ;;  %v4743_v26 = vmul.f32 %v4739_v8, %v8570_v52  ;;  %v4744_v19 = vmul.f32 %v4735_v3, %v8573_v53 }
 0x7a1   : > { %v4730_v24 = vpop.permute.xlu1 %4729  ;;  %v4724_v35 = vpop.permute.xlu0 %4723 }
 0x7a2   : > { %v4736_v32 = vsel %vm1967_vm14, %v4722_v11, %v4730_v24  ;;  %v4740_v60 = vsel %vm1967_vm14, %v4730_v24, %v4722_v11  ;;  %v4752_v24 = vld [vmem:[#allocation4 + $0x20] sm:$0xff] }
 0x7a3   : > { %v4745_v1 = vmul.f32 %v4740_v60, %v8570_v52  ;;  %v4746_v37 = vmul.f32 %v4736_v32, %v8573_v53  ;;  %5822 = vrot.lane.b32.xlu0 %v9237_v46, %s7485_s15  ;;  %5816 = vrot.lane.b32.xlu1 %v9239_v48, %s7485_s15 }
 0x7a5   : > { %v6783_v36 = vpack.c.bf16 %v4745_v1, %v4743_v26  ;;  %v4732_v17 = vpop.permute.xlu0 %4731  ;;  %v4726_v10 = vpop.permute.xlu1 %4725  ;;  %v6781_v54 = vpack.c.bf16 %v4746_v37, %v4744_v19  ;;  %v4753_v37 = vld [vmem:[#allocation4 + $0x28] sm:$0xff] }
 0x7a6   : > { %v4737_v25 = vsel %vm1967_vm14, %v4724_v35, %v4732_v17  ;;  %v4741_v62 = vsel %vm1967_vm14, %v4732_v17, %v4724_v35 }
 0x7a7   : > { %6782 = vmatprep.subr.bf16.mxu1 %v6781_v54  ;;  %5824 = vrot.lane.b32.xlu1 %v9245_v7, %s7485_s15  ;;  %v4747_v6 = vmul.f32 %v4741_v62, %v8570_v52  ;;  %v4748_v28 = vmul.f32 %v4737_v25, %v8573_v53  ;;  %s6528_s15 = sshll.u32 %s9773_s10, 5 }
 0x7a8   : > { %6784 = vmatpush1.bf16.msra.mxu1 %v6783_v36  ;;  %s376_s13 = scalar_lea.vmem %s9768_s9, %s6528_s15 }
 0x7a9   : > { %v4684_v39 = vpop.permute.xlu0 %4683  ;;  %v4734_v63 = vpop.permute.xlu1 %4733 }
 0x7aa   : > { %v4738_v14 = vsel %vm1967_vm14, %v4726_v10, %v4734_v63  ;;  %v4742_v45 = vsel %vm1967_vm14, %v4734_v63, %v4726_v10 }
 0x7ab   : > { %v4749_v57 = vmul.f32 %v4742_v45, %v8570_v52  ;;  %v4750_v12 = vmul.f32 %v4738_v14, %v8573_v53 }
 0x7ad   : > { %v6787_v2 = vpack.c.bf16 %v4749_v57, %v4747_v6  ;;  %v4692_v50 = vpop.permute.xlu0 %4691  ;;  %v4686_v9 = vpop.permute.xlu1 %4685  ;;  %v6785_v11 = vpack.c.bf16 %v4750_v12, %v4748_v28 }
 0x7ae   : > { %v4699_v8 = vsel %vm1918_vm10, %v4684_v39, %v4692_v50  ;;  %v4703_v3 = vsel %vm1918_vm10, %v4692_v50, %v4684_v39  ;;  %v4754_v39 = vld [vmem:[#allocation4 + $0x30] sm:$0xff]  ;;  %v4755_v50 = vld [vmem:[#allocation4 + $0x38] sm:$0xff] }
 0x7af   : > { %6786 = vmatprep.subr.bf16.mxu1 %v6785_v11  ;;  %v4707_v32 = vmul.f32 %v4703_v3, %v8302_v21  ;;  %v4708_v60 = vmul.f32 %v4699_v8, %v8305_v22 }
 0x7b0   : > { %6788 = vmatpush1.bf16.msra.mxu1 %v6787_v2 }
 0x7b1   : > { %v4688_v35 = vpop.permute.xlu0 %4687  ;;  %v4694_v26 = vpop.permute.xlu1 %4693 }
 0x7b2   : > { %v4700_v52 = vsel %vm1918_vm10, %v4686_v9, %v4694_v26  ;;  %v4704_v53 = vsel %vm1918_vm10, %v4694_v26, %v4686_v9 }
 0x7b3   : > { %v4709_v19 = vmul.f32 %v4704_v53, %v8302_v21  ;;  %v4710_v1 = vmul.f32 %v4700_v52, %v8305_v22  ;;  %6481 = vmatmul.mubr.msk.f32.vlgmr.msra.gmra.mrb[16].mxu1 %vm2002_vm12, %v4752_v24 }
 0x7b4   : > { %4838 = vmatprep.mubr.f32.mxu1 %v7471_v0 }
 0x7b5   : > { %v6791_v36 = vpack.c.bf16 %v4709_v19, %v4707_v32  ;;  %v4696_v17 = vpop.permute.xlu0 %4695  ;;  %v4690_v10 = vpop.permute.xlu1 %4689  ;;  %v6789_v54 = vpack.c.bf16 %v4710_v1, %v4708_v60 }
 0x7b6   : > { %v4701_v25 = vsel %vm1918_vm10, %v4688_v35, %v4696_v17  ;;  %v4705_v62 = vsel %vm1918_vm10, %v4696_v17, %v4688_v35 }
 0x7b7   : > { %6482 = vmatmul.mubr.msk.f32.gmra.mrb[18].mxu1 %vm2002_vm12, %v4753_v37  ;;  %6790 = vmatprep.subr.bf16.mxu1 %v6789_v54  ;;  %v4711_v28 = vmul.f32 %v4705_v62, %v8302_v21  ;;  %v4712_v57 = vmul.f32 %v4701_v25, %v8305_v22  ;;  %v4716_v37 = vld [vmem:[#allocation4 + $0x8] sm:$0xff] }
 0x7b8   : > { %6792 = vmatpush1.bf16.msra.mxu1 %v6791_v36  ;;  %4844 = vmatprep.mubr.f32.mxu1 %v7471_v0 }
 0x7b9   : > { %v4959_v63 = vpop.permute.xlu0 %4958  ;;  %v4698_v14 = vpop.permute.xlu1 %4697 }
 0x7ba   : > { %v4702_v45 = vsel %vm1918_vm10, %v4690_v10, %v4698_v14  ;;  %v4706_v6 = vsel %vm1918_vm10, %v4698_v14, %v4690_v10 }
 0x7bb   : > { %v4713_v12 = vmul.f32 %v4706_v6, %v8302_v21  ;;  %v4714_v2 = vmul.f32 %v4702_v45, %v8305_v22  ;;  %6483 = vmatmul.mubr.msk.f32.gmra.mrb[20].mxu1 %vm2002_vm12, %v4754_v39  ;;  %v4715_v22 = vld [vmem:[#allocation4] sm:$0xff]  ;;  %v4717_v39 = vld [vmem:[#allocation4 + $0x10] sm:$0xff] }
 0x7bc   : > { %4850 = vmatprep.mubr.f32.mxu1 %v7471_v0 }
 0x7bd   : > { %v6795_v9 = vpack.c.bf16 %v4713_v12, %v4711_v28  ;;  %v4967_v11 = vpop.permute.xlu0 %4966  ;;  %v4961_v8 = vpop.permute.xlu1 %4960  ;;  %v6793_v3 = vpack.c.bf16 %v4714_v2, %v4712_v57 }
 0x7be   : > { %v4974_v24 = vsel %vm2221_vm11, %v4959_v63, %v4967_v11  ;;  %v4978_v21 = vsel %vm2221_vm11, %v4967_v11, %v4959_v63 }
 0x7bf   : > { %6484 = vmatmul.mubr.msk.f32.gmra.mrb[22].mxu1 %vm2002_vm12, %v4755_v50  ;;  %6794 = vmatprep.subr.bf16.mxu1 %v6793_v3  ;;  %v4982_v32 = vmul.f32 %v4978_v21, %v8355_v55  ;;  %v4983_v60 = vmul.f32 %v4974_v24, %v8335_v40  ;;  %v4718_v50 = vld [vmem:[#allocation4 + $0x18] sm:$0xff] }
 0x7c0   : > { %6796 = vmatpush1.bf16.msra.mxu1 %v6795_v9  ;;  %4933 = vmatprep.mubr.f32.mxu1 %v7471_v0 }
 0x7c1   : > { %v4963_v35 = vpop.permute.xlu0 %4962  ;;  %v4969_v26 = vpop.permute.xlu1 %4968 }
 0x7c2   : > { %v4975_v52 = vsel %vm2221_vm11, %v4961_v8, %v4969_v26  ;;  %v4979_v53 = vsel %vm2221_vm11, %v4969_v26, %v4961_v8 }
 0x7c3   : > { %v4984_v19 = vmul.f32 %v4979_v53, %v8355_v55  ;;  %v4985_v1 = vmul.f32 %v4975_v52, %v8335_v40  ;;  %6485 = vmatmul.mubr.msk.f32.vlgmr.msra.gmra.mrb[16].mxu1 %vm2002_vm12, %v4715_v22 }
 0x7c4   : > { %4939 = vmatprep.mubr.f32.mxu1 %v7471_v0 }
 0x7c5   : > { %v6799_v36 = vpack.c.bf16 %v4984_v19, %v4982_v32  ;;  %v4971_v17 = vpop.permute.xlu0 %4970  ;;  %v4965_v10 = vpop.permute.xlu1 %4964  ;;  %v6797_v54 = vpack.c.bf16 %v4985_v1, %v4983_v60  ;;  %v4992_v19 = vld [vmem:[#allocation4 + $0x48] sm:$0xff] }
 0x7c6   : > { %v4976_v25 = vsel %vm2221_vm11, %v4963_v35, %v4971_v17  ;;  %v4980_v62 = vsel %vm2221_vm11, %v4971_v17, %v4963_v35 }
 0x7c7   : > { %6486 = vmatmul.mubr.msk.f32.gmra.mrb[18].mxu1 %vm2002_vm12, %v4716_v37  ;;  %6798 = vmatprep.subr.bf16.mxu1 %v6797_v54  ;;  %v4986_v28 = vmul.f32 %v4980_v62, %v8355_v55  ;;  %v4987_v57 = vmul.f32 %v4976_v25, %v8335_v40  ;;  %v4993_v25 = vld [vmem:[#allocation4 + $0x50] sm:$0xff] }
 0x7c8   : > { %6800 = vmatpush1.bf16.msra.mxu1 %v6799_v36  ;;  %4945 = vmatprep.mubr.f32.mxu1 %v7471_v0 }
 0x7c9   : > { %v5105_v63 = vpop.permute.xlu0 %5104  ;;  %v4973_v14 = vpop.permute.xlu1 %4972 }
 0x7ca   : > { %v4977_v45 = vsel %vm2221_vm11, %v4965_v10, %v4973_v14  ;;  %v4981_v6 = vsel %vm2221_vm11, %v4973_v14, %v4965_v10 }
 0x7cb   : > { %v4988_v12 = vmul.f32 %v4981_v6, %v8355_v55  ;;  %v4989_v2 = vmul.f32 %v4977_v45, %v8335_v40  ;;  %6487 = vmatmul.mubr.msk.f32.gmra.mrb[20].mxu1 %vm2002_vm12, %v4717_v39  ;;  %v4991_v40 = vld [vmem:[#allocation4 + $0x40] sm:$0xff]  ;;  %v5253_v45 = vmul.f32 %v9229_v27, %v8426_v61 }
 0x7cc   : > { %4951 = vmatprep.mubr.f32.mxu1 %v7471_v0 }
 0x7cd   : > { %v6803_v9 = vpack.c.bf16 %v4988_v12, %v4986_v28  ;;  %v5113_v11 = vpop.permute.xlu0 %5112  ;;  %v5107_v8 = vpop.permute.xlu1 %5106  ;;  %v6801_v3 = vpack.c.bf16 %v4989_v2, %v4987_v57  ;;  %v4994_v2 = vld [vmem:[#allocation4 + $0x58] sm:$0xff] }
 0x7ce   : > { %v5120_v24 = vsel %vm797_vm5, %v5105_v63, %v5113_v11  ;;  %v5124_v55 = vsel %vm797_vm5, %v5113_v11, %v5105_v63 }
 0x7cf   : > { %6488 = vmatmul.mubr.msk.f32.gmra.mrb[22].mxu1 %vm2002_vm12, %v4718_v50  ;;  %6802 = vmatprep.subr.bf16.mxu1 %v6801_v3  ;;  %v5128_v52 = vmul.f32 %v5124_v55, %v8389_v33  ;;  %v5129_v53 = vmul.f32 %v5120_v24, %v8392_v34  ;;  %v5251_v3 = vmul.f32 %v9221_v58, %v8426_v61  ;;  %v5137_v55 = vld [vmem:[#allocation4 + $0x60] sm:$0xff] }
 0x7d0   : > { %6804 = vmatpush1.bf16.msra.mxu1 %v6803_v9  ;;  %5071 = vmatprep.mubr.f32.mxu1 %v7471_v0  ;;  %v5252_v24 = vmul.f32 %v9223_v13, %v8446_v20 }
 0x7d1   : > { %v5109_v21 = vpop.permute.xlu0 %5108  ;;  %v5115_v22 = vpop.permute.xlu1 %5114 }
 0x7d2   : > { %v5121_v35 = vsel %vm797_vm5, %v5107_v8, %v5115_v22  ;;  %v5125_v26 = vsel %vm797_vm5, %v5115_v22, %v5107_v8 }
 0x7d3   : > { %v5130_v32 = vmul.f32 %v5125_v26, %v8389_v33  ;;  %v5131_v60 = vmul.f32 %v5121_v35, %v8392_v34  ;;  %6489 = vmatmul.mubr.msk.f32.vlgmr.msra.gmra.mrb[16].mxu1 %vm2002_vm12, %v4991_v40  ;;  %v5250_v40 = vmul.f32 %v9217_v41, %v8446_v20  ;;  %v5255_v35 = vmul.f32 %v9237_v46, %v8426_v61 }
 0x7d4   : > { %5077 = vmatprep.mubr.f32.mxu1 %v7471_v0 }
 0x7d5   : > { %v6807_v1 = vpack.c.bf16 %v5130_v32, %v5128_v52  ;;  %v5117_v37 = vpop.permute.xlu0 %5116  ;;  %v5111_v36 = vpop.permute.xlu1 %5110  ;;  %v6805_v17 = vpack.c.bf16 %v5131_v60, %v5129_v53  ;;  %v6815_v53 = vpack.c.bf16 %v5252_v24, %v5250_v40  ;;  %v5256_v32 = vmul.f32 %v9239_v48, %v8446_v20 }
 0x7d6   : > { %v5122_v10 = vsel %vm797_vm5, %v5109_v21, %v5117_v37  ;;  %v5126_v54 = vsel %vm797_vm5, %v5117_v37, %v5109_v21 }
 0x7d7   : > { %6490 = vmatmul.mubr.msk.f32.gmra.mrb[18].mxu1 %vm2002_vm12, %v4992_v19  ;;  %6806 = vmatprep.subr.bf16.mxu1 %v6805_v17  ;;  %v5132_v6 = vmul.f32 %v5126_v54, %v8389_v33  ;;  %v5133_v28 = vmul.f32 %v5122_v10, %v8392_v34 }
 0x7d8   : > { %6808 = vmatpush1.bf16.msra.mxu1 %v6807_v1  ;;  %5083 = vmatprep.mubr.f32.mxu1 %v7471_v0  ;;  %v5138_v1 = vld [vmem:[#allocation4 + $0x68] sm:$0xff] }
 0x7d9   : > { %v5373_v62 = vpop.permute.xlu0 %5372  ;;  %v5119_v39 = vpop.permute.xlu1 %5118 }
 0x7da   : > { %v5123_v63 = vsel %vm797_vm5, %v5111_v36, %v5119_v39  ;;  %v5127_v14 = vsel %vm797_vm5, %v5119_v39, %v5111_v36 }
 0x7db   : > { %v5134_v57 = vmul.f32 %v5127_v14, %v8389_v33  ;;  %v5135_v12 = vmul.f32 %v5123_v63, %v8392_v34  ;;  %6491 = vmatmul.mubr.msk.f32.gmra.mrb[20].mxu1 %vm2002_vm12, %v4993_v25  ;;  %v6813_v33 = vpack.c.bf16 %v5253_v45, %v5251_v3  ;;  %v5257_v34 = vmul.f32 %v9245_v7, %v8426_v61  ;;  %v5139_v25 = vld [vmem:[#allocation4 + $0x70] sm:$0xff]  ;;  %v5140_v45 = vld [vmem:[#allocation4 + $0x78] sm:$0xff] }
 0x7dc   : > { %5089 = vmatprep.mubr.f32.mxu1 %v7471_v0  ;;  %v5254_v61 = vmul.f32 %v9231_v47, %v8446_v20 }
 0x7dd   : > { %v6811_v50 = vpack.c.bf16 %v5134_v57, %v5132_v6  ;;  %v5381_v9 = vpop.permute.xlu0 %5380  ;;  %v5375_v11 = vpop.permute.xlu1 %5374  ;;  %v6809_v8 = vpack.c.bf16 %v5135_v12, %v5133_v28  ;;  %v6817_v19 = vpack.c.bf16 %v5257_v34, %v5255_v35 }
 0x7de   : > { %v5392_v26 = vsel %vm1073_vm6, %v5381_v9, %v5373_v62  ;;  %v6819_v10 = vpack.c.bf16 %v5256_v32, %v5254_v61  ;;  %v5388_v6 = vsel %vm1073_vm6, %v5373_v62, %v5381_v9  ;;  %v5259_v62 = vld [vmem:[#allocation4 + $0x80] sm:$0xff] }
 0x7df   : > { %6492 = vmatmul.mubr.msk.f32.gmra.mrb[22].mxu1 %vm2002_vm12, %v4994_v2  ;;  %6810 = vmatprep.subr.bf16.mxu1 %v6809_v8  ;;  %v5397_v37 = vmul.f32 %v5392_v26, %v8462_v31  ;;  %v5396_v8 = vmul.f32 %v5388_v6, %v8491_v51 }
 0x7e0   : > { %6812 = vmatpush1.bf16.msra.mxu1 %v6811_v50  ;;  %5217 = vmatprep.mubr.f32.mxu1 %v7471_v0 }
 0x7e1   : > { %v5377_v21 = vpop.permute.xlu0 %5376  ;;  %6814 = vmatprep.subr.bf16.mxu1 %v6813_v33  ;;  %v5383_v22 = vpop.permute.xlu1 %5382 }
 0x7e2   : > { %v5393_v52 = vsel %vm1073_vm6, %v5383_v22, %v5375_v11  ;;  %v5389_v14 = vsel %vm1073_vm6, %v5375_v11, %v5383_v22 }
 0x7e3   : > { %v5399_v60 = vmul.f32 %v5393_v52, %v8462_v31  ;;  %6493 = vmatmul.mubr.msk.f32.vlgmr.msra.gmra.mrb[16].mxu1 %vm2002_vm12, %v5137_v55  ;;  %v5398_v12 = vmul.f32 %v5389_v14, %v8491_v51 }
 0x7e4   : > { %6816 = vmatpush1.bf16.msra.mxu1 %v6815_v53  ;;  %5223 = vmatprep.mubr.f32.mxu1 %v7471_v0 }
 0x7e5   : > { %v5385_v36 = vpop.permute.xlu0 %5384  ;;  %v5379_v17 = vpop.permute.xlu1 %5378  ;;  %6818 = vmatprep.subr.bf16.mxu1 %v6817_v19  ;;  %v6821_v54 = vpack.c.bf16 %v5399_v60, %v5397_v37  ;;  %v6823_v55 = vpack.c.bf16 %v5398_v12, %v5396_v8 }
 0x7e6   : > { %v5394_v2 = vsel %vm1073_vm6, %v5385_v36, %v5377_v21  ;;  %v5390_v9 = vsel %vm1073_vm6, %v5377_v21, %v5385_v36 }
 0x7e7   : > { %6494 = vmatmul.mubr.msk.f32.gmra.mrb[18].mxu1 %vm2002_vm12, %v5138_v1  ;;  %v5401_v24 = vmul.f32 %v5394_v2, %v8462_v31  ;;  %v5400_v53 = vmul.f32 %v5390_v9, %v8491_v51  ;;  %v5261_v1 = vld [vmem:[#allocation4 + $0x90] sm:$0xff] }
 0x7e8   : > { %6820 = vmatpush1.bf16.msra.mxu1 %v6819_v10  ;;  %5229 = vmatprep.mubr.f32.mxu1 %v7471_v0 }
 0x7e9   : > { %v5519_v39 = vpop.permute.xlu0 %5518  ;;  %v5387_v63 = vpop.permute.xlu1 %5386  ;;  %6822 = vmatprep.subr.bf16.mxu1 %v6821_v54 }
 0x7ea   : > { %v5395_v20 = vsel %vm1073_vm6, %v5387_v63, %v5379_v17  ;;  %v5391_v50 = vsel %vm1073_vm6, %v5379_v17, %v5387_v63  ;;  %v5262_v17 = vld [vmem:[#allocation4 + $0x98] sm:$0xff] }
 0x7eb   : > { %6495 = vmatmul.mubr.msk.f32.gmra.mrb[20].mxu1 %vm2002_vm12, %v5139_v25  ;;  %v5403_v11 = vmul.f32 %v5395_v20, %v8462_v31  ;;  %v5402_v40 = vmul.f32 %v5391_v50, %v8491_v51  ;;  %v5260_v31 = vld [vmem:[#allocation4 + $0x88] sm:$0xff] }
 0x7ec   : > { %5235 = vmatprep.mubr.f32.mxu1 %v7471_v0 }
 0x7ed   : > { %v5527_v28 = vpop.permute.xlu0 %5526  ;;  %v5521_v57 = vpop.permute.xlu1 %5520  ;;  %v6825_v52 = vpack.c.bf16 %v5403_v11, %v5401_v24  ;;  %v6827_v19 = vpack.c.bf16 %v5402_v40, %v5400_v53 }
 0x7ee   : > { %v5538_v3 = vsel %vm2834_vm13, %v5527_v28, %v5519_v39  ;;  %v5534_v10 = vsel %vm2834_vm13, %v5519_v39, %v5527_v28  ;;  %v5405_v39 = vld [vmem:[#allocation4 + $0xa0] sm:$0xff] }
 0x7ef   : > { %6496 = vmatmul.mubr.msk.f32.gmra.mrb[22].mxu1 %vm2002_vm12, %v5140_v45  ;;  %v5543_v35 = vmul.f32 %v5538_v3, %v8527_v23  ;;  %v5542_v6 = vmul.f32 %v5534_v10, %v8540_v29 }
 0x7f0   : > { %5339 = vmatprep.mubr.f32.mxu1 %v7471_v0 }
 0x7f1   : > { %v5523_v33 = vpop.permute.xlu0 %5522  ;;  %v5529_v34 = vpop.permute.xlu1 %5528 }
 0x7f2   : > { %v5539_v22 = vsel %vm2834_vm13, %v5529_v34, %v5521_v57  ;;  %v5535_v51 = vsel %vm2834_vm13, %v5521_v57, %v5529_v34 }
 0x7f3   : > { %v5545_v26 = vmul.f32 %v5539_v22, %v8527_v23  ;;  %6497 = vmatmul.mubr.msk.f32.vlgmr.msra.gmra.mrb[16].mxu1 %vm2002_vm12, %v5259_v62  ;;  %v5544_v63 = vmul.f32 %v5535_v51, %v8540_v29 }
 0x7f4   : > { %6824 = vmatpush1.bf16.msra.mxu1 %v6823_v55  ;;  %5345 = vmatprep.mubr.f32.mxu1 %v7471_v0 }
 0x7f5   : > { %6826 = vmatprep.subr.bf16.mxu1 %v6825_v52  ;;  %v5531_v21 = vpop.permute.xlu0 %5530  ;;  %v5525_v32 = vpop.permute.xlu1 %5524  ;;  %v6829_v60 = vpack.c.bf16 %v5545_v26, %v5543_v35  ;;  %v6831_v11 = vpack.c.bf16 %v5544_v63, %v5542_v6  ;;  %v5407_v35 = vld [vmem:[#allocation4 + $0xb0] sm:$0xff] }
 0x7f6   : > { %v5540_v14 = vsel %vm2834_vm13, %v5531_v21, %v5523_v33  ;;  %v5536_v28 = vsel %vm2834_vm13, %v5523_v33, %v5531_v21 }
 0x7f7   : > { %6498 = vmatmul.mubr.msk.f32.gmra.mrb[18].mxu1 %vm2002_vm12, %v5260_v31  ;;  %v5547_v12 = vmul.f32 %v5540_v14, %v8527_v23  ;;  %v5546_v34 = vmul.f32 %v5536_v28, %v8540_v29  ;;  %v5408_v31 = vld [vmem:[#allocation4 + $0xb8] sm:$0xff] }
 0x7f8   : > { %6828 = vmatpush1.bf16.msra.mxu1 %v6827_v19  ;;  %5351 = vmatprep.mubr.f32.mxu1 %v7471_v0 }
 0x7f9   : > { %6830 = vmatprep.subr.bf16.mxu1 %v6829_v60  ;;  %v5665_v61 = vpop.permute.xlu0 %5664  ;;  %v5533_v37 = vpop.permute.xlu1 %5532 }
 0x7fa   : > { %v5541_v36 = vsel %vm2834_vm13, %v5533_v37, %v5525_v32  ;;  %v5537_v20 = vsel %vm2834_vm13, %v5525_v32, %v5533_v37 }
 0x7fb   : > { %6499 = vmatmul.mubr.msk.f32.gmra.mrb[20].mxu1 %vm2002_vm12, %v5261_v1  ;;  %v5549_v45 = vmul.f32 %v5541_v36, %v8527_v23  ;;  %v5548_v8 = vmul.f32 %v5537_v20, %v8540_v29  ;;  %v5406_v23 = vld [vmem:[#allocation4 + $0xa8] sm:$0xff] }
 0x7fc   : > { %5357 = vmatprep.mubr.f32.mxu1 %v7471_v0 }
 0x7fd   : > { %v5673_v54 = vpop.permute.xlu0 %5672  ;;  %v5667_v25 = vpop.permute.xlu1 %5666  ;;  %v6833_v24 = vpack.c.bf16 %v5549_v45, %v5547_v12  ;;  %v6835_v22 = vpack.c.bf16 %v5548_v8, %v5546_v34 }
 0x7fe   : > { %v5684_v57 = vsel %vm2994_vm15, %v5673_v54, %v5665_v61  ;;  %v5680_v21 = vsel %vm2994_vm15, %v5665_v61, %v5673_v54  ;;  %v5551_v61 = vld [vmem:[#allocation4 + $0xc0] sm:$0xff] }
 0x7ff   : > { %6500 = vmatmul.mubr.msk.f32.gmra.mrb[22].mxu1 %vm2002_vm12, %v5262_v17  ;;  %v5689_v62 = vmul.f32 %v5684_v57, %v8602_v30  ;;  %v5688_v36 = vmul.f32 %v5680_v21, %v8617_v38  ;;  %v5698_v21 = vld [vmem:[#allocation4 + $0xe8] sm:$0xff] }
 0x800   : > { %5485 = vmatprep.mubr.f32.mxu1 %v7471_v0 }
 0x801   : > { %v5669_v2 = vpop.permute.xlu0 %5668  ;;  %v5675_v50 = vpop.permute.xlu1 %5674 }
 0x802   : > { %v5685_v3 = vsel %vm2994_vm15, %v5675_v50, %v5667_v25  ;;  %v5681_v29 = vsel %vm2994_vm15, %v5667_v25, %v5675_v50 }
 0x803   : > { %v5691_v9 = vmul.f32 %v5685_v3, %v8602_v30  ;;  %6501 = vmatmul.mubr.msk.f32.vlgmr.msra.gmra.mrb[16].mxu1 %vm2002_vm12, %v5405_v39  ;;  %v5690_v19 = vmul.f32 %v5681_v29, %v8617_v38 }
 0x804   : > { %6832 = vmatpush1.bf16.msra.mxu1 %v6831_v11  ;;  %5491 = vmatprep.mubr.f32.mxu1 %v7471_v0  ;;  %v5553_v11 = vld [vmem:[#allocation4 + $0xd0] sm:$0xff] }
 0x805   : > { %6834 = vmatprep.subr.bf16.mxu1 %v6833_v24  ;;  %v5677_v33 = vpop.permute.xlu0 %5676  ;;  %v5671_v55 = vpop.permute.xlu1 %5670  ;;  %v6837_v40 = vpack.c.bf16 %v5691_v9, %v5689_v62  ;;  %v6839_v63 = vpack.c.bf16 %v5690_v19, %v5688_v36  ;;  %v5554_v9 = vld [vmem:[#allocation4 + $0xd8] sm:$0xff]  ;;  %v5845_v19 = vld [vmem:[#allocation4 + $0x110] sm:$0xff] }
 0x806   : > { %v5686_v1 = vsel %vm2994_vm15, %v5677_v33, %v5669_v2  ;;  %v5682_v10 = vsel %vm2994_vm15, %v5669_v2, %v5677_v33 }
 0x807   : > { %6502 = vmatmul.mubr.msk.f32.gmra.mrb[18].mxu1 %vm2002_vm12, %v5406_v23  ;;  %v5693_v54 = vmul.f32 %v5686_v1, %v8602_v30  ;;  %v5692_v39 = vmul.f32 %v5682_v10, %v8617_v38  ;;  %v5846_v1 = vld [vmem:[#allocation4 + $0x118] sm:$0xff]  ;;  %v6046_v10 = vld [vmem:[%s9767_s8 + $0x90] sm:$0xff] }
 0x808   : > { %6836 = vmatpush1.bf16.msra.mxu1 %v6835_v22  ;;  %5497 = vmatprep.mubr.f32.mxu1 %v7471_v0  ;;  %v5697_v22 = vld [vmem:[#allocation4 + $0xe0] sm:$0xff] }
 0x809   : > { %6838 = vmatprep.subr.bf16.mxu1 %v6837_v40  ;;  %v5811_v26 = vpop.permute.xlu0 %5810  ;;  %v5679_v52 = vpop.permute.xlu1 %5678 }
 0x80a   : > { %v5687_v53 = vsel %vm2994_vm15, %v5679_v52, %v5671_v55  ;;  %v5683_v37 = vsel %vm2994_vm15, %v5671_v55, %v5679_v52 }
 0x80b   : > { %6503 = vmatmul.mubr.msk.f32.gmra.mrb[20].mxu1 %vm2002_vm12, %v5407_v35  ;;  %v5695_v51 = vmul.f32 %v5687_v53, %v8602_v30  ;;  %v5694_v14 = vmul.f32 %v5683_v37, %v8617_v38  ;;  %v5552_v30 = vld [vmem:[#allocation4 + $0xc8] sm:$0xff]  ;;  %v6044_v37 = vld [vmem:[%s9767_s8 + $0x80] sm:$0xff] }
 0x80c   : > { %5503 = vmatprep.mubr.f32.mxu1 %v7471_v0 }
 0x80d   : > { %v5819_v32 = vpop.permute.xlu0 %5818  ;;  %v5813_v60 = vpop.permute.xlu1 %5812  ;;  %v6841_v57 = vpack.c.bf16 %v5695_v51, %v5693_v54  ;;  %v6843_v50 = vpack.c.bf16 %v5694_v14, %v5692_v39  ;;  %v6045_v51 = vld [vmem:[%s9767_s8 + $0x88] sm:$0xff]  ;;  %v6047_v54 = vld [vmem:[%s9767_s8 + $0x98] sm:$0xff]  ;;  %v6032_v39 = vld [vmem:[%s9767_s8 + $0x20] sm:$0xff] }
 0x80e   : > { %v5830_v17 = vsel %vm3154_vm0, %v5819_v32, %v5811_v26  ;;  %v5826_v24 = vsel %vm3154_vm0, %v5811_v26, %v5819_v32  ;;  %v6853_v36 = vpack.c.bf16 %v6045_v51, %v6044_v37  ;;  %v6031_v14 = vld [vmem:[%s9767_s8 + $0x18] sm:$0xff] }
 0x80f   : > { %6504 = vmatmul.mubr.msk.f32.gmra.mrb[22].mxu1 %vm2002_vm12, %v5408_v31  ;;  %v5835_v45 = vmul.f32 %v5830_v17, %v8684_v44  ;;  %v5834_v40 = vmul.f32 %v5826_v24, %v8681_v42  ;;  %v6028_v17 = vld [vmem:[%s9767_s8] sm:$0xff] }
 0x810   : > { %5631 = vmatprep.mubr.f32.mxu1 %v7471_v0  ;;  %6854 = vmatprep.subr.bf16.mxu0 %v6853_v36  ;;  %v6036_v24 = vld [vmem:[%s9767_s8 + $0x40] sm:$0xff] }
 0x811   : > { %v5821_v25 = vpop.permute.xlu1 %5820  ;;  %v5815_v28 = vpop.permute.xlu0 %5814 }
 0x812   : > { %v5831_v20 = vsel %vm3154_vm0, %v5821_v25, %v5813_v60  ;;  %v5827_v38 = vsel %vm3154_vm0, %v5813_v60, %v5821_v25  ;;  %v5844_v60 = vld [vmem:[#allocation4 + $0x108] sm:$0xff]  ;;  %v6857_v25 = vpack.c.bf16 %v6047_v54, %v6046_v10 }
 0x813   : > { %v5837_v6 = vmul.f32 %v5831_v20, %v8684_v44  ;;  %6505 = vmatmul.mubr.msk.f32.vlgmr.msra.gmra.mrb[16].mxu1 %vm2002_vm12, %v5551_v61  ;;  %v5836_v34 = vmul.f32 %v5827_v38, %v8681_v42 }
 0x814   : > { %6840 = vmatpush1.bf16.msra.mxu1 %v6839_v63  ;;  %5637 = vmatprep.mubr.f32.mxu1 %v7471_v0  ;;  %v6030_v63 = vld [vmem:[%s9767_s8 + $0x10] sm:$0xff] }
 0x815   : > { %6842 = vmatprep.subr.bf16.mxu1 %v6841_v57  ;;  %v5817_v12 = vpop.permute.xlu1 %5816  ;;  %v6845_v2 = vpack.c.bf16 %v5837_v6, %v5835_v45  ;;  %v5823_v3 = vpop.permute.xlu0 %5822  ;;  %v6847_v52 = vpack.c.bf16 %v5836_v34, %v5834_v40  ;;  %v6859_v20 = vpack.c.bf16 %v6031_v14, %v6030_v63  ;;  %v6048_v45 = vld [vmem:[%s9767_s8 + $0xa0] sm:$0xff]  ;;  %v6049_v6 = vld [vmem:[%s9767_s8 + $0xa8] sm:$0xff] }
 0x816   : > { %v5832_v23 = vsel %vm3154_vm0, %v5823_v3, %v5815_v28  ;;  %v5828_v35 = vsel %vm3154_vm0, %v5815_v28, %v5823_v3  ;;  %v6861_v57 = vpack.c.bf16 %v6049_v6, %v6048_v45  ;;  %v6052_v3 = vld [vmem:[%s9767_s8 + $0xc0] sm:$0xff]  ;;  %v6037_v34 = vld [vmem:[%s9767_s8 + $0x48] sm:$0xff] }
 0x817   : > { %6506 = vmatmul.mubr.msk.f32.gmra.mrb[18].mxu1 %vm2002_vm12, %v5552_v30  ;;  %v5839_v26 = vmul.f32 %v5832_v23, %v8684_v44  ;;  %v5838_v31 = vmul.f32 %v5828_v35, %v8681_v42  ;;  %v6033_v30 = vld [vmem:[%s9767_s8 + $0x28] sm:$0xff]  ;;  %v6871_v23 = vpack.c.bf16 %v6037_v34, %v6036_v24  ;;  %v6039_v35 = vld [vmem:[%s9767_s8 + $0x58] sm:$0xff] }
 0x818   : > { %6844 = vmatpush1.bf16.msra.mxu1 %v6843_v50  ;;  %5643 = vmatprep.mubr.f32.mxu1 %v7471_v0  ;;  %v6863_v28 = vpack.c.bf16 %v6033_v30, %v6032_v39 }
 0x819   : > { %6846 = vmatprep.subr.bf16.mxu1 %v6845_v2  ;;  %v5825_v8 = vpop.permute.xlu1 %5824  ;;  %v6051_v2 = vld [vmem:[%s9767_s8 + $0xb8] sm:$0xff] }
 0x81a   : > { %v5833_v62 = vsel %vm3154_vm0, %v5825_v8, %v5817_v12  ;;  %v5829_v33 = vsel %vm3154_vm0, %v5817_v12, %v5825_v8  ;;  %v6050_v12 = vld [vmem:[%s9767_s8 + $0xb0] sm:$0xff]  ;;  %v6035_v8 = vld [vmem:[%s9767_s8 + $0x38] sm:$0xff] }
 0x81b   : > { %6507 = vmatmul.mubr.msk.f32.gmra.mrb[20].mxu1 %vm2002_vm12, %v5553_v11  ;;  %v5841_v55 = vmul.f32 %v5833_v62, %v8684_v44  ;;  %v5840_v29 = vmul.f32 %v5829_v33, %v8681_v42  ;;  %v5700_v44 = vld [vmem:[#allocation4 + $0xf8] sm:$0xff]  ;;  %v5843_v42 = vld [vmem:[#allocation4 + $0x100] sm:$0xff]  ;;  %v6865_v50 = vpack.c.bf16 %v6051_v2, %v6050_v12  ;;  %v6034_v11 = vld [vmem:[%s9767_s8 + $0x30] sm:$0xff] }
 0x81c   : > { %5649 = vmatprep.mubr.f32.mxu1 %v7471_v0  ;;  %v6867_v38 = vpack.c.bf16 %v6035_v8, %v6034_v11  ;;  %v6053_v62 = vld [vmem:[%s9767_s8 + $0xc8] sm:$0xff]  ;;  %v6054_v33 = vld [vmem:[%s9767_s8 + $0xd0] sm:$0xff] }
 0x81d   : > { %v6849_v53 = vpack.c.bf16 %v5841_v55, %v5839_v26  ;;  %v6851_v32 = vpack.c.bf16 %v5840_v29, %v5838_v31  ;;  %v6055_v55 = vld [vmem:[%s9767_s8 + $0xd8] sm:$0xff]  ;;  %v6057_v29 = vld [vmem:[%s9767_s8 + $0xe8] sm:$0xff]  ;;  %v6040_v31 = vld [vmem:[%s9767_s8 + $0x60] sm:$0xff] }
 0x81e   : > { %v6873_v40 = vpack.c.bf16 %v6055_v55, %v6054_v33 }
 0x81f   : > { %6508 = vmatmul.mubr.msk.f32.gmra.mrb[22].mxu1 %vm2002_vm12, %v5554_v9  ;;  %v6869_v9 = vpack.c.bf16 %v6053_v62, %v6052_v3 }
 0x820   : > { %5777 = vmatprep.mubr.f32.mxu1 %v7471_v0 }
 0x823   : > { %6509 = vmatmul.mubr.msk.f32.vlgmr.msra.gmra.mrb[16].mxu1 %vm2002_vm12, %v5697_v22  ;;  %v6038_v22 = vld [vmem:[%s9767_s8 + $0x50] sm:$0xff] }
 0x824   : > { %6848 = vmatpush1.bf16.msra.mxu1 %v6847_v52  ;;  %5783 = vmatprep.mubr.f32.mxu1 %v7471_v0  ;;  %v6875_v26 = vpack.c.bf16 %v6039_v35, %v6038_v22  ;;  %v6056_v52 = vld [vmem:[%s9767_s8 + $0xe0] sm:$0xff] }
 0x825   : > { %6850 = vmatprep.subr.bf16.mxu1 %v6849_v53  ;;  %v6877_v53 = vpack.c.bf16 %v6057_v29, %v6056_v52  ;;  %v6012_v52 = vadd.f32 %v9217_v41, %v8794_v49 }
 0x827   : > { %6510 = vmatmul.mubr.msk.f32.gmra.mrb[18].mxu1 %vm2002_vm12, %v5698_v21  ;;  %v6041_v21 = vld [vmem:[%s9767_s8 + $0x68] sm:$0xff] }
 0x828   : > { %6852 = vmatpush1.bf16.msra.mxu1 %v6851_v32  ;;  %5789 = vmatprep.mubr.f32.mxu1 %v7471_v0  ;;  %v6879_v32 = vpack.c.bf16 %v6041_v21, %v6040_v31 }
 0x82b   : > { %6511 = vmatmul.mubr.msk.f32.gmra.mrb[20].mxu1 %vm2002_vm12, %v5699_v5  ;;  %v6058_v5 = vld [vmem:[%s9767_s8 + $0xf0] sm:$0xff] }
 0x82c   : > { %5795 = vmatprep.mubr.f32.mxu1 %v7471_v0 }
 0x82f   : > { %6512 = vmatmul.mubr.msk.f32.gmra.mrb[22].mxu1 %vm2002_vm12, %v5700_v44  ;;  %v6059_v44 = vld [vmem:[%s9767_s8 + $0xf8] sm:$0xff] }
 0x830   : > { %5923 = vmatprep.mubr.f32.mxu1 %v7471_v0 }
 0x833   : > { %6513 = vmatmul.mubr.msk.f32.vlgmr.msra.gmra.mrb[16].mxu1 %vm2002_vm12, %v5843_v42  ;;  %v6881_v42 = vpack.c.bf16 %v6059_v44, %v6058_v5 }
 0x834   : > { %5929 = vmatprep.mubr.f32.mxu1 %v7471_v0 }
 0x837   : > { %6514 = vmatmul.mubr.msk.f32.gmra.mrb[18].mxu1 %vm2002_vm12, %v5844_v60  ;;  %v6042_v60 = vld [vmem:[%s9767_s8 + $0x70] sm:$0xff] }
 0x838   : > { %5935 = vmatprep.mubr.f32.mxu1 %v7471_v0 }
 0x83b   : > { %6515 = vmatmul.mubr.msk.f32.gmra.mrb[20].mxu1 %vm2002_vm12, %v5845_v19  ;;  %v6043_v19 = vld [vmem:[%s9767_s8 + $0x78] sm:$0xff] }
 0x83c   : > { %5941 = vmatprep.mubr.f32.mxu1 %v7471_v0  ;;  %v6029_v0 = vld [vmem:[%s9767_s8 + $0x8] sm:$0xff] }
 0x83d   : > { %v6855_v61 = vpack.c.bf16 %v6029_v0, %v6028_v17 }
 0x83f   : > { %6516 = vmatmul.mubr.msk.f32.gmra.mrb[22].mxu1 %vm2002_vm12, %v5846_v1  ;;  %6856 = vmatpush3.bf16.msra.mxu0 %v6855_v61  ;;  %v6883_v1 = vpack.c.bf16 %v6043_v19, %v6042_v60  ;;  %v6014_v60 = vadd.f32 %v9223_v13, %v8800_v56 }
 0x840   : > { %6858 = vmatprep.subr.bf16.mxu0 %v6857_v25 }
 0x843   : > { %6860 = vmatpush3.bf16.msra.mxu0 %v6859_v20 }
 0x844   : > { %6862 = vmatprep.subr.bf16.mxu0 %v6861_v57 }
 0x847   : > { %6864 = vmatpush3.bf16.msra.mxu0 %v6863_v28 }
 0x848   : > { %6866 = vmatprep.subr.bf16.mxu0 %v6865_v50 }
 0x84b   : > { %6868 = vmatpush3.bf16.msra.mxu0 %v6867_v38 }
 0x84c   : > { %6870 = vmatprep.subr.bf16.mxu0 %v6869_v9 }
 0x84f   : > { %6872 = vmatpush3.bf16.msra.mxu0 %v6871_v23 }
 0x850   : > { %6874 = vmatprep.subr.bf16.mxu0 %v6873_v40 }
 0x853   : > { %6876 = vmatpush3.bf16.msra.mxu0 %v6875_v26  ;;  %v6013_v26 = vadd.f32 %v9221_v58, %v8798_v43 }
 0x854   : > { %6878 = vmatprep.subr.bf16.mxu0 %v6877_v53 }
 0x857   : > { %6880 = vmatpush3.bf16.msra.mxu0 %v6879_v32 }
 0x858   : > { %6882 = vmatprep.subr.bf16.mxu0 %v6881_v42  ;;  %v6015_v42 = vadd.f32 %v9229_v27, %v8808_v15 }
 0x85b   : > { %6884 = vmatpush3.bf16.msra.mxu0 %v6883_v1 }
 0x906   : > { %v5925_v37 = vpop.f32.mrb[16].mxu1 }
 0x907   : > { %v6517_v51 = vmul.f32 -1.442695, %v5925_v37  ;;  %v5927_v36 = vpop.f32.mrb[17].mxu1 }
 0x908   : > { %v6518_v17 = vmul.f32 -1.442695, %v5927_v36 }
 0x909   : > { %7332 = vpow2.f32 %v6517_v51  ;;  %v6016_v51 = vadd.f32 %v9231_v47, %v8806_v59 }
 0x90a   : > { %7334 = vpow2.f32 %v6518_v17  ;;  %v5931_v0 = vpop.f32.mrb[18].mxu1 }
 0x90b   : > { %v6519_v61 = vmul.f32 -1.442695, %v5931_v0  ;;  %v5933_v10 = vpop.f32.mrb[19].mxu1 }
 0x90c   : > { %v6520_v54 = vmul.f32 -1.442695, %v5933_v10 }
 0x90d   : > { %7336 = vpow2.f32 %v6519_v61 }
 0x90e   : > { %7338 = vpow2.f32 %v6520_v54  ;;  %v5937_v25 = vpop.f32.mrb[20].mxu1 }
 0x90f   : > { %v6521_v63 = vmul.f32 -1.442695, %v5937_v25  ;;  %v5939_v14 = vpop.f32.mrb[21].mxu1 }
 0x910   : > { %v6522_v20 = vmul.f32 -1.442695, %v5939_v14 }
 0x911   : > { %7340 = vpow2.f32 %v6521_v63 }
 0x912   : > { %7342 = vpow2.f32 %v6522_v20  ;;  %v5943_v45 = vpop.f32.mrb[22].mxu1 }
 0x913   : > { %v7333_v6 = vpop.eup %7332  ;;  %v6523_v57 = vmul.f32 -1.442695, %v5943_v45  ;;  %v5945_v39 = vpop.f32.mrb[23].mxu1 }
 0x914   : > { %v7335_v30 = vpop.eup %7334  ;;  %v5980_v28 = vadd.f32 1.0, %v7333_v6  ;;  %v6524_v12 = vmul.f32 -1.442695, %v5945_v39 }
 0x915   : > { %v5981_v2 = vadd.f32 1.0, %v7335_v30  ;;  %7344 = vpow2.f32 %v6523_v57 }
 0x916   : > { %7346 = vrcp.f32 %v5980_v28 }
 0x917   : > { %v7337_v50 = vpop.eup %7336  ;;  %7348 = vrcp.f32 %v5981_v2 }
 0x918   : > { %v7339_v11 = vpop.eup %7338  ;;  %v5982_v8 = vadd.f32 1.0, %v7337_v50  ;;  %7350 = vpow2.f32 %v6524_v12 }
 0x919   : > { %v5983_v38 = vadd.f32 1.0, %v7339_v11 }
 0x91a   : > { %7352 = vrcp.f32 %v5982_v8 }
 0x91b   : > { %v7341_v3 = vpop.eup %7340  ;;  %7354 = vrcp.f32 %v5983_v38 }
 0x91c   : > { %v7343_v62 = vpop.eup %7342  ;;  %v5984_v9 = vadd.f32 1.0, %v7341_v3 }
 0x91d   : > { %v5985_v24 = vadd.f32 1.0, %v7343_v62 }
 0x91e   : > { %7356 = vrcp.f32 %v5984_v9 }
 0x91f   : > { %v7345_v34 = vpop.eup %7344  ;;  %7358 = vrcp.f32 %v5985_v24 }
 0x920   : > { %v7347_v23 = vpop.eup %7346  ;;  %v5986_v33 = vadd.f32 1.0, %v7345_v34 }
 0x921   : > { %v7349_v55 = vpop.eup %7348  ;;  %v6004_v40 = vmul.f32 %v7347_v23, %v5925_v37  ;;  %v6017_v37 = vadd.f32 %v9237_v46, %v8814_v18  ;;  %v6018_v18 = vadd.f32 %v9239_v48, %v8816_v4 }
 0x922   : > { %v7351_v22 = vpop.eup %7350  ;;  %v6005_v35 = vmul.f32 %v7349_v55, %v5927_v36  ;;  %7360 = vrcp.f32 %v5986_v33 }
 0x923   : > { %v5987_v29 = vadd.f32 1.0, %v7351_v22  ;;  %v6020_v32 = vadd.f32 %v6012_v52, %v6004_v40 }
 0x924   : > { %v7353_v53 = vpop.eup %7352  ;;  %v6021_v31 = vadd.f32 %v6013_v26, %v6005_v35 }
 0x925   : > { %v7355_v21 = vpop.eup %7354  ;;  %v6006_v5 = vmul.f32 %v7353_v53, %v5931_v0  ;;  %7362 = vrcp.f32 %v5987_v29  ;;  %v6019_v0 = vadd.f32 %v9245_v7, %v8822_v16 }
 0x926   : > { %v6007_v44 = vmul.f32 %v7355_v21, %v5933_v10  ;;  %6124 = vmatprep.mubr.f32.mxu0 %v6021_v31 }
 0x927   : > { %6125 = vmatmul.mubr.f32.vlgmr.msra.gmra.mrb[24].mxu0 %v6020_v32  ;;  %v6022_v49 = vadd.f32 %v6014_v60, %v6006_v5 }
 0x928   : > { %v7357_v43 = vpop.eup %7356  ;;  %v6023_v58 = vadd.f32 %v6015_v42, %v6007_v44 }
 0x929   : > { %v7359_v19 = vpop.eup %7358  ;;  %v6008_v41 = vmul.f32 %v7357_v43, %v5937_v25 }
 0x92a   : > { %v6009_v1 = vmul.f32 %v7359_v19, %v5939_v14  ;;  %6129 = vmatprep.mubr.f32.mxu0 %v6023_v58 }
 0x92b   : > { %6130 = vmatmul.mubr.f32.gmra.mrb[26].mxu0 %v6022_v49  ;;  %v6024_v36 = vadd.f32 %v6016_v51, %v6008_v41 }
 0x92c   : > { %v7361_v15 = vpop.eup %7360  ;;  %v6025_v27 = vadd.f32 %v6017_v37, %v6009_v1 }
 0x92d   : > { %v6010_v13 = vmul.f32 %v7361_v15, %v5943_v45 }
 0x92e   : > { %6134 = vmatprep.mubr.f32.mxu0 %v6025_v27 }
 0x92f   : > { %v7363_v56 = vpop.eup %7362  ;;  %6135 = vmatmul.mubr.f32.gmra.mrb[28].mxu0 %v6024_v36  ;;  %v6026_v61 = vadd.f32 %v6018_v18, %v6010_v13 }
 0x930   : > { %v6011_v17 = vmul.f32 %v7363_v56, %v5945_v39 }
 0x932   : > { %v6027_v46 = vadd.f32 %v6019_v0, %v6011_v17 }
 0x934   : > { %6139 = vmatprep.mubr.f32.mxu0 %v6027_v46 }
 0x935   : > { %6140 = vmatmul.mubr.f32.gmra.mrb[30].mxu0 %v6026_v61 }
 0x9fa   : > { %v6561_v59 = vpop.f32.mrb[24].mxu0 }
 0x9fb   : > { %v6562_v47 = vpop.f32.mrb[25].mxu0 }
 0x9fc   : > { %v6563_v10 = vadd.f32 %v6562_v47, %v6561_v59 }
 0x9fe   : > { %6146 = vst.msk [vmem:[%s376_s13] sm:$0xff] %vm6145_vm1, %v6563_v10  ;;  %v6564_v54 = vpop.f32.mrb[26].mxu0 }
 0x9ff   : > { %v6565_v25 = vpop.f32.mrb[27].mxu0 }
 0xa00   : > { %v6566_v16 = vadd.f32 %v6565_v25, %v6564_v54 }
 0xa02   : > { %6147 = vst.msk [vmem:[%s376_s13 + $0x8] sm:$0xff] %vm6145_vm1, %v6566_v16  ;;  %v6567_v7 = vpop.f32.mrb[28].mxu0 }
 0xa03   : > { %v6568_v4 = vpop.f32.mrb[29].mxu0 }
 0xa04   : > { %v6569_v48 = vadd.f32 %v6568_v4, %v6567_v7 }
 0xa06   : > { %6148 = vst.msk [vmem:[%s376_s13 + $0x10] sm:$0xff] %vm6145_vm1, %v6569_v48 }
 0xa08   : > { %v6570_v63 = vpop.f32.mrb[30].mxu0 }
 0xa09   : > { %v6571_v14 = vpop.f32.mrb[31].mxu0 }
 0xa0a   : > { %v6572_v20 = vadd.f32 %v6571_v14, %v6570_v63 }
 0xa0c   : > { %6149 = vst.msk [vmem:[%s376_s13 + $0x18] sm:$0xff] %vm6145_vm1, %v6572_v20 }
 0xa0d PF: > { %s21_s30 = sadd.s32 1, %s7462_s30  }
 0xa0e   : > { %p18_p2 = scmp.ge.s32.totalorder %s21_s30, 4  }
 0xa10   :  { %20 = sbr.rel (!%p18_p2) target bundleno = 2 (0x2), region = 147 }
 0xa17   :  { %6171 = vsyncpa [#allocation3], 1 }
 0xa18   :  { %6173 = vsyncpa [#allocation3 + $0x1], 1 }
 0xa19   :  { %6174 = vsyncpa [#allocation5], 1 }

</bundles_post_ra>
